<compile_context>
chip_gen: v7x
topology: tpu7x:2x2x1
jax: 0.10.0
libtpu: 0.0.40
codegen_flags: <defaults>
</compile_context>

<pallas_src>
import functools

import jax
import jax.numpy as jnp
from jax.experimental import pallas as pl
from jax.experimental.pallas import tpu as pltpu

CP = 128  # persistent channels-in-lanes activation width (lane-dense)


def _round_up(x, m):
    return ((x + m - 1) // m) * m


# ----------------------------------------------------------------------------
# Pallas kernels
# ----------------------------------------------------------------------------
def _gemm_bias_kernel(p_ref, w_ref, b_ref, o_ref, acc_ref, *, relu):
    # Tiled GEMM: patches (tm, tk) @ scale-folded weights (tk, Np) accumulated
    # over the K grid axis into an f32 VMEM scratch; bias (+ReLU) epilogue on
    # the last K step only.
    k = pl.program_id(1)

    @pl.when(k == 0)
    def _():
        acc_ref[...] = jnp.zeros_like(acc_ref)

    acc_ref[...] += jnp.dot(p_ref[...], w_ref[...],
                            preferred_element_type=jnp.float32)

    @pl.when(k == pl.num_programs(1) - 1)
    def _():
        y = acc_ref[...] + b_ref[...]
        if relu:
            y = jnp.maximum(y, 0.0)
        o_ref[...] = y.astype(o_ref.dtype)


def _gemm_bias_res_kernel(p_ref, w_ref, b_ref, r_ref, o_ref, acc_ref, *, relu):
    # Same as above, plus the residual add fused into the epilogue
    # (BasicBlock tail: relu(bn2(conv2(.)) + identity)).  Residual is bf16.
    k = pl.program_id(1)

    @pl.when(k == 0)
    def _():
        acc_ref[...] = jnp.zeros_like(acc_ref)

    acc_ref[...] += jnp.dot(p_ref[...], w_ref[...],
                            preferred_element_type=jnp.float32)

    @pl.when(k == pl.num_programs(1) - 1)
    def _():
        y = acc_ref[...] + b_ref[...] + r_ref[...].astype(jnp.float32)
        if relu:
            y = jnp.maximum(y, 0.0)
        o_ref[...] = y.astype(o_ref.dtype)


def _gemm_dual_kernel(p_ref, w_ref, b_ref, o1_ref, o2_ref, acc_ref, *, np1):
    # Fused BasicBlock head: the 3x3 conv1 and the 1x1 downsample read the
    # same strided patch matrix, so their weight columns are packed side by
    # side.  Columns [0, np1) -> relu(conv1 + bn1) ("out"); columns [np1, :)
    # -> downsample + bn ("identity", no relu).
    k = pl.program_id(1)

    @pl.when(k == 0)
    def _():
        acc_ref[...] = jnp.zeros_like(acc_ref)

    acc_ref[...] += jnp.dot(p_ref[...], w_ref[...],
                            preferred_element_type=jnp.float32)

    @pl.when(k == pl.num_programs(1) - 1)
    def _():
        y = acc_ref[...] + b_ref[...]
        o1_ref[...] = jnp.maximum(y[:, :np1], 0.0).astype(o1_ref.dtype)
        o2_ref[...] = y[:, np1:].astype(o2_ref.dtype)


def _maxpool_kernel(w_ref, o_ref):
    # w_ref: (9, tr, 128) stacked window taps, lane-dense; elementwise max.
    m = w_ref[0]
    for t in range(1, w_ref.shape[0]):
        m = jnp.maximum(m, w_ref[t])
    o_ref[...] = m


# ----------------------------------------------------------------------------
# Glue: im2col on the persistent padded layout, pallas_call wrappers
# ----------------------------------------------------------------------------
def _im2col(x, kh, kw, stride, pad):
    """x: (N, H, W, C) -> patches (N*Ho*Wo, kh*kw*C), K order = (kh, kw, C)."""
    N, H, W, C = x.shape
    xp = jnp.pad(x, ((0, 0), (pad, pad), (pad, pad), (0, 0))) if pad else x
    Ho = (H + 2 * pad - kh) // stride + 1
    Wo = (W + 2 * pad - kw) // stride + 1
    cols = []
    for i in range(kh):
        for j in range(kw):
            cols.append(
                jax.lax.slice(
                    xp,
                    (0, i, j, 0),
                    (N, i + (Ho - 1) * stride + 1, j + (Wo - 1) * stride + 1, C),
                    (1, stride, stride, 1),
                )
            )
    patches = jnp.concatenate(cols, axis=-1)  # (N, Ho, Wo, kh*kw*C)
    return patches.reshape(N * Ho * Wo, kh * kw * C), (N, Ho, Wo)


def _build_patches(x, kh, kw, stride, pad, kp):
    """im2col + (only if needed) pad rows to a 16-multiple / K columns to kp."""
    patches, (N, Ho, Wo) = _im2col(x, kh, kw, stride, pad)
    M, K = patches.shape
    Mp = _round_up(M, 16)
    patches = patches.astype(jnp.bfloat16)
    if Mp != M or kp != K:
        # Padded K columns / M rows are explicitly zeroed (never garbage*0).
        patches = jnp.zeros((Mp, kp), jnp.bfloat16).at[:M, :K].set(patches)
    return patches, M, Mp, (N, Ho, Wo)


def _pick_tk(kp):
    for tk in (512, 384, 256, 128):
        if kp % tk == 0:
            return tk
    return kp


def _pick_tm(mp):
    # Split large M across >=2 "parallel" tiles so both v7x TensorCores get
    # work; small M stays a single full block (already a 16-multiple).
    if mp >= 512 and mp % 256 == 0:
        return 256
    return mp


def _gemm_compiler_params():
    return pltpu.CompilerParams(
        dimension_semantics=("parallel", "arbitrary"))


def conv_bn_act(x, wp, bp, *, kh, kw, stride, pad, relu, residual=None):
    """Conv (no bias) + folded BN (+ residual) (+ ReLU), one Pallas GEMM.

    x: (N, H, W, Cin_packed) in the layout the weights were packed for.
    wp: (Kp, Np) bf16 scale-folded weights. bp: (1, Np) f32 bias.
    Returns (N, Ho, Wo, Np) bf16 (persistent padded layout).
    """
    Kp, Np = wp.shape
    patches, M, Mp, (N, Ho, Wo) = _build_patches(x, kh, kw, stride, pad, Kp)
    tm, tk = _pick_tm(Mp), _pick_tk(Kp)
    grid = (Mp // tm, Kp // tk)

    in_specs = [
        pl.BlockSpec((tm, tk), lambda i, k: (i, k)),
        pl.BlockSpec((tk, Np), lambda i, k: (k, 0)),
        pl.BlockSpec((1, Np), lambda i, k: (0, 0)),
    ]
    args = [patches, wp, bp]

    if residual is None:
        kernel = functools.partial(_gemm_bias_kernel, relu=relu)
    else:
        r = residual.reshape(-1, Np).astype(jnp.bfloat16)
        if r.shape[0] != Mp:
            r = jnp.zeros((Mp, Np), jnp.bfloat16).at[:M].set(r)
        args.append(r)
        in_specs.append(pl.BlockSpec((tm, Np), lambda i, k: (i, 0)))
        kernel = functools.partial(_gemm_bias_res_kernel, relu=relu)

    out = pl.pallas_call(
        kernel,
        grid_spec=pltpu.PrefetchScalarGridSpec(
            num_scalar_prefetch=0,
            grid=grid,
            in_specs=in_specs,
            out_specs=pl.BlockSpec((tm, Np), lambda i, k: (i, 0)),
            scratch_shapes=[pltpu.VMEM((tm, Np), jnp.float32)],
        ),
        out_shape=jax.ShapeDtypeStruct((Mp, Np), jnp.bfloat16),
        compiler_params=_gemm_compiler_params(),
    )(*args)

    if Mp != M:
        out = out[:M]
    return out.reshape(N, Ho, Wo, Np)


def conv_bn_dual(x, wp, bp, *, kh, kw, stride, pad, np1):
    """Fused BasicBlock head: relu(conv1+bn1) and the 1x1 downsample+bn,
    both computed from the same patch matrix in one Pallas GEMM."""
    Kp, Ntot = wp.shape
    np2 = Ntot - np1
    patches, M, Mp, (N, Ho, Wo) = _build_patches(x, kh, kw, stride, pad, Kp)
    tm, tk = _pick_tm(Mp), _pick_tk(Kp)
    grid = (Mp // tm, Kp // tk)

    out1, out2 = pl.pallas_call(
        functools.partial(_gemm_dual_kernel, np1=np1),
        grid_spec=pltpu.PrefetchScalarGridSpec(
            num_scalar_prefetch=0,
            grid=grid,
            in_specs=[
                pl.BlockSpec((tm, tk), lambda i, k: (i, k)),
                pl.BlockSpec((tk, Ntot), lambda i, k: (k, 0)),
                pl.BlockSpec((1, Ntot), lambda i, k: (0, 0)),
            ],
            out_specs=[
                pl.BlockSpec((tm, np1), lambda i, k: (i, 0)),
                pl.BlockSpec((tm, np2), lambda i, k: (i, 0)),
            ],
            scratch_shapes=[pltpu.VMEM((tm, Ntot), jnp.float32)],
        ),
        out_shape=(jax.ShapeDtypeStruct((Mp, np1), jnp.bfloat16),
                   jax.ShapeDtypeStruct((Mp, np2), jnp.bfloat16)),
        compiler_params=_gemm_compiler_params(),
    )(patches, wp, bp)

    if Mp != M:
        out1, out2 = out1[:M], out2[:M]
    return out1.reshape(N, Ho, Wo, np1), out2.reshape(N, Ho, Wo, np2)


def maxpool_3x3_s2_p1(x):
    """nn.MaxPool2d(3, stride=2, padding=1) on the padded NHWC bf16 layout."""
    N, H, W, C = x.shape  # C is already lane-dense (128); padded chans are 0.
    xp = jnp.pad(x, ((0, 0), (1, 1), (1, 1), (0, 0)),
                 constant_values=-jnp.inf)
    Ho = (H + 2 - 3) // 2 + 1
    Wo = (W + 2 - 3) // 2 + 1
    M = N * Ho * Wo

    taps = []
    for i in range(3):
        for j in range(3):
            taps.append(
                jax.lax.slice(
                    xp,
                    (0, i, j, 0),
                    (N, i + (Ho - 1) * 2 + 1, j + (Wo - 1) * 2 + 1, C),
                    (1, 2, 2, 1),
                ).reshape(M, C)
            )
    win = jnp.stack(taps, axis=0)  # (9, M, C) -- already lane-dense

    Mp = _round_up(M, 8)
    if Mp != M:
        win = jnp.concatenate(
            [win, jnp.zeros((9, Mp - M, C), win.dtype)], axis=1)
    tr = Mp if Mp <= 512 or Mp % 512 != 0 else 512

    out = pl.pallas_call(
        _maxpool_kernel,
        grid=(Mp // tr,),
        in_specs=[pl.BlockSpec((9, tr, C), lambda i: (0, i, 0))],
        out_specs=pl.BlockSpec((tr, C), lambda i: (i, 0)),
        out_shape=jax.ShapeDtypeStruct((Mp, C), x.dtype),
        compiler_params=pltpu.CompilerParams(
            dimension_semantics=("parallel",)),
    )(win)
    if Mp != M:
        out = out[:M]
    return out.reshape(N, Ho, Wo, C)


# ----------------------------------------------------------------------------
# Parameters: deterministic synthetic init + one-time GEMM packing
# ----------------------------------------------------------------------------
def _bn_fold(gamma, beta, mean, var, eps=1e-5):
    scale = gamma / jnp.sqrt(var + eps)
    bias = beta - mean * scale
    return scale, bias


def _init_conv(key, cout, cin, kh, kw):
    fan_in = cin * kh * kw
    return jax.random.normal(key, (cout, cin, kh, kw), jnp.float32) * (
        (2.0 / fan_in) ** 0.5
    )


def _init_bn(key, c):
    k1, k2, k3, k4 = jax.random.split(key, 4)
    gamma = 1.0 + 0.1 * jax.random.normal(k1, (c,), jnp.float32)
    beta = 0.1 * jax.random.normal(k2, (c,), jnp.float32)
    mean = 0.1 * jax.random.normal(k3, (c,), jnp.float32)
    var = 1.0 + 0.1 * jax.random.uniform(k4, (c,), jnp.float32)
    return _bn_fold(gamma, beta, mean, var)


def _pack_conv_f32(w, scale, cin_p, cout_p):
    """(Cout,Cin,KH,KW) + BN scale -> f32 GEMM weight (KH*KW*cin_p, cout_p),
    scale folded per output column, K order matching _im2col (kh, kw, c)."""
    Cout, Cin, KH, KW = w.shape
    wf = w * scale[:, None, None, None]                 # fold BN scale in f32
    wt = jnp.transpose(wf, (2, 3, 1, 0))                # (KH, KW, Cin, Cout)
    wp = jnp.zeros((KH, KW, cin_p, cout_p), jnp.float32)
    wp = wp.at[:, :, :Cin, :Cout].set(wt)
    return wp.reshape(KH * KW * cin_p, cout_p)


def _pack_conv(w, scale, bias, cin_p, cout_p=CP, k_align=128):
    Cout = w.shape[0]
    wp = _pack_conv_f32(w, scale, cin_p, cout_p)
    K = wp.shape[0]
    Kp = _round_up(K, k_align)
    if Kp != K:
        wp = jnp.concatenate([wp, jnp.zeros((Kp - K, cout_p), jnp.float32)], 0)
    bp = jnp.zeros((1, cout_p), jnp.float32).at[0, :Cout].set(bias)
    return wp.astype(jnp.bfloat16), bp


def _pack_dual(w1, s1, b1, wd, sd, bd, cin_p):
    """Pack a 3x3 conv and its 1x1 downsample (same stride, same patches)
    side by side along N; the 1x1 occupies only the center-tap K rows."""
    wp1 = _pack_conv_f32(w1, s1, cin_p, CP)             # (9*cin_p, CP)
    Cout1 = w1.shape[0]
    Cout_d, Cin_d = wd.shape[0], wd.shape[1]
    K = wp1.shape[0]
    wfd = (wd[:, :, 0, 0] * sd[:, None]).astype(jnp.float32)  # (Cout_d, Cin_d)
    wpd = jnp.zeros((K, CP), jnp.float32)
    center = 4 * cin_p                                   # tap (1,1) of 3x3
    wpd = wpd.at[center:center + Cin_d, :Cout_d].set(wfd.T)
    wcat = jnp.concatenate([wp1, wpd], axis=1).astype(jnp.bfloat16)
    bcat = jnp.zeros((1, 2 * CP), jnp.float32)
    bcat = bcat.at[0, :Cout1].set(b1).at[0, CP:CP + Cout_d].set(bd)
    return wcat, bcat


def make_params(key, in_ch=3, width=8):
    keys = iter(jax.random.split(key, 64))
    conv = lambda cout, cin, k: _init_conv(next(keys), cout, cin, k, k)
    bn = lambda c: _init_bn(next(keys), c)

    params = {}
    w1, bn1 = conv(width, in_ch, 7), bn(width)
    params["stem"] = _pack_conv(w1, *bn1, cin_p=in_ch)   # Kp = 256

    layer_cfg = [("layer1", width, 1), ("layer2", width * 2, 2),
                 ("layer3", width * 4, 2), ("layer4", width * 8, 2)]
    in_c = width
    for name, out_c, stride in layer_cfg:
        blocks = []
        for bi in range(2):  # ResNet-18: 2 BasicBlocks per layer
            s = stride if bi == 0 else 1
            wa, bna = conv(out_c, in_c, 3), bn(out_c)
            wb, bnb = conv(out_c, out_c, 3), bn(out_c)
            blk = {"stride": s}
            if s != 1 or in_c != out_c:
                wd, bnd = conv(out_c, in_c, 1), bn(out_c)
                blk["dual"] = True
                blk["head"] = _pack_dual(wa, *bna, wd, *bnd, cin_p=CP)
            else:
                blk["dual"] = False
                blk["head"] = _pack_conv(wa, *bna, cin_p=CP)
            blk["conv2"] = _pack_conv(wb, *bnb, cin_p=CP)
            blocks.append(blk)
            in_c = out_c
        params[name] = blocks
    params["out_channels"] = in_c
    return params


# ----------------------------------------------------------------------------
# Forward pass
# ----------------------------------------------------------------------------
def basic_block(x, blk):
    s = blk["stride"]
    if blk["dual"]:
        out, identity = conv_bn_dual(
            x, *blk["head"], kh=3, kw=3, stride=s, pad=1, np1=CP)
    else:
        identity = x
        out = conv_bn_act(
            x, *blk["head"], kh=3, kw=3, stride=s, pad=1, relu=True)
    # conv2 + bn2 + residual add + relu, fused in one Pallas kernel
    out = conv_bn_act(
        out, *blk["conv2"], kh=3, kw=3, stride=1, pad=1, relu=True,
        residual=identity)
    return out


def modified_resnet_forward(x_nchw, params):
    """Equivalent of ModifiedResNet.forward: all children except avgpool/fc."""
    x = jnp.transpose(x_nchw, (0, 2, 3, 1)).astype(jnp.bfloat16)  # NCHW->NHWC
    x = conv_bn_act(x, *params["stem"], kh=7, kw=7, stride=2, pad=3, relu=True)
    x = maxpool_3x3_s2_p1(x)
    for name in ("layer1", "layer2", "layer3", "layer4"):
        for blk in params[name]:
            x = basic_block(x, blk)
    c = params["out_channels"]
    x = x[..., :c].astype(x_nchw.dtype)          # drop lane padding, back to f32
    return jnp.transpose(x, (0, 3, 1, 2))        # back to NCHW (PyTorch)


# ----------------------------------------------------------------------------
if __name__ == "__main__":
    key = jax.random.PRNGKey(0)
    pkey, xkey = jax.random.split(key)
    params = make_params(pkey, in_ch=3, width=8)
    x = jax.random.normal(xkey, (2, 3, 32, 32), jnp.float32)

    fwd = jax.jit(lambda inp: modified_resnet_forward(inp, params))
    out = fwd(x)
    jax.block_until_ready(out)

    # 32 -> conv1/s2 -> 16 -> maxpool/s2 -> 8 -> layer2 -> 4 -> layer3 -> 2
    # -> layer4 -> 1 ; final channels = 8 * 8 = 64
    assert out.shape == (2, 64, 1, 1), out.shape
    assert bool(jnp.all(jnp.isfinite(out)))
    print("KERNEL_OK")
</pallas_src>

<mosaic_0001>
module attributes {stable_mosaic.version = 11 : i64} {
  func.func @_gemm_bias_kernel(%arg0: i32, %arg1: i32, %arg2: memref<256x256xbf16, #tpu.memory_space<vmem>>, %arg3: memref<256x128xbf16, #tpu.memory_space<vmem>>, %arg4: memref<1x128xf32, #tpu.memory_space<vmem>>, %arg5: memref<256x128xbf16, #tpu.memory_space<vmem>>, %arg6: memref<256x128xf32, #tpu.memory_space<vmem>>) attributes {dimension_semantics = [#tpu.dimension_semantics<parallel>, #tpu.dimension_semantics<arbitrary>], iteration_bounds = array<i64: 2, 1>, scalar_prefetch = 0 : i64, scratch_operands = 1 : i64, tpu.core_type = #tpu.core_type<tc>, window_params = [{transform_indices = @transform_0, window_bounds = array<i64: 256, 256>}, {transform_indices = @transform_1, window_bounds = array<i64: 256, 128>}, {pipeline_mode = #tpu.pipeline_mode<synchronous>, transform_indices = @transform_2, window_bounds = array<i64: 1, 128>}, {transform_indices = @transform_3, window_bounds = array<i64: 256, 128>}]} {
    %c0_i32 = arith.constant 0 : i32
    %0 = arith.cmpi eq, %arg1, %c0_i32 : i32
    %1 = arith.extui %0 : i1 to i32
    %c0_i32_0 = arith.constant 0 : i32
    %2 = arith.cmpi ne, %1, %c0_i32_0 : i32
    scf.if %2 {
      %cst_10 = arith.constant 0.000000e+00 : f32
      %12 = vector.broadcast %cst_10 : f32 to vector<256x128xf32>
      %c0_11 = arith.constant 0 : index
      %c0_12 = arith.constant 0 : index
      %13 = vector.load %arg6[%c0_11, %c0_12] : memref<256x128xf32, #tpu.memory_space<vmem>>, vector<256x128xf32>
      tpu.vector_store %arg6[%c0_11, %c0_12], %12 {strides = array<i32>} : memref<256x128xf32, #tpu.memory_space<vmem>>, vector<256x128xf32>,
    } else {
    }
    %c0 = arith.constant 0 : index
    %c0_1 = arith.constant 0 : index
    %3 = vector.load %arg6[%c0, %c0_1] : memref<256x128xf32, #tpu.memory_space<vmem>>, vector<256x128xf32>
    %c0_2 = arith.constant 0 : index
    %c0_3 = arith.constant 0 : index
    %4 = vector.load %arg2[%c0_2, %c0_3] : memref<256x256xbf16, #tpu.memory_space<vmem>>, vector<256x256xbf16>
    %c0_4 = arith.constant 0 : index
    %c0_5 = arith.constant 0 : index
    %5 = vector.load %arg3[%c0_4, %c0_5] : memref<256x128xbf16, #tpu.memory_space<vmem>>, vector<256x128xbf16>
    %cst = arith.constant dense<0.000000e+00> : vector<256x128xf32>
    %6 = tpu.matmul %4, %5, %cst {dimension_numbers = #tpu.dot_dimension_numbers<[1], [0], [0], [1], [0, 0, 1, 1], [], []>} : vector<256x256xbf16>, vector<256x128xbf16>, vector<256x128xf32> -> vector<256x128xf32>
    %7 = arith.addf %3, %6 : vector<256x128xf32>
    %c0_6 = arith.constant 0 : index
    %c0_7 = arith.constant 0 : index
    %8 = vector.load %arg6[%c0_6, %c0_7] : memref<256x128xf32, #tpu.memory_space<vmem>>, vector<256x128xf32>
    tpu.vector_store %arg6[%c0_6, %c0_7], %7 {strides = array<i32>} : memref<256x128xf32, #tpu.memory_space<vmem>>, vector<256x128xf32>,
    %c0_i32_8 = arith.constant 0 : i32
    %9 = arith.cmpi eq, %arg1, %c0_i32_8 : i32
    %10 = arith.extui %9 : i1 to i32
    %c0_i32_9 = arith.constant 0 : i32
    %11 = arith.cmpi ne, %10, %c0_i32_9 : i32
    scf.if %11 {
      %c0_10 = arith.constant 0 : index
      %c0_11 = arith.constant 0 : index
      %12 = vector.load %arg6[%c0_10, %c0_11] : memref<256x128xf32, #tpu.memory_space<vmem>>, vector<256x128xf32>
      %c0_12 = arith.constant 0 : index
      %c0_13 = arith.constant 0 : index
      %13 = vector.load %arg4[%c0_12, %c0_13] : memref<1x128xf32, #tpu.memory_space<vmem>>, vector<1x128xf32>
      %14 = vector.broadcast %13 : vector<1x128xf32> to vector<256x128xf32>
      %15 = arith.addf %12, %14 : vector<256x128xf32>
      %cst_14 = arith.constant 0.000000e+00 : f32
      %16 = vector.broadcast %cst_14 : f32 to vector<256x128xf32>
      %17 = arith.maximumf %15, %16 : vector<256x128xf32>
      %18 = arith.truncf %17 : vector<256x128xf32> to vector<256x128xbf16>
      %c0_15 = arith.constant 0 : index
      %c0_16 = arith.constant 0 : index
      %19 = vector.load %arg5[%c0_15, %c0_16] : memref<256x128xbf16, #tpu.memory_space<vmem>>, vector<256x128xbf16>
      tpu.vector_store %arg5[%c0_15, %c0_16], %18 {strides = array<i32>} : memref<256x128xbf16, #tpu.memory_space<vmem>>, vector<256x128xbf16>,
    } else {
    }
    return
  }
  func.func @transform_0(%arg0: i32, %arg1: i32) -> (i32, i32) {
    %c0_i32 = arith.constant 0 : i32
    return %arg0, %arg1 : i32, i32
  }
  func.func @transform_1(%arg0: i32, %arg1: i32) -> (i32, i32) {
    %c0_i32 = arith.constant 0 : i32
    %c0_i32_0 = arith.constant 0 : i32
    return %arg1, %c0_i32 : i32, i32
  }
  func.func @transform_2(%arg0: i32, %arg1: i32) -> (i32, i32) {
    %c0_i32 = arith.constant 0 : i32
    %c0_i32_0 = arith.constant 0 : i32
    %c0_i32_1 = arith.constant 0 : i32
    return %c0_i32, %c0_i32_0 : i32, i32
  }
  func.func @transform_3(%arg0: i32, %arg1: i32) -> (i32, i32) {
    %c0_i32 = arith.constant 0 : i32
    %c0_i32_0 = arith.constant 0 : i32
    return %arg0, %c0_i32 : i32, i32
  }
}

module attributes {stable_mosaic.version = 11 : i64} {
  func.func @_gemm_bias_res_kernel(%arg0: i32, %arg1: i32, %arg2: memref<128x384xbf16, #tpu.memory_space<vmem>>, %arg3: memref<384x128xbf16, #tpu.memory_space<vmem>>, %arg4: memref<1x128xf32, #tpu.memory_space<vmem>>, %arg5: memref<128x128xbf16, #tpu.memory_space<vmem>>, %arg6: memref<128x128xbf16, #tpu.memory_space<vmem>>, %arg7: memref<128x128xf32, #tpu.memory_space<vmem>>) attributes {dimension_semantics = [#tpu.dimension_semantics<parallel>, #tpu.dimension_semantics<arbitrary>], iteration_bounds = array<i64: 1, 3>, scalar_prefetch = 0 : i64, scratch_operands = 1 : i64, tpu.core_type = #tpu.core_type<tc>, window_params = [{transform_indices = @transform_0, window_bounds = array<i64: 128, 384>}, {transform_indices = @transform_1, window_bounds = array<i64: 384, 128>}, {pipeline_mode = #tpu.pipeline_mode<synchronous>, transform_indices = @transform_2, window_bounds = array<i64: 1, 128>}, {transform_indices = @transform_3, window_bounds = array<i64: 128, 128>}, {transform_indices = @transform_4, window_bounds = array<i64: 128, 128>}]} {
    %c0_i32 = arith.constant 0 : i32
    %0 = arith.cmpi eq, %arg1, %c0_i32 : i32
    %1 = arith.extui %0 : i1 to i32
    %c0_i32_0 = arith.constant 0 : i32
    %2 = arith.cmpi ne, %1, %c0_i32_0 : i32
    scf.if %2 {
      %cst_9 = arith.constant 0.000000e+00 : f32
      %12 = vector.broadcast %cst_9 : f32 to vector<128x128xf32>
      %c0_10 = arith.constant 0 : index
      %c0_11 = arith.constant 0 : index
      %13 = vector.load %arg7[%c0_10, %c0_11] : memref<128x128xf32, #tpu.memory_space<vmem>>, vector<128x128xf32>
      tpu.vector_store %arg7[%c0_10, %c0_11], %12 {strides = array<i32>} : memref<128x128xf32, #tpu.memory_space<vmem>>, vector<128x128xf32>,
    } else {
    }
    %c0 = arith.constant 0 : index
    %c0_1 = arith.constant 0 : index
    %3 = vector.load %arg7[%c0, %c0_1] : memref<128x128xf32, #tpu.memory_space<vmem>>, vector<128x128xf32>
    %c0_2 = arith.constant 0 : index
    %c0_3 = arith.constant 0 : index
    %4 = vector.load %arg2[%c0_2, %c0_3] : memref<128x384xbf16, #tpu.memory_space<vmem>>, vector<128x384xbf16>
    %c0_4 = arith.constant 0 : index
    %c0_5 = arith.constant 0 : index
    %5 = vector.load %arg3[%c0_4, %c0_5] : memref<384x128xbf16, #tpu.memory_space<vmem>>, vector<384x128xbf16>
    %cst = arith.constant dense<0.000000e+00> : vector<128x128xf32>
    %6 = tpu.matmul %4, %5, %cst {dimension_numbers = #tpu.dot_dimension_numbers<[1], [0], [0], [1], [0, 0, 1, 1], [], []>} : vector<128x384xbf16>, vector<384x128xbf16>, vector<128x128xf32> -> vector<128x128xf32>
    %7 = arith.addf %3, %6 : vector<128x128xf32>
    %c0_6 = arith.constant 0 : index
    %c0_7 = arith.constant 0 : index
    %8 = vector.load %arg7[%c0_6, %c0_7] : memref<128x128xf32, #tpu.memory_space<vmem>>, vector<128x128xf32>
    tpu.vector_store %arg7[%c0_6, %c0_7], %7 {strides = array<i32>} : memref<128x128xf32, #tpu.memory_space<vmem>>, vector<128x128xf32>,
    %c2_i32 = arith.constant 2 : i32
    %9 = arith.cmpi eq, %arg1, %c2_i32 : i32
    %10 = arith.extui %9 : i1 to i32
    %c0_i32_8 = arith.constant 0 : i32
    %11 = arith.cmpi ne, %10, %c0_i32_8 : i32
    scf.if %11 {
      %c0_9 = arith.constant 0 : index
      %c0_10 = arith.constant 0 : index
      %12 = vector.load %arg7[%c0_9, %c0_10] : memref<128x128xf32, #tpu.memory_space<vmem>>, vector<128x128xf32>
      %c0_11 = arith.constant 0 : index
      %c0_12 = arith.constant 0 : index
      %13 = vector.load %arg4[%c0_11, %c0_12] : memref<1x128xf32, #tpu.memory_space<vmem>>, vector<1x128xf32>
      %14 = vector.broadcast %13 : vector<1x128xf32> to vector<128x128xf32>
      %15 = arith.addf %12, %14 : vector<128x128xf32>
      %c0_13 = arith.constant 0 : index
      %c0_14 = arith.constant 0 : index
      %16 = vector.load %arg5[%c0_13, %c0_14] : memref<128x128xbf16, #tpu.memory_space<vmem>>, vector<128x128xbf16>
      %17 = arith.extf %16 : vector<128x128xbf16> to vector<128x128xf32>
      %18 = arith.addf %15, %17 : vector<128x128xf32>
      %cst_15 = arith.constant 0.000000e+00 : f32
      %19 = vector.broadcast %cst_15 : f32 to vector<128x128xf32>
      %20 = arith.maximumf %18, %19 : vector<128x128xf32>
      %21 = arith.truncf %20 : vector<128x128xf32> to vector<128x128xbf16>
      %c0_16 = arith.constant 0 : index
      %c0_17 = arith.constant 0 : index
      %22 = vector.load %arg6[%c0_16, %c0_17] : memref<128x128xbf16, #tpu.memory_space<vmem>>, vector<128x128xbf16>
      tpu.vector_store %arg6[%c0_16, %c0_17], %21 {strides = array<i32>} : memref<128x128xbf16, #tpu.memory_space<vmem>>, vector<128x128xbf16>,
    } else {
    }
    return
  }
  func.func @transform_0(%arg0: i32, %arg1: i32) -> (i32, i32) {
    %c0_i32 = arith.constant 0 : i32
    return %arg0, %arg1 : i32, i32
  }
  func.func @transform_1(%arg0: i32, %arg1: i32) -> (i32, i32) {
    %c0_i32 = arith.constant 0 : i32
    %c0_i32_0 = arith.constant 0 : i32
    return %arg1, %c0_i32 : i32, i32
  }
  func.func @transform_2(%arg0: i32, %arg1: i32) -> (i32, i32) {
    %c0_i32 = arith.constant 0 : i32
    %c0_i32_0 = arith.constant 0 : i32
    %c0_i32_1 = arith.constant 0 : i32
    return %c0_i32, %c0_i32_0 : i32, i32
  }
  func.func @transform_3(%arg0: i32, %arg1: i32) -> (i32, i32) {
    %c0_i32 = arith.constant 0 : i32
    %c0_i32_0 = arith.constant 0 : i32
    return %arg0, %c0_i32 : i32, i32
  }
  func.func @transform_4(%arg0: i32, %arg1: i32) -> (i32, i32) {
    %c0_i32 = arith.constant 0 : i32
    %c0_i32_0 = arith.constant 0 : i32
    return %arg0, %c0_i32 : i32, i32
  }
}

module attributes {stable_mosaic.version = 11 : i64} {
  func.func @_maxpool_kernel(%arg0: i32, %arg1: memref<9x128x128xbf16, #tpu.memory_space<vmem>>, %arg2: memref<128x128xbf16, #tpu.memory_space<vmem>>) attributes {dimension_semantics = [#tpu.dimension_semantics<parallel>], iteration_bounds = array<i64: 1>, scalar_prefetch = 0 : i64, scratch_operands = 0 : i64, tpu.core_type = #tpu.core_type<tc>, window_params = [{transform_indices = @transform_0, window_bounds = array<i64: 9, 128, 128>}, {transform_indices = @transform_1, window_bounds = array<i64: 128, 128>}]} {
    %c0 = arith.constant 0 : index
    %c0_0 = arith.constant 0 : index
    %c0_1 = arith.constant 0 : index
    %0 = vector.load %arg1[%c0, %c0_0, %c0_1] : memref<9x128x128xbf16, #tpu.memory_space<vmem>>, vector<1x128x128xbf16>
    %1 = vector.shape_cast %0 : vector<1x128x128xbf16> to vector<128x128xbf16>
    %c1 = arith.constant 1 : index
    %c0_2 = arith.constant 0 : index
    %c0_3 = arith.constant 0 : index
    %2 = vector.load %arg1[%c1, %c0_2, %c0_3] : memref<9x128x128xbf16, #tpu.memory_space<vmem>>, vector<1x128x128xbf16>
    %3 = vector.shape_cast %2 : vector<1x128x128xbf16> to vector<128x128xbf16>
    %4 = arith.maximumf %1, %3 : vector<128x128xbf16>
    %c2 = arith.constant 2 : index
    %c0_4 = arith.constant 0 : index
    %c0_5 = arith.constant 0 : index
    %5 = vector.load %arg1[%c2, %c0_4, %c0_5] : memref<9x128x128xbf16, #tpu.memory_space<vmem>>, vector<1x128x128xbf16>
    %6 = vector.shape_cast %5 : vector<1x128x128xbf16> to vector<128x128xbf16>
    %7 = arith.maximumf %4, %6 : vector<128x128xbf16>
    %c3 = arith.constant 3 : index
    %c0_6 = arith.constant 0 : index
    %c0_7 = arith.constant 0 : index
    %8 = vector.load %arg1[%c3, %c0_6, %c0_7] : memref<9x128x128xbf16, #tpu.memory_space<vmem>>, vector<1x128x128xbf16>
    %9 = vector.shape_cast %8 : vector<1x128x128xbf16> to vector<128x128xbf16>
    %10 = arith.maximumf %7, %9 : vector<128x128xbf16>
    %c4 = arith.constant 4 : index
    %c0_8 = arith.constant 0 : index
    %c0_9 = arith.constant 0 : index
    %11 = vector.load %arg1[%c4, %c0_8, %c0_9] : memref<9x128x128xbf16, #tpu.memory_space<vmem>>, vector<1x128x128xbf16>
    %12 = vector.shape_cast %11 : vector<1x128x128xbf16> to vector<128x128xbf16>
    %13 = arith.maximumf %10, %12 : vector<128x128xbf16>
    %c5 = arith.constant 5 : index
    %c0_10 = arith.constant 0 : index
    %c0_11 = arith.constant 0 : index
    %14 = vector.load %arg1[%c5, %c0_10, %c0_11] : memref<9x128x128xbf16, #tpu.memory_space<vmem>>, vector<1x128x128xbf16>
    %15 = vector.shape_cast %14 : vector<1x128x128xbf16> to vector<128x128xbf16>
    %16 = arith.maximumf %13, %15 : vector<128x128xbf16>
    %c6 = arith.constant 6 : index
    %c0_12 = arith.constant 0 : index
    %c0_13 = arith.constant 0 : index
    %17 = vector.load %arg1[%c6, %c0_12, %c0_13] : memref<9x128x128xbf16, #tpu.memory_space<vmem>>, vector<1x128x128xbf16>
    %18 = vector.shape_cast %17 : vector<1x128x128xbf16> to vector<128x128xbf16>
    %19 = arith.maximumf %16, %18 : vector<128x128xbf16>
    %c7 = arith.constant 7 : index
    %c0_14 = arith.constant 0 : index
    %c0_15 = arith.constant 0 : index
    %20 = vector.load %arg1[%c7, %c0_14, %c0_15] : memref<9x128x128xbf16, #tpu.memory_space<vmem>>, vector<1x128x128xbf16>
    %21 = vector.shape_cast %20 : vector<1x128x128xbf16> to vector<128x128xbf16>
    %22 = arith.maximumf %19, %21 : vector<128x128xbf16>
    %c8 = arith.constant 8 : index
    %c0_16 = arith.constant 0 : index
    %c0_17 = arith.constant 0 : index
    %23 = vector.load %arg1[%c8, %c0_16, %c0_17] : memref<9x128x128xbf16, #tpu.memory_space<vmem>>, vector<1x128x128xbf16>
    %24 = vector.shape_cast %23 : vector<1x128x128xbf16> to vector<128x128xbf16>
    %25 = arith.maximumf %22, %24 : vector<128x128xbf16>
    %c0_18 = arith.constant 0 : index
    %c0_19 = arith.constant 0 : index
    %26 = vector.load %arg2[%c0_18, %c0_19] : memref<128x128xbf16, #tpu.memory_space<vmem>>, vector<128x128xbf16>
    tpu.vector_store %arg2[%c0_18, %c0_19], %25 {strides = array<i32>} : memref<128x128xbf16, #tpu.memory_space<vmem>>, vector<128x128xbf16>,
    return
  }
  func.func @transform_0(%arg0: i32) -> (i32, i32, i32) {
    %c0_i32 = arith.constant 0 : i32
    %c0_i32_0 = arith.constant 0 : i32
    %c0_i32_1 = arith.constant 0 : i32
    return %c0_i32, %arg0, %c0_i32_0 : i32, i32, i32
  }
  func.func @transform_1(%arg0: i32) -> (i32, i32) {
    %c0_i32 = arith.constant 0 : i32
    %c0_i32_0 = arith.constant 0 : i32
    return %arg0, %c0_i32 : i32, i32
  }
}

module attributes {stable_mosaic.version = 11 : i64} {
  func.func @_gemm_bias_kernel(%arg0: i32, %arg1: i32, %arg2: memref<128x384xbf16, #tpu.memory_space<vmem>>, %arg3: memref<384x128xbf16, #tpu.memory_space<vmem>>, %arg4: memref<1x128xf32, #tpu.memory_space<vmem>>, %arg5: memref<128x128xbf16, #tpu.memory_space<vmem>>, %arg6: memref<128x128xf32, #tpu.memory_space<vmem>>) attributes {dimension_semantics = [#tpu.dimension_semantics<parallel>, #tpu.dimension_semantics<arbitrary>], iteration_bounds = array<i64: 1, 3>, scalar_prefetch = 0 : i64, scratch_operands = 1 : i64, tpu.core_type = #tpu.core_type<tc>, window_params = [{transform_indices = @transform_0, window_bounds = array<i64: 128, 384>}, {transform_indices = @transform_1, window_bounds = array<i64: 384, 128>}, {pipeline_mode = #tpu.pipeline_mode<synchronous>, transform_indices = @transform_2, window_bounds = array<i64: 1, 128>}, {transform_indices = @transform_3, window_bounds = array<i64: 128, 128>}]} {
    %c0_i32 = arith.constant 0 : i32
    %0 = arith.cmpi eq, %arg1, %c0_i32 : i32
    %1 = arith.extui %0 : i1 to i32
    %c0_i32_0 = arith.constant 0 : i32
    %2 = arith.cmpi ne, %1, %c0_i32_0 : i32
    scf.if %2 {
      %cst_9 = arith.constant 0.000000e+00 : f32
      %12 = vector.broadcast %cst_9 : f32 to vector<128x128xf32>
      %c0_10 = arith.constant 0 : index
      %c0_11 = arith.constant 0 : index
      %13 = vector.load %arg6[%c0_10, %c0_11] : memref<128x128xf32, #tpu.memory_space<vmem>>, vector<128x128xf32>
      tpu.vector_store %arg6[%c0_10, %c0_11], %12 {strides = array<i32>} : memref<128x128xf32, #tpu.memory_space<vmem>>, vector<128x128xf32>,
    } else {
    }
    %c0 = arith.constant 0 : index
    %c0_1 = arith.constant 0 : index
    %3 = vector.load %arg6[%c0, %c0_1] : memref<128x128xf32, #tpu.memory_space<vmem>>, vector<128x128xf32>
    %c0_2 = arith.constant 0 : index
    %c0_3 = arith.constant 0 : index
    %4 = vector.load %arg2[%c0_2, %c0_3] : memref<128x384xbf16, #tpu.memory_space<vmem>>, vector<128x384xbf16>
    %c0_4 = arith.constant 0 : index
    %c0_5 = arith.constant 0 : index
    %5 = vector.load %arg3[%c0_4, %c0_5] : memref<384x128xbf16, #tpu.memory_space<vmem>>, vector<384x128xbf16>
    %cst = arith.constant dense<0.000000e+00> : vector<128x128xf32>
    %6 = tpu.matmul %4, %5, %cst {dimension_numbers = #tpu.dot_dimension_numbers<[1], [0], [0], [1], [0, 0, 1, 1], [], []>} : vector<128x384xbf16>, vector<384x128xbf16>, vector<128x128xf32> -> vector<128x128xf32>
    %7 = arith.addf %3, %6 : vector<128x128xf32>
    %c0_6 = arith.constant 0 : index
    %c0_7 = arith.constant 0 : index
    %8 = vector.load %arg6[%c0_6, %c0_7] : memref<128x128xf32, #tpu.memory_space<vmem>>, vector<128x128xf32>
    tpu.vector_store %arg6[%c0_6, %c0_7], %7 {strides = array<i32>} : memref<128x128xf32, #tpu.memory_space<vmem>>, vector<128x128xf32>,
    %c2_i32 = arith.constant 2 : i32
    %9 = arith.cmpi eq, %arg1, %c2_i32 : i32
    %10 = arith.extui %9 : i1 to i32
    %c0_i32_8 = arith.constant 0 : i32
    %11 = arith.cmpi ne, %10, %c0_i32_8 : i32
    scf.if %11 {
      %c0_9 = arith.constant 0 : index
      %c0_10 = arith.constant 0 : index
      %12 = vector.load %arg6[%c0_9, %c0_10] : memref<128x128xf32, #tpu.memory_space<vmem>>, vector<128x128xf32>
      %c0_11 = arith.constant 0 : index
      %c0_12 = arith.constant 0 : index
      %13 = vector.load %arg4[%c0_11, %c0_12] : memref<1x128xf32, #tpu.memory_space<vmem>>, vector<1x128xf32>
      %14 = vector.broadcast %13 : vector<1x128xf32> to vector<128x128xf32>
      %15 = arith.addf %12, %14 : vector<128x128xf32>
      %cst_13 = arith.constant 0.000000e+00 : f32
      %16 = vector.broadcast %cst_13 : f32 to vector<128x128xf32>
      %17 = arith.maximumf %15, %16 : vector<128x128xf32>
      %18 = arith.truncf %17 : vector<128x128xf32> to vector<128x128xbf16>
      %c0_14 = arith.constant 0 : index
      %c0_15 = arith.constant 0 : index
      %19 = vector.load %arg5[%c0_14, %c0_15] : memref<128x128xbf16, #tpu.memory_space<vmem>>, vector<128x128xbf16>
      tpu.vector_store %arg5[%c0_14, %c0_15], %18 {strides = array<i32>} : memref<128x128xbf16, #tpu.memory_space<vmem>>, vector<128x128xbf16>,
    } else {
    }
    return
  }
  func.func @transform_0(%arg0: i32, %arg1: i32) -> (i32, i32) {
    %c0_i32 = arith.constant 0 : i32
    return %arg0, %arg1 : i32, i32
  }
  func.func @transform_1(%arg0: i32, %arg1: i32) -> (i32, i32) {
    %c0_i32 = arith.constant 0 : i32
    %c0_i32_0 = arith.constant 0 : i32
    return %arg1, %c0_i32 : i32, i32
  }
  func.func @transform_2(%arg0: i32, %arg1: i32) -> (i32, i32) {
    %c0_i32 = arith.constant 0 : i32
    %c0_i32_0 = arith.constant 0 : i32
    %c0_i32_1 = arith.constant 0 : i32
    return %c0_i32, %c0_i32_0 : i32, i32
  }
  func.func @transform_3(%arg0: i32, %arg1: i32) -> (i32, i32) {
    %c0_i32 = arith.constant 0 : i32
    %c0_i32_0 = arith.constant 0 : i32
    return %arg0, %c0_i32 : i32, i32
  }
}

module attributes {stable_mosaic.version = 11 : i64} {
  func.func @_gemm_dual_kernel(%arg0: i32, %arg1: i32, %arg2: memref<32x384xbf16, #tpu.memory_space<vmem>>, %arg3: memref<384x256xbf16, #tpu.memory_space<vmem>>, %arg4: memref<1x256xf32, #tpu.memory_space<vmem>>, %arg5: memref<32x128xbf16, #tpu.memory_space<vmem>>, %arg6: memref<32x128xbf16, #tpu.memory_space<vmem>>, %arg7: memref<32x256xf32, #tpu.memory_space<vmem>>) attributes {dimension_semantics = [#tpu.dimension_semantics<parallel>, #tpu.dimension_semantics<arbitrary>], iteration_bounds = array<i64: 1, 3>, scalar_prefetch = 0 : i64, scratch_operands = 1 : i64, tpu.core_type = #tpu.core_type<tc>, window_params = [{transform_indices = @transform_0, window_bounds = array<i64: 32, 384>}, {transform_indices = @transform_1, window_bounds = array<i64: 384, 256>}, {pipeline_mode = #tpu.pipeline_mode<synchronous>, transform_indices = @transform_2, window_bounds = array<i64: 1, 256>}, {transform_indices = @transform_3, window_bounds = array<i64: 32, 128>}, {transform_indices = @transform_4, window_bounds = array<i64: 32, 128>}]} {
    %c0_i32 = arith.constant 0 : i32
    %0 = arith.cmpi eq, %arg1, %c0_i32 : i32
    %1 = arith.extui %0 : i1 to i32
    %c0_i32_0 = arith.constant 0 : i32
    %2 = arith.cmpi ne, %1, %c0_i32_0 : i32
    scf.if %2 {
      %cst_9 = arith.constant 0.000000e+00 : f32
      %12 = vector.broadcast %cst_9 : f32 to vector<32x256xf32>
      %c0_10 = arith.constant 0 : index
      %c0_11 = arith.constant 0 : index
      %13 = vector.load %arg7[%c0_10, %c0_11] : memref<32x256xf32, #tpu.memory_space<vmem>>, vector<32x256xf32>
      tpu.vector_store %arg7[%c0_10, %c0_11], %12 {strides = array<i32>} : memref<32x256xf32, #tpu.memory_space<vmem>>, vector<32x256xf32>,
    } else {
    }
    %c0 = arith.constant 0 : index
    %c0_1 = arith.constant 0 : index
    %3 = vector.load %arg7[%c0, %c0_1] : memref<32x256xf32, #tpu.memory_space<vmem>>, vector<32x256xf32>
    %c0_2 = arith.constant 0 : index
    %c0_3 = arith.constant 0 : index
    %4 = vector.load %arg2[%c0_2, %c0_3] : memref<32x384xbf16, #tpu.memory_space<vmem>>, vector<32x384xbf16>
    %c0_4 = arith.constant 0 : index
    %c0_5 = arith.constant 0 : index
    %5 = vector.load %arg3[%c0_4, %c0_5] : memref<384x256xbf16, #tpu.memory_space<vmem>>, vector<384x256xbf16>
    %cst = arith.constant dense<0.000000e+00> : vector<32x256xf32>
    %6 = tpu.matmul %4, %5, %cst {dimension_numbers = #tpu.dot_dimension_numbers<[1], [0], [0], [1], [0, 0, 1, 1], [], []>} : vector<32x384xbf16>, vector<384x256xbf16>, vector<32x256xf32> -> vector<32x256xf32>
    %7 = arith.addf %3, %6 : vector<32x256xf32>
    %c0_6 = arith.constant 0 : index
    %c0_7 = arith.constant 0 : index
    %8 = vector.load %arg7[%c0_6, %c0_7] : memref<32x256xf32, #tpu.memory_space<vmem>>, vector<32x256xf32>
    tpu.vector_store %arg7[%c0_6, %c0_7], %7 {strides = array<i32>} : memref<32x256xf32, #tpu.memory_space<vmem>>, vector<32x256xf32>,
    %c2_i32 = arith.constant 2 : i32
    %9 = arith.cmpi eq, %arg1, %c2_i32 : i32
    %10 = arith.extui %9 : i1 to i32
    %c0_i32_8 = arith.constant 0 : i32
    %11 = arith.cmpi ne, %10, %c0_i32_8 : i32
    scf.if %11 {
      %c0_9 = arith.constant 0 : index
      %c0_10 = arith.constant 0 : index
      %12 = vector.load %arg7[%c0_9, %c0_10] : memref<32x256xf32, #tpu.memory_space<vmem>>, vector<32x256xf32>
      %c0_11 = arith.constant 0 : index
      %c0_12 = arith.constant 0 : index
      %13 = vector.load %arg4[%c0_11, %c0_12] : memref<1x256xf32, #tpu.memory_space<vmem>>, vector<1x256xf32>
      %14 = vector.broadcast %13 : vector<1x256xf32> to vector<32x256xf32>
      %15 = arith.addf %12, %14 : vector<32x256xf32>
      %16 = vector.extract_strided_slice %15 {offsets = [0, 0], sizes = [32, 128], strides = [1, 1]} : vector<32x256xf32> to vector<32x128xf32>
      %cst_13 = arith.constant 0.000000e+00 : f32
      %17 = vector.broadcast %cst_13 : f32 to vector<32x128xf32>
      %18 = arith.maximumf %16, %17 : vector<32x128xf32>
      %19 = arith.truncf %18 : vector<32x128xf32> to vector<32x128xbf16>
      %c0_14 = arith.constant 0 : index
      %c0_15 = arith.constant 0 : index
      %20 = vector.load %arg5[%c0_14, %c0_15] : memref<32x128xbf16, #tpu.memory_space<vmem>>, vector<32x128xbf16>
      tpu.vector_store %arg5[%c0_14, %c0_15], %19 {strides = array<i32>} : memref<32x128xbf16, #tpu.memory_space<vmem>>, vector<32x128xbf16>,
      %21 = vector.extract_strided_slice %15 {offsets = [0, 128], sizes = [32, 128], strides = [1, 1]} : vector<32x256xf32> to vector<32x128xf32>
      %22 = arith.truncf %21 : vector<32x128xf32> to vector<32x128xbf16>
      %c0_16 = arith.constant 0 : index
      %c0_17 = arith.constant 0 : index
      %23 = vector.load %arg6[%c0_16, %c0_17] : memref<32x128xbf16, #tpu.memory_space<vmem>>, vector<32x128xbf16>
      tpu.vector_store %arg6[%c0_16, %c0_17], %22 {strides = array<i32>} : memref<32x128xbf16, #tpu.memory_space<vmem>>, vector<32x128xbf16>,
    } else {
    }
    return
  }
  func.func @transform_0(%arg0: i32, %arg1: i32) -> (i32, i32) {
    %c0_i32 = arith.constant 0 : i32
    return %arg0, %arg1 : i32, i32
  }
  func.func @transform_1(%arg0: i32, %arg1: i32) -> (i32, i32) {
    %c0_i32 = arith.constant 0 : i32
    %c0_i32_0 = arith.constant 0 : i32
    return %arg1, %c0_i32 : i32, i32
  }
  func.func @transform_2(%arg0: i32, %arg1: i32) -> (i32, i32) {
    %c0_i32 = arith.constant 0 : i32
    %c0_i32_0 = arith.constant 0 : i32
    %c0_i32_1 = arith.constant 0 : i32
    return %c0_i32, %c0_i32_0 : i32, i32
  }
  func.func @transform_3(%arg0: i32, %arg1: i32) -> (i32, i32) {
    %c0_i32 = arith.constant 0 : i32
    %c0_i32_0 = arith.constant 0 : i32
    return %arg0, %c0_i32 : i32, i32
  }
  func.func @transform_4(%arg0: i32, %arg1: i32) -> (i32, i32) {
    %c0_i32 = arith.constant 0 : i32
    %c0_i32_0 = arith.constant 0 : i32
    return %arg0, %c0_i32 : i32, i32
  }
}

module attributes {stable_mosaic.version = 11 : i64} {
  func.func @_gemm_bias_kernel(%arg0: i32, %arg1: i32, %arg2: memref<32x384xbf16, #tpu.memory_space<vmem>>, %arg3: memref<384x128xbf16, #tpu.memory_space<vmem>>, %arg4: memref<1x128xf32, #tpu.memory_space<vmem>>, %arg5: memref<32x128xbf16, #tpu.memory_space<vmem>>, %arg6: memref<32x128xf32, #tpu.memory_space<vmem>>) attributes {dimension_semantics = [#tpu.dimension_semantics<parallel>, #tpu.dimension_semantics<arbitrary>], iteration_bounds = array<i64: 1, 3>, scalar_prefetch = 0 : i64, scratch_operands = 1 : i64, tpu.core_type = #tpu.core_type<tc>, window_params = [{transform_indices = @transform_0, window_bounds = array<i64: 32, 384>}, {transform_indices = @transform_1, window_bounds = array<i64: 384, 128>}, {pipeline_mode = #tpu.pipeline_mode<synchronous>, transform_indices = @transform_2, window_bounds = array<i64: 1, 128>}, {transform_indices = @transform_3, window_bounds = array<i64: 32, 128>}]} {
    %c0_i32 = arith.constant 0 : i32
    %0 = arith.cmpi eq, %arg1, %c0_i32 : i32
    %1 = arith.extui %0 : i1 to i32
    %c0_i32_0 = arith.constant 0 : i32
    %2 = arith.cmpi ne, %1, %c0_i32_0 : i32
    scf.if %2 {
      %cst_9 = arith.constant 0.000000e+00 : f32
      %12 = vector.broadcast %cst_9 : f32 to vector<32x128xf32>
      %c0_10 = arith.constant 0 : index
      %c0_11 = arith.constant 0 : index
      %13 = vector.load %arg6[%c0_10, %c0_11] : memref<32x128xf32, #tpu.memory_space<vmem>>, vector<32x128xf32>
      tpu.vector_store %arg6[%c0_10, %c0_11], %12 {strides = array<i32>} : memref<32x128xf32, #tpu.memory_space<vmem>>, vector<32x128xf32>,
    } else {
    }
    %c0 = arith.constant 0 : index
    %c0_1 = arith.constant 0 : index
    %3 = vector.load %arg6[%c0, %c0_1] : memref<32x128xf32, #tpu.memory_space<vmem>>, vector<32x128xf32>
    %c0_2 = arith.constant 0 : index
    %c0_3 = arith.constant 0 : index
    %4 = vector.load %arg2[%c0_2, %c0_3] : memref<32x384xbf16, #tpu.memory_space<vmem>>, vector<32x384xbf16>
    %c0_4 = arith.constant 0 : index
    %c0_5 = arith.constant 0 : index
    %5 = vector.load %arg3[%c0_4, %c0_5] : memref<384x128xbf16, #tpu.memory_space<vmem>>, vector<384x128xbf16>
    %cst = arith.constant dense<0.000000e+00> : vector<32x128xf32>
    %6 = tpu.matmul %4, %5, %cst {dimension_numbers = #tpu.dot_dimension_numbers<[1], [0], [0], [1], [0, 0, 1, 1], [], []>} : vector<32x384xbf16>, vector<384x128xbf16>, vector<32x128xf32> -> vector<32x128xf32>
    %7 = arith.addf %3, %6 : vector<32x128xf32>
    %c0_6 = arith.constant 0 : index
    %c0_7 = arith.constant 0 : index
    %8 = vector.load %arg6[%c0_6, %c0_7] : memref<32x128xf32, #tpu.memory_space<vmem>>, vector<32x128xf32>
    tpu.vector_store %arg6[%c0_6, %c0_7], %7 {strides = array<i32>} : memref<32x128xf32, #tpu.memory_space<vmem>>, vector<32x128xf32>,
    %c2_i32 = arith.constant 2 : i32
    %9 = arith.cmpi eq, %arg1, %c2_i32 : i32
    %10 = arith.extui %9 : i1 to i32
    %c0_i32_8 = arith.constant 0 : i32
    %11 = arith.cmpi ne, %10, %c0_i32_8 : i32
    scf.if %11 {
      %c0_9 = arith.constant 0 : index
      %c0_10 = arith.constant 0 : index
      %12 = vector.load %arg6[%c0_9, %c0_10] : memref<32x128xf32, #tpu.memory_space<vmem>>, vector<32x128xf32>
      %c0_11 = arith.constant 0 : index
      %c0_12 = arith.constant 0 : index
      %13 = vector.load %arg4[%c0_11, %c0_12] : memref<1x128xf32, #tpu.memory_space<vmem>>, vector<1x128xf32>
      %14 = vector.broadcast %13 : vector<1x128xf32> to vector<32x128xf32>
      %15 = arith.addf %12, %14 : vector<32x128xf32>
      %cst_13 = arith.constant 0.000000e+00 : f32
      %16 = vector.broadcast %cst_13 : f32 to vector<32x128xf32>
      %17 = arith.maximumf %15, %16 : vector<32x128xf32>
      %18 = arith.truncf %17 : vector<32x128xf32> to vector<32x128xbf16>
      %c0_14 = arith.constant 0 : index
      %c0_15 = arith.constant 0 : index
      %19 = vector.load %arg5[%c0_14, %c0_15] : memref<32x128xbf16, #tpu.memory_space<vmem>>, vector<32x128xbf16>
      tpu.vector_store %arg5[%c0_14, %c0_15], %18 {strides = array<i32>} : memref<32x128xbf16, #tpu.memory_space<vmem>>, vector<32x128xbf16>,
    } else {
    }
    return
  }
  func.func @transform_0(%arg0: i32, %arg1: i32) -> (i32, i32) {
    %c0_i32 = arith.constant 0 : i32
    return %arg0, %arg1 : i32, i32
  }
  func.func @transform_1(%arg0: i32, %arg1: i32) -> (i32, i32) {
    %c0_i32 = arith.constant 0 : i32
    %c0_i32_0 = arith.constant 0 : i32
    return %arg1, %c0_i32 : i32, i32
  }
  func.func @transform_2(%arg0: i32, %arg1: i32) -> (i32, i32) {
    %c0_i32 = arith.constant 0 : i32
    %c0_i32_0 = arith.constant 0 : i32
    %c0_i32_1 = arith.constant 0 : i32
    return %c0_i32, %c0_i32_0 : i32, i32
  }
  func.func @transform_3(%arg0: i32, %arg1: i32) -> (i32, i32) {
    %c0_i32 = arith.constant 0 : i32
    %c0_i32_0 = arith.constant 0 : i32
    return %arg0, %c0_i32 : i32, i32
  }
}

module attributes {stable_mosaic.version = 11 : i64} {
  func.func @_gemm_bias_res_kernel(%arg0: i32, %arg1: i32, %arg2: memref<32x384xbf16, #tpu.memory_space<vmem>>, %arg3: memref<384x128xbf16, #tpu.memory_space<vmem>>, %arg4: memref<1x128xf32, #tpu.memory_space<vmem>>, %arg5: memref<32x128xbf16, #tpu.memory_space<vmem>>, %arg6: memref<32x128xbf16, #tpu.memory_space<vmem>>, %arg7: memref<32x128xf32, #tpu.memory_space<vmem>>) attributes {dimension_semantics = [#tpu.dimension_semantics<parallel>, #tpu.dimension_semantics<arbitrary>], iteration_bounds = array<i64: 1, 3>, scalar_prefetch = 0 : i64, scratch_operands = 1 : i64, tpu.core_type = #tpu.core_type<tc>, window_params = [{transform_indices = @transform_0, window_bounds = array<i64: 32, 384>}, {transform_indices = @transform_1, window_bounds = array<i64: 384, 128>}, {pipeline_mode = #tpu.pipeline_mode<synchronous>, transform_indices = @transform_2, window_bounds = array<i64: 1, 128>}, {transform_indices = @transform_3, window_bounds = array<i64: 32, 128>}, {transform_indices = @transform_4, window_bounds = array<i64: 32, 128>}]} {
    %c0_i32 = arith.constant 0 : i32
    %0 = arith.cmpi eq, %arg1, %c0_i32 : i32
    %1 = arith.extui %0 : i1 to i32
    %c0_i32_0 = arith.constant 0 : i32
    %2 = arith.cmpi ne, %1, %c0_i32_0 : i32
    scf.if %2 {
      %cst_9 = arith.constant 0.000000e+00 : f32
      %12 = vector.broadcast %cst_9 : f32 to vector<32x128xf32>
      %c0_10 = arith.constant 0 : index
      %c0_11 = arith.constant 0 : index
      %13 = vector.load %arg7[%c0_10, %c0_11] : memref<32x128xf32, #tpu.memory_space<vmem>>, vector<32x128xf32>
      tpu.vector_store %arg7[%c0_10, %c0_11], %12 {strides = array<i32>} : memref<32x128xf32, #tpu.memory_space<vmem>>, vector<32x128xf32>,
    } else {
    }
    %c0 = arith.constant 0 : index
    %c0_1 = arith.constant 0 : index
    %3 = vector.load %arg7[%c0, %c0_1] : memref<32x128xf32, #tpu.memory_space<vmem>>, vector<32x128xf32>
    %c0_2 = arith.constant 0 : index
    %c0_3 = arith.constant 0 : index
    %4 = vector.load %arg2[%c0_2, %c0_3] : memref<32x384xbf16, #tpu.memory_space<vmem>>, vector<32x384xbf16>
    %c0_4 = arith.constant 0 : index
    %c0_5 = arith.constant 0 : index
    %5 = vector.load %arg3[%c0_4, %c0_5] : memref<384x128xbf16, #tpu.memory_space<vmem>>, vector<384x128xbf16>
    %cst = arith.constant dense<0.000000e+00> : vector<32x128xf32>
    %6 = tpu.matmul %4, %5, %cst {dimension_numbers = #tpu.dot_dimension_numbers<[1], [0], [0], [1], [0, 0, 1, 1], [], []>} : vector<32x384xbf16>, vector<384x128xbf16>, vector<32x128xf32> -> vector<32x128xf32>
    %7 = arith.addf %3, %6 : vector<32x128xf32>
    %c0_6 = arith.constant 0 : index
    %c0_7 = arith.constant 0 : index
    %8 = vector.load %arg7[%c0_6, %c0_7] : memref<32x128xf32, #tpu.memory_space<vmem>>, vector<32x128xf32>
    tpu.vector_store %arg7[%c0_6, %c0_7], %7 {strides = array<i32>} : memref<32x128xf32, #tpu.memory_space<vmem>>, vector<32x128xf32>,
    %c2_i32 = arith.constant 2 : i32
    %9 = arith.cmpi eq, %arg1, %c2_i32 : i32
    %10 = arith.extui %9 : i1 to i32
    %c0_i32_8 = arith.constant 0 : i32
    %11 = arith.cmpi ne, %10, %c0_i32_8 : i32
    scf.if %11 {
      %c0_9 = arith.constant 0 : index
      %c0_10 = arith.constant 0 : index
      %12 = vector.load %arg7[%c0_9, %c0_10] : memref<32x128xf32, #tpu.memory_space<vmem>>, vector<32x128xf32>
      %c0_11 = arith.constant 0 : index
      %c0_12 = arith.constant 0 : index
      %13 = vector.load %arg4[%c0_11, %c0_12] : memref<1x128xf32, #tpu.memory_space<vmem>>, vector<1x128xf32>
      %14 = vector.broadcast %13 : vector<1x128xf32> to vector<32x128xf32>
      %15 = arith.addf %12, %14 : vector<32x128xf32>
      %c0_13 = arith.constant 0 : index
      %c0_14 = arith.constant 0 : index
      %16 = vector.load %arg5[%c0_13, %c0_14] : memref<32x128xbf16, #tpu.memory_space<vmem>>, vector<32x128xbf16>
      %17 = arith.extf %16 : vector<32x128xbf16> to vector<32x128xf32>
      %18 = arith.addf %15, %17 : vector<32x128xf32>
      %cst_15 = arith.constant 0.000000e+00 : f32
      %19 = vector.broadcast %cst_15 : f32 to vector<32x128xf32>
      %20 = arith.maximumf %18, %19 : vector<32x128xf32>
      %21 = arith.truncf %20 : vector<32x128xf32> to vector<32x128xbf16>
      %c0_16 = arith.constant 0 : index
      %c0_17 = arith.constant 0 : index
      %22 = vector.load %arg6[%c0_16, %c0_17] : memref<32x128xbf16, #tpu.memory_space<vmem>>, vector<32x128xbf16>
      tpu.vector_store %arg6[%c0_16, %c0_17], %21 {strides = array<i32>} : memref<32x128xbf16, #tpu.memory_space<vmem>>, vector<32x128xbf16>,
    } else {
    }
    return
  }
  func.func @transform_0(%arg0: i32, %arg1: i32) -> (i32, i32) {
    %c0_i32 = arith.constant 0 : i32
    return %arg0, %arg1 : i32, i32
  }
  func.func @transform_1(%arg0: i32, %arg1: i32) -> (i32, i32) {
    %c0_i32 = arith.constant 0 : i32
    %c0_i32_0 = arith.constant 0 : i32
    return %arg1, %c0_i32 : i32, i32
  }
  func.func @transform_2(%arg0: i32, %arg1: i32) -> (i32, i32) {
    %c0_i32 = arith.constant 0 : i32
    %c0_i32_0 = arith.constant 0 : i32
    %c0_i32_1 = arith.constant 0 : i32
    return %c0_i32, %c0_i32_0 : i32, i32
  }
  func.func @transform_3(%arg0: i32, %arg1: i32) -> (i32, i32) {
    %c0_i32 = arith.constant 0 : i32
    %c0_i32_0 = arith.constant 0 : i32
    return %arg0, %c0_i32 : i32, i32
  }
  func.func @transform_4(%arg0: i32, %arg1: i32) -> (i32, i32) {
    %c0_i32 = arith.constant 0 : i32
    %c0_i32_0 = arith.constant 0 : i32
    return %arg0, %c0_i32 : i32, i32
  }
}

module attributes {stable_mosaic.version = 11 : i64} {
  func.func @_gemm_dual_kernel(%arg0: i32, %arg1: i32, %arg2: memref<16x384xbf16, #tpu.memory_space<vmem>>, %arg3: memref<384x256xbf16, #tpu.memory_space<vmem>>, %arg4: memref<1x256xf32, #tpu.memory_space<vmem>>, %arg5: memref<16x128xbf16, #tpu.memory_space<vmem>>, %arg6: memref<16x128xbf16, #tpu.memory_space<vmem>>, %arg7: memref<16x256xf32, #tpu.memory_space<vmem>>) attributes {dimension_semantics = [#tpu.dimension_semantics<parallel>, #tpu.dimension_semantics<arbitrary>], iteration_bounds = array<i64: 1, 3>, scalar_prefetch = 0 : i64, scratch_operands = 1 : i64, tpu.core_type = #tpu.core_type<tc>, window_params = [{transform_indices = @transform_0, window_bounds = array<i64: 16, 384>}, {transform_indices = @transform_1, window_bounds = array<i64: 384, 256>}, {pipeline_mode = #tpu.pipeline_mode<synchronous>, transform_indices = @transform_2, window_bounds = array<i64: 1, 256>}, {transform_indices = @transform_3, window_bounds = array<i64: 16, 128>}, {transform_indices = @transform_4, window_bounds = array<i64: 16, 128>}]} {
    %c0_i32 = arith.constant 0 : i32
    %0 = arith.cmpi eq, %arg1, %c0_i32 : i32
    %1 = arith.extui %0 : i1 to i32
    %c0_i32_0 = arith.constant 0 : i32
    %2 = arith.cmpi ne, %1, %c0_i32_0 : i32
    scf.if %2 {
      %cst_9 = arith.constant 0.000000e+00 : f32
      %12 = vector.broadcast %cst_9 : f32 to vector<16x256xf32>
      %c0_10 = arith.constant 0 : index
      %c0_11 = arith.constant 0 : index
      %13 = vector.load %arg7[%c0_10, %c0_11] : memref<16x256xf32, #tpu.memory_space<vmem>>, vector<16x256xf32>
      tpu.vector_store %arg7[%c0_10, %c0_11], %12 {strides = array<i32>} : memref<16x256xf32, #tpu.memory_space<vmem>>, vector<16x256xf32>,
    } else {
    }
    %c0 = arith.constant 0 : index
    %c0_1 = arith.constant 0 : index
    %3 = vector.load %arg7[%c0, %c0_1] : memref<16x256xf32, #tpu.memory_space<vmem>>, vector<16x256xf32>
    %c0_2 = arith.constant 0 : index
    %c0_3 = arith.constant 0 : index
    %4 = vector.load %arg2[%c0_2, %c0_3] : memref<16x384xbf16, #tpu.memory_space<vmem>>, vector<16x384xbf16>
    %c0_4 = arith.constant 0 : index
    %c0_5 = arith.constant 0 : index
    %5 = vector.load %arg3[%c0_4, %c0_5] : memref<384x256xbf16, #tpu.memory_space<vmem>>, vector<384x256xbf16>
    %cst = arith.constant dense<0.000000e+00> : vector<16x256xf32>
    %6 = tpu.matmul %4, %5, %cst {dimension_numbers = #tpu.dot_dimension_numbers<[1], [0], [0], [1], [0, 0, 1, 1], [], []>} : vector<16x384xbf16>, vector<384x256xbf16>, vector<16x256xf32> -> vector<16x256xf32>
    %7 = arith.addf %3, %6 : vector<16x256xf32>
    %c0_6 = arith.constant 0 : index
    %c0_7 = arith.constant 0 : index
    %8 = vector.load %arg7[%c0_6, %c0_7] : memref<16x256xf32, #tpu.memory_space<vmem>>, vector<16x256xf32>
    tpu.vector_store %arg7[%c0_6, %c0_7], %7 {strides = array<i32>} : memref<16x256xf32, #tpu.memory_space<vmem>>, vector<16x256xf32>,
    %c2_i32 = arith.constant 2 : i32
    %9 = arith.cmpi eq, %arg1, %c2_i32 : i32
    %10 = arith.extui %9 : i1 to i32
    %c0_i32_8 = arith.constant 0 : i32
    %11 = arith.cmpi ne, %10, %c0_i32_8 : i32
    scf.if %11 {
      %c0_9 = arith.constant 0 : index
      %c0_10 = arith.constant 0 : index
      %12 = vector.load %arg7[%c0_9, %c0_10] : memref<16x256xf32, #tpu.memory_space<vmem>>, vector<16x256xf32>
      %c0_11 = arith.constant 0 : index
      %c0_12 = arith.constant 0 : index
      %13 = vector.load %arg4[%c0_11, %c0_12] : memref<1x256xf32, #tpu.memory_space<vmem>>, vector<1x256xf32>
      %14 = vector.broadcast %13 : vector<1x256xf32> to vector<16x256xf32>
      %15 = arith.addf %12, %14 : vector<16x256xf32>
      %16 = vector.extract_strided_slice %15 {offsets = [0, 0], sizes = [16, 128], strides = [1, 1]} : vector<16x256xf32> to vector<16x128xf32>
      %cst_13 = arith.constant 0.000000e+00 : f32
      %17 = vector.broadcast %cst_13 : f32 to vector<16x128xf32>
      %18 = arith.maximumf %16, %17 : vector<16x128xf32>
      %19 = arith.truncf %18 : vector<16x128xf32> to vector<16x128xbf16>
      %c0_14 = arith.constant 0 : index
      %c0_15 = arith.constant 0 : index
      %20 = vector.load %arg5[%c0_14, %c0_15] : memref<16x128xbf16, #tpu.memory_space<vmem>>, vector<16x128xbf16>
      tpu.vector_store %arg5[%c0_14, %c0_15], %19 {strides = array<i32>} : memref<16x128xbf16, #tpu.memory_space<vmem>>, vector<16x128xbf16>,
      %21 = vector.extract_strided_slice %15 {offsets = [0, 128], sizes = [16, 128], strides = [1, 1]} : vector<16x256xf32> to vector<16x128xf32>
      %22 = arith.truncf %21 : vector<16x128xf32> to vector<16x128xbf16>
      %c0_16 = arith.constant 0 : index
      %c0_17 = arith.constant 0 : index
      %23 = vector.load %arg6[%c0_16, %c0_17] : memref<16x128xbf16, #tpu.memory_space<vmem>>, vector<16x128xbf16>
      tpu.vector_store %arg6[%c0_16, %c0_17], %22 {strides = array<i32>} : memref<16x128xbf16, #tpu.memory_space<vmem>>, vector<16x128xbf16>,
    } else {
    }
    return
  }
  func.func @transform_0(%arg0: i32, %arg1: i32) -> (i32, i32) {
    %c0_i32 = arith.constant 0 : i32
    return %arg0, %arg1 : i32, i32
  }
  func.func @transform_1(%arg0: i32, %arg1: i32) -> (i32, i32) {
    %c0_i32 = arith.constant 0 : i32
    %c0_i32_0 = arith.constant 0 : i32
    return %arg1, %c0_i32 : i32, i32
  }
  func.func @transform_2(%arg0: i32, %arg1: i32) -> (i32, i32) {
    %c0_i32 = arith.constant 0 : i32
    %c0_i32_0 = arith.constant 0 : i32
    %c0_i32_1 = arith.constant 0 : i32
    return %c0_i32, %c0_i32_0 : i32, i32
  }
  func.func @transform_3(%arg0: i32, %arg1: i32) -> (i32, i32) {
    %c0_i32 = arith.constant 0 : i32
    %c0_i32_0 = arith.constant 0 : i32
    return %arg0, %c0_i32 : i32, i32
  }
  func.func @transform_4(%arg0: i32, %arg1: i32) -> (i32, i32) {
    %c0_i32 = arith.constant 0 : i32
    %c0_i32_0 = arith.constant 0 : i32
    return %arg0, %c0_i32 : i32, i32
  }
}

module attributes {stable_mosaic.version = 11 : i64} {
  func.func @_gemm_bias_res_kernel(%arg0: i32, %arg1: i32, %arg2: memref<16x384xbf16, #tpu.memory_space<vmem>>, %arg3: memref<384x128xbf16, #tpu.memory_space<vmem>>, %arg4: memref<1x128xf32, #tpu.memory_space<vmem>>, %arg5: memref<16x128xbf16, #tpu.memory_space<vmem>>, %arg6: memref<16x128xbf16, #tpu.memory_space<vmem>>, %arg7: memref<16x128xf32, #tpu.memory_space<vmem>>) attributes {dimension_semantics = [#tpu.dimension_semantics<parallel>, #tpu.dimension_semantics<arbitrary>], iteration_bounds = array<i64: 1, 3>, scalar_prefetch = 0 : i64, scratch_operands = 1 : i64, tpu.core_type = #tpu.core_type<tc>, window_params = [{transform_indices = @transform_0, window_bounds = array<i64: 16, 384>}, {transform_indices = @transform_1, window_bounds = array<i64: 384, 128>}, {pipeline_mode = #tpu.pipeline_mode<synchronous>, transform_indices = @transform_2, window_bounds = array<i64: 1, 128>}, {transform_indices = @transform_3, window_bounds = array<i64: 16, 128>}, {transform_indices = @transform_4, window_bounds = array<i64: 16, 128>}]} {
    %c0_i32 = arith.constant 0 : i32
    %0 = arith.cmpi eq, %arg1, %c0_i32 : i32
    %1 = arith.extui %0 : i1 to i32
    %c0_i32_0 = arith.constant 0 : i32
    %2 = arith.cmpi ne, %1, %c0_i32_0 : i32
    scf.if %2 {
      %cst_9 = arith.constant 0.000000e+00 : f32
      %12 = vector.broadcast %cst_9 : f32 to vector<16x128xf32>
      %c0_10 = arith.constant 0 : index
      %c0_11 = arith.constant 0 : index
      %13 = vector.load %arg7[%c0_10, %c0_11] : memref<16x128xf32, #tpu.memory_space<vmem>>, vector<16x128xf32>
      tpu.vector_store %arg7[%c0_10, %c0_11], %12 {strides = array<i32>} : memref<16x128xf32, #tpu.memory_space<vmem>>, vector<16x128xf32>,
    } else {
    }
    %c0 = arith.constant 0 : index
    %c0_1 = arith.constant 0 : index
    %3 = vector.load %arg7[%c0, %c0_1] : memref<16x128xf32, #tpu.memory_space<vmem>>, vector<16x128xf32>
    %c0_2 = arith.constant 0 : index
    %c0_3 = arith.constant 0 : index
    %4 = vector.load %arg2[%c0_2, %c0_3] : memref<16x384xbf16, #tpu.memory_space<vmem>>, vector<16x384xbf16>
    %c0_4 = arith.constant 0 : index
    %c0_5 = arith.constant 0 : index
    %5 = vector.load %arg3[%c0_4, %c0_5] : memref<384x128xbf16, #tpu.memory_space<vmem>>, vector<384x128xbf16>
    %cst = arith.constant dense<0.000000e+00> : vector<16x128xf32>
    %6 = tpu.matmul %4, %5, %cst {dimension_numbers = #tpu.dot_dimension_numbers<[1], [0], [0], [1], [0, 0, 1, 1], [], []>} : vector<16x384xbf16>, vector<384x128xbf16>, vector<16x128xf32> -> vector<16x128xf32>
    %7 = arith.addf %3, %6 : vector<16x128xf32>
    %c0_6 = arith.constant 0 : index
    %c0_7 = arith.constant 0 : index
    %8 = vector.load %arg7[%c0_6, %c0_7] : memref<16x128xf32, #tpu.memory_space<vmem>>, vector<16x128xf32>
    tpu.vector_store %arg7[%c0_6, %c0_7], %7 {strides = array<i32>} : memref<16x128xf32, #tpu.memory_space<vmem>>, vector<16x128xf32>,
    %c2_i32 = arith.constant 2 : i32
    %9 = arith.cmpi eq, %arg1, %c2_i32 : i32
    %10 = arith.extui %9 : i1 to i32
    %c0_i32_8 = arith.constant 0 : i32
    %11 = arith.cmpi ne, %10, %c0_i32_8 : i32
    scf.if %11 {
      %c0_9 = arith.constant 0 : index
      %c0_10 = arith.constant 0 : index
      %12 = vector.load %arg7[%c0_9, %c0_10] : memref<16x128xf32, #tpu.memory_space<vmem>>, vector<16x128xf32>
      %c0_11 = arith.constant 0 : index
      %c0_12 = arith.constant 0 : index
      %13 = vector.load %arg4[%c0_11, %c0_12] : memref<1x128xf32, #tpu.memory_space<vmem>>, vector<1x128xf32>
      %14 = vector.broadcast %13 : vector<1x128xf32> to vector<16x128xf32>
      %15 = arith.addf %12, %14 : vector<16x128xf32>
      %c0_13 = arith.constant 0 : index
      %c0_14 = arith.constant 0 : index
      %16 = vector.load %arg5[%c0_13, %c0_14] : memref<16x128xbf16, #tpu.memory_space<vmem>>, vector<16x128xbf16>
      %17 = arith.extf %16 : vector<16x128xbf16> to vector<16x128xf32>
      %18 = arith.addf %15, %17 : vector<16x128xf32>
      %cst_15 = arith.constant 0.000000e+00 : f32
      %19 = vector.broadcast %cst_15 : f32 to vector<16x128xf32>
      %20 = arith.maximumf %18, %19 : vector<16x128xf32>
      %21 = arith.truncf %20 : vector<16x128xf32> to vector<16x128xbf16>
      %c0_16 = arith.constant 0 : index
      %c0_17 = arith.constant 0 : index
      %22 = vector.load %arg6[%c0_16, %c0_17] : memref<16x128xbf16, #tpu.memory_space<vmem>>, vector<16x128xbf16>
      tpu.vector_store %arg6[%c0_16, %c0_17], %21 {strides = array<i32>} : memref<16x128xbf16, #tpu.memory_space<vmem>>, vector<16x128xbf16>,
    } else {
    }
    return
  }
  func.func @transform_0(%arg0: i32, %arg1: i32) -> (i32, i32) {
    %c0_i32 = arith.constant 0 : i32
    return %arg0, %arg1 : i32, i32
  }
  func.func @transform_1(%arg0: i32, %arg1: i32) -> (i32, i32) {
    %c0_i32 = arith.constant 0 : i32
    %c0_i32_0 = arith.constant 0 : i32
    return %arg1, %c0_i32 : i32, i32
  }
  func.func @transform_2(%arg0: i32, %arg1: i32) -> (i32, i32) {
    %c0_i32 = arith.constant 0 : i32
    %c0_i32_0 = arith.constant 0 : i32
    %c0_i32_1 = arith.constant 0 : i32
    return %c0_i32, %c0_i32_0 : i32, i32
  }
  func.func @transform_3(%arg0: i32, %arg1: i32) -> (i32, i32) {
    %c0_i32 = arith.constant 0 : i32
    %c0_i32_0 = arith.constant 0 : i32
    return %arg0, %c0_i32 : i32, i32
  }
  func.func @transform_4(%arg0: i32, %arg1: i32) -> (i32, i32) {
    %c0_i32 = arith.constant 0 : i32
    %c0_i32_0 = arith.constant 0 : i32
    return %arg0, %c0_i32 : i32, i32
  }
}

module attributes {stable_mosaic.version = 11 : i64} {
  func.func @_gemm_bias_kernel(%arg0: i32, %arg1: i32, %arg2: memref<16x384xbf16, #tpu.memory_space<vmem>>, %arg3: memref<384x128xbf16, #tpu.memory_space<vmem>>, %arg4: memref<1x128xf32, #tpu.memory_space<vmem>>, %arg5: memref<16x128xbf16, #tpu.memory_space<vmem>>, %arg6: memref<16x128xf32, #tpu.memory_space<vmem>>) attributes {dimension_semantics = [#tpu.dimension_semantics<parallel>, #tpu.dimension_semantics<arbitrary>], iteration_bounds = array<i64: 1, 3>, scalar_prefetch = 0 : i64, scratch_operands = 1 : i64, tpu.core_type = #tpu.core_type<tc>, window_params = [{transform_indices = @transform_0, window_bounds = array<i64: 16, 384>}, {transform_indices = @transform_1, window_bounds = array<i64: 384, 128>}, {pipeline_mode = #tpu.pipeline_mode<synchronous>, transform_indices = @transform_2, window_bounds = array<i64: 1, 128>}, {transform_indices = @transform_3, window_bounds = array<i64: 16, 128>}]} {
    %c0_i32 = arith.constant 0 : i32
    %0 = arith.cmpi eq, %arg1, %c0_i32 : i32
    %1 = arith.extui %0 : i1 to i32
    %c0_i32_0 = arith.constant 0 : i32
    %2 = arith.cmpi ne, %1, %c0_i32_0 : i32
    scf.if %2 {
      %cst_9 = arith.constant 0.000000e+00 : f32
      %12 = vector.broadcast %cst_9 : f32 to vector<16x128xf32>
      %c0_10 = arith.constant 0 : index
      %c0_11 = arith.constant 0 : index
      %13 = vector.load %arg6[%c0_10, %c0_11] : memref<16x128xf32, #tpu.memory_space<vmem>>, vector<16x128xf32>
      tpu.vector_store %arg6[%c0_10, %c0_11], %12 {strides = array<i32>} : memref<16x128xf32, #tpu.memory_space<vmem>>, vector<16x128xf32>,
    } else {
    }
    %c0 = arith.constant 0 : index
    %c0_1 = arith.constant 0 : index
    %3 = vector.load %arg6[%c0, %c0_1] : memref<16x128xf32, #tpu.memory_space<vmem>>, vector<16x128xf32>
    %c0_2 = arith.constant 0 : index
    %c0_3 = arith.constant 0 : index
    %4 = vector.load %arg2[%c0_2, %c0_3] : memref<16x384xbf16, #tpu.memory_space<vmem>>, vector<16x384xbf16>
    %c0_4 = arith.constant 0 : index
    %c0_5 = arith.constant 0 : index
    %5 = vector.load %arg3[%c0_4, %c0_5] : memref<384x128xbf16, #tpu.memory_space<vmem>>, vector<384x128xbf16>
    %cst = arith.constant dense<0.000000e+00> : vector<16x128xf32>
    %6 = tpu.matmul %4, %5, %cst {dimension_numbers = #tpu.dot_dimension_numbers<[1], [0], [0], [1], [0, 0, 1, 1], [], []>} : vector<16x384xbf16>, vector<384x128xbf16>, vector<16x128xf32> -> vector<16x128xf32>
    %7 = arith.addf %3, %6 : vector<16x128xf32>
    %c0_6 = arith.constant 0 : index
    %c0_7 = arith.constant 0 : index
    %8 = vector.load %arg6[%c0_6, %c0_7] : memref<16x128xf32, #tpu.memory_space<vmem>>, vector<16x128xf32>
    tpu.vector_store %arg6[%c0_6, %c0_7], %7 {strides = array<i32>} : memref<16x128xf32, #tpu.memory_space<vmem>>, vector<16x128xf32>,
    %c2_i32 = arith.constant 2 : i32
    %9 = arith.cmpi eq, %arg1, %c2_i32 : i32
    %10 = arith.extui %9 : i1 to i32
    %c0_i32_8 = arith.constant 0 : i32
    %11 = arith.cmpi ne, %10, %c0_i32_8 : i32
    scf.if %11 {
      %c0_9 = arith.constant 0 : index
      %c0_10 = arith.constant 0 : index
      %12 = vector.load %arg6[%c0_9, %c0_10] : memref<16x128xf32, #tpu.memory_space<vmem>>, vector<16x128xf32>
      %c0_11 = arith.constant 0 : index
      %c0_12 = arith.constant 0 : index
      %13 = vector.load %arg4[%c0_11, %c0_12] : memref<1x128xf32, #tpu.memory_space<vmem>>, vector<1x128xf32>
      %14 = vector.broadcast %13 : vector<1x128xf32> to vector<16x128xf32>
      %15 = arith.addf %12, %14 : vector<16x128xf32>
      %cst_13 = arith.constant 0.000000e+00 : f32
      %16 = vector.broadcast %cst_13 : f32 to vector<16x128xf32>
      %17 = arith.maximumf %15, %16 : vector<16x128xf32>
      %18 = arith.truncf %17 : vector<16x128xf32> to vector<16x128xbf16>
      %c0_14 = arith.constant 0 : index
      %c0_15 = arith.constant 0 : index
      %19 = vector.load %arg5[%c0_14, %c0_15] : memref<16x128xbf16, #tpu.memory_space<vmem>>, vector<16x128xbf16>
      tpu.vector_store %arg5[%c0_14, %c0_15], %18 {strides = array<i32>} : memref<16x128xbf16, #tpu.memory_space<vmem>>, vector<16x128xbf16>,
    } else {
    }
    return
  }
  func.func @transform_0(%arg0: i32, %arg1: i32) -> (i32, i32) {
    %c0_i32 = arith.constant 0 : i32
    return %arg0, %arg1 : i32, i32
  }
  func.func @transform_1(%arg0: i32, %arg1: i32) -> (i32, i32) {
    %c0_i32 = arith.constant 0 : i32
    %c0_i32_0 = arith.constant 0 : i32
    return %arg1, %c0_i32 : i32, i32
  }
  func.func @transform_2(%arg0: i32, %arg1: i32) -> (i32, i32) {
    %c0_i32 = arith.constant 0 : i32
    %c0_i32_0 = arith.constant 0 : i32
    %c0_i32_1 = arith.constant 0 : i32
    return %c0_i32, %c0_i32_0 : i32, i32
  }
  func.func @transform_3(%arg0: i32, %arg1: i32) -> (i32, i32) {
    %c0_i32 = arith.constant 0 : i32
    %c0_i32_0 = arith.constant 0 : i32
    return %arg0, %c0_i32 : i32, i32
  }
}

</mosaic_0001>

<bundles_post_ra>
// kernel: _lambda_.21
= control target key start
LH: loop header
LB: loop body
LE: loop exit
PB: predicated region body
PF: predicated region fallthrough
CT: control target
= control target key end

     0   :  { %s1747_s15 = smov 0   ;;  %s1749_s16 = smov 0   ;;  %s2003_s0 = inlined_call_operand.vmem [shape: bf16[128,1152], index: 0, kind: input, shape index: {}]   ;;  %s2004_s1 = inlined_call_operand.vmem [shape: bf16[1152,128], index: 1, kind: input, shape index: {}]   ;;  %s2005_s2 = inlined_call_operand.vmem [shape: f32[1,128], index: 2, kind: input, shape index: {}]   ;;  %s2006_s3 = inlined_call_operand.vmem [shape: bf16[128,128], index: 3, kind: input, shape index: {}]   ;;  %s2007_s4 = inlined_call_operand.vmem [shape: bf16[128,128], index: 4, kind: output, shape index: {}]  }
   0x1   :  { %s1751_s17 = smov 0   ;;  %s1753_s18 = smov 0  }
   0x2   :  { %s1755_s19 = smov 0  }
   0x3 LB: > { %s23_s20 = sadd.s32 1, %s1715_s18  ;;  %p42_p1 = scmp.ne.s32.totalorder %s1707_s16, %s1703_s15  ;;  %s1719_s19 = sphi %s1755_s19, %s14_s19   ;;  %s1715_s18 = sphi %s1753_s18, %s2011_s18   ;;  %s1711_s17 = sphi %s1751_s17, %s2010_s17   ;;  %s1707_s16 = sphi %s1749_s16, %s2009_s16   ;;  %s1703_s15 = sphi %s1747_s15, %s2008_s15  }
   0x4   : > { %p24_p0 = scmp.ge.s32.totalorder %s23_s20, 3  ;;  %p43_p2 = scmp.eq.s32.totalorder %s1719_s19, 0 }
   0x5   : > { %s35_s22 = sadd.s32 1, %s1707_s16  ;;  %p1260_p5 = scmp.ge.s32.totalorder %s1719_s19, 3 }
   0x6   : > { %s2013_s20 = smov (%p24_p0, %s23_s20), 0  ;;  %p44_p3 = por %p43_p2, %p42_p1 }
   0x7   : > { %s31_s21 = ssub.s32 %s1715_s18, %s2013_s20  ;;  %179 = sbr.rel (%p1260_p5) target bundleno = 37 (0x25), region = 24 }
   0x8   : > { %p33_p4 = scmp.eq.s32.totalorder %s31_s21, 0 }
   0xa   : > { %s1782_s23 = scalar_select %p33_p4, %s1707_s16, %s35_s22  }
   0xe   : > { %182 = sbr.rel (!%p44_p3) target bundleno = 37 (0x25), region = 28  ;;  %s184_s24 = sand.u32 (%p44_p3), 1, %s1707_s16  }
   0xf   : > { %s1367_s25 = smul.u32 (%p44_p3), 12, %s1715_s18 }
  0x10   : > { %s1582_s26 = smul.u32 (%p44_p3), 192, %s184_s24 }
  0x11   : > { %s1790_s29 = scalar_lea.vmem (%p44_p3), %s2003_s0, %s1367_s25 }
  0x12   : > { %v207_v0 = vld [vmem:[%s1790_s29] sm:$0xff] (%p44_p3)  ;;  %v211_v2 = vld [vmem:[%s1790_s29 + $0x48] sm:$0xff] (%p44_p3)  ;;  %s1795_s30 = scalar_lea.vmem (%p44_p3), [#allocation3], %s1582_s26  ;;  %v215_v4 = vld [vmem:[%s1790_s29 + $0x90] sm:$0xff] (%p44_p3) }
  0x13   : > { %v209_v1 = vld [vmem:[%s1790_s29 + $0x24] sm:$0xff] (%p44_p3)  ;;  %208 = vst [vmem:[%s1795_s30] sm:$0xff] (%p44_p3), %v207_v0  ;;  %212 = vst [vmem:[%s1795_s30 + $0x18] sm:$0xff] (%p44_p3), %v211_v2  ;;  %v213_v3 = vld [vmem:[%s1790_s29 + $0x6c] sm:$0xff] (%p44_p3) }
  0x14   : > { %210 = vst [vmem:[%s1795_s30 + $0xc] sm:$0xff] (%p44_p3), %v209_v1  ;;  %v217_v5 = vld [vmem:[%s1790_s29 + $0xb4] sm:$0xff] (%p44_p3)  ;;  %214 = vst [vmem:[%s1795_s30 + $0x24] sm:$0xff] (%p44_p3), %v213_v3  ;;  %v221_v7 = vld [vmem:[%s1790_s29 + $0xfc] sm:$0xff] (%p44_p3) }
  0x15   : > { %216 = vst [vmem:[%s1795_s30 + $0x30] sm:$0xff] %v215_v4  ;;  %218 = vst [vmem:[%s1795_s30 + $0x3c] sm:$0xff] %v217_v5  ;;  %v219_v6 = vld [vmem:[%s1790_s29 + $0xd8] sm:$0xff]  ;;  %v223_v8 = vld [vmem:[%s1790_s29 + $0x120] sm:$0xff] }
  0x16   : > { %220 = vst [vmem:[%s1795_s30 + $0x48] sm:$0xff] %v219_v6  ;;  %222 = vst [vmem:[%s1795_s30 + $0x54] sm:$0xff] %v221_v7  ;;  %v225_v9 = vld [vmem:[%s1790_s29 + $0x144] sm:$0xff]  ;;  %v229_v11 = vld [vmem:[%s1790_s29 + $0x18c] sm:$0xff] }
  0x17   : > { %224 = vst [vmem:[%s1795_s30 + $0x60] sm:$0xff] %v223_v8  ;;  %v227_v10 = vld [vmem:[%s1790_s29 + $0x168] sm:$0xff]  ;;  %226 = vst [vmem:[%s1795_s30 + $0x6c] sm:$0xff] %v225_v9  ;;  %v231_v12 = vld [vmem:[%s1790_s29 + $0x1b0] sm:$0xff] }
  0x18   : > { %228 = vst [vmem:[%s1795_s30 + $0x78] sm:$0xff] %v227_v10  ;;  %230 = vst [vmem:[%s1795_s30 + $0x84] sm:$0xff] %v229_v11  ;;  %v233_v13 = vld [vmem:[%s1790_s29 + $0x1d4] sm:$0xff]  ;;  %v237_v15 = vld [vmem:[%s1790_s29 + $0x21c] sm:$0xff] }
  0x19   : > { %v235_v14 = vld [vmem:[%s1790_s29 + $0x1f8] sm:$0xff]  ;;  %232 = vst [vmem:[%s1795_s30 + $0x90] sm:$0xff] %v231_v12  ;;  %234 = vst [vmem:[%s1795_s30 + $0x9c] sm:$0xff] %v233_v13  ;;  %v1262_v16 = vld [vmem:[%s1790_s29 + $0x8] sm:$0xf] }
  0x1a   : > { %236 = vst [vmem:[%s1795_s30 + $0xa8] sm:$0xff] %v235_v14  ;;  %v1264_v17 = vld [vmem:[%s1790_s29 + $0x2c] sm:$0xf]  ;;  %238 = vst [vmem:[%s1795_s30 + $0xb4] sm:$0xff] %v237_v15  ;;  %v1266_v18 = vld [vmem:[%s1790_s29 + $0x50] sm:$0xf] }
  0x1b   : > { %1263 = vst [vmem:[%s1795_s30 + $0x8] sm:$0xf] %v1262_v16  ;;  %1265 = vst [vmem:[%s1795_s30 + $0x14] sm:$0xf] %v1264_v17  ;;  %v1268_v19 = vld [vmem:[%s1790_s29 + $0x74] sm:$0xf] }
  0x1c   : > { %v1270_v20 = vld [vmem:[%s1790_s29 + $0x98] sm:$0xf]  ;;  %1267 = vst [vmem:[%s1795_s30 + $0x20] sm:$0xf] %v1266_v18  ;;  %1269 = vst [vmem:[%s1795_s30 + $0x2c] sm:$0xf] %v1268_v19 }
  0x1d   : > { %1271 = vst [vmem:[%s1795_s30 + $0x38] sm:$0xf] %v1270_v20  ;;  %v1272_v21 = vld [vmem:[%s1790_s29 + $0xbc] sm:$0xf]  ;;  %v1274_v22 = vld [vmem:[%s1790_s29 + $0xe0] sm:$0xf] }
  0x1e   : > { %v1276_v23 = vld [vmem:[%s1790_s29 + $0x104] sm:$0xf]  ;;  %1273 = vst [vmem:[%s1795_s30 + $0x44] sm:$0xf] %v1272_v21  ;;  %1275 = vst [vmem:[%s1795_s30 + $0x50] sm:$0xf] %v1274_v22 }
  0x1f   : > { %1277 = vst [vmem:[%s1795_s30 + $0x5c] sm:$0xf] %v1276_v23  ;;  %v1278_v24 = vld [vmem:[%s1790_s29 + $0x128] sm:$0xf]  ;;  %v1280_v25 = vld [vmem:[%s1790_s29 + $0x14c] sm:$0xf] }
  0x20   : > { %v1282_v26 = vld [vmem:[%s1790_s29 + $0x170] sm:$0xf]  ;;  %1279 = vst [vmem:[%s1795_s30 + $0x68] sm:$0xf] %v1278_v24  ;;  %1281 = vst [vmem:[%s1795_s30 + $0x74] sm:$0xf] %v1280_v25 }
  0x21   : > { %1283 = vst [vmem:[%s1795_s30 + $0x80] sm:$0xf] %v1282_v26  ;;  %v1284_v27 = vld [vmem:[%s1790_s29 + $0x194] sm:$0xf]  ;;  %v1286_v28 = vld [vmem:[%s1790_s29 + $0x1b8] sm:$0xf] }
  0x22   : > { %v1288_v29 = vld [vmem:[%s1790_s29 + $0x1dc] sm:$0xf]  ;;  %1285 = vst [vmem:[%s1795_s30 + $0x8c] sm:$0xf] %v1284_v27  ;;  %1287 = vst [vmem:[%s1795_s30 + $0x98] sm:$0xf] %v1286_v28 }
  0x23   : > { %1289 = vst [vmem:[%s1795_s30 + $0xa4] sm:$0xf] %v1288_v29  ;;  %v1290_v30 = vld [vmem:[%s1790_s29 + $0x200] sm:$0xf]  ;;  %v1292_v31 = vld [vmem:[%s1790_s29 + $0x224] sm:$0xf] }
  0x24   : > { %1291 = vst [vmem:[%s1795_s30 + $0xb0] sm:$0xf] %v1290_v30  ;;  %1293 = vst [vmem:[%s1795_s30 + $0xbc] sm:$0xf] %v1292_v31 }
  0x25 PF: > { %p1294_p6 = scmp.ge.s32.totalorder %s1719_s19, 1  ;;  %p291_p7 = scmp.lt.s32.totalorder %s1719_s19, 4 }
  0x27   : > { %p292_p8 = pnand %p1294_p6, %p291_p7 }
  0x28   : > { %s298_s5 = sand.u32 (!%p292_p8), 1, %s1703_s15   ;;  %s335_s6 = smul.u32 (!%p292_p8), 48, %s1711_s17 }
  0x29   : > { %295 = sbr.rel (%p292_p8) target bundleno = 385 (0x181), region = 58  ;;  %p1296_p10 = scmp.ne.s32.totalorder (!%p292_p8), %s1711_s17, 0 }
  0x2a   : > { %s1583_s7 = smul.u32 (!%p292_p8), 192, %s298_s5  ;;  %p336_p9 = scmp.lt.s32.totalorder (!%p292_p8), %s335_s6, 143 }
  0x2c   : > { %s1867_s12 = scalar_lea.vmem (!%p292_p8), [#allocation3], %s1583_s7 }
  0x30   : > { %s2015_s6 = smov (!%p336_p9, %s335_s6), 143  ;;  %357 = sbr.rel (%p1296_p10) target bundleno = 58 (0x3a), region = 66 }
  0x31   : > { %s1295_s8 = sshll.u32 %s2015_s6, 2  ;;  %v1721_v32 = vmov (!%p1296_p10), 0.0  }
  0x32   : > { %s1865_s11 = scalar_lea.vmem %s2004_s1, %s1295_s8  ;;  %358 = vst [vmem:[#allocation2] sm:$0xff] (!%p1296_p10), %v1721_v32  ;;  %359 = vst [vmem:[#allocation2 + $0x8] sm:$0xff] (!%p1296_p10), %v1721_v32 }
  0x33   : > { %360 = vst [vmem:[#allocation2 + $0x10] sm:$0xff] (!%p1296_p10), %v1721_v32  ;;  %361 = vst [vmem:[#allocation2 + $0x18] sm:$0xff] (!%p1296_p10), %v1721_v32 }
  0x34   : > { %362 = vst [vmem:[#allocation2 + $0x20] sm:$0xff] (!%p1296_p10), %v1721_v32  ;;  %363 = vst [vmem:[#allocation2 + $0x28] sm:$0xff] (!%p1296_p10), %v1721_v32 }
  0x35   : > { %364 = vst [vmem:[#allocation2 + $0x30] sm:$0xff] (!%p1296_p10), %v1721_v32  ;;  %365 = vst [vmem:[#allocation2 + $0x38] sm:$0xff] (!%p1296_p10), %v1721_v32 }
  0x36   : > { %366 = vst [vmem:[#allocation2 + $0x40] sm:$0xff] (!%p1296_p10), %v1721_v32  ;;  %367 = vst [vmem:[#allocation2 + $0x48] sm:$0xff] (!%p1296_p10), %v1721_v32 }
  0x37   : > { %368 = vst [vmem:[#allocation2 + $0x50] sm:$0xff] %v1721_v32  ;;  %369 = vst [vmem:[#allocation2 + $0x58] sm:$0xff] %v1721_v32 }
  0x38   : > { %370 = vst [vmem:[#allocation2 + $0x60] sm:$0xff] %v1721_v32  ;;  %371 = vst [vmem:[#allocation2 + $0x68] sm:$0xff] %v1721_v32 }
  0x39   : > { %372 = vst [vmem:[#allocation2 + $0x70] sm:$0xff] %v1721_v32  ;;  %373 = vst [vmem:[#allocation2 + $0x78] sm:$0xff] %v1721_v32 }
  0x3a PF: > { %v1625_v33 = vld [vmem:[%s1865_s11 + $0x40] sm:$0xff]   ;;  %v1628_v36 = vld [vmem:[%s1865_s11 + $0x48] sm:$0xff]   ;;  %v1631_v39 = vld [vmem:[%s1865_s11 + $0x50] sm:$0xff]   ;;  %p1345_p11 = scmp.ne.s32.totalorder %s1711_s17, 2 }
  0x3b   : > { %v1626_v34 = vld [vmem:[%s1865_s11] sm:$0xff]   ;;  %1470 = vmatprep.subr.bf16.mxu0 %v1625_v33  ;;  %v1629_v37 = vld [vmem:[%s1865_s11 + $0x8] sm:$0xff]   ;;  %v1632_v40 = vld [vmem:[%s1865_s11 + $0x10] sm:$0xff]  }
  0x3c   : > { %v1627_v35 = vld [vmem:[%s1865_s11 + $0x80] sm:$0xff]   ;;  %1471 = vmatpush3.bf16.msra.mxu0 %v1626_v34  ;;  %v1630_v38 = vld [vmem:[%s1865_s11 + $0x88] sm:$0xff]   ;;  %v1633_v41 = vld [vmem:[%s1865_s11 + $0x90] sm:$0xff]  }
  0x3d   : > { %1550 = vmatprep.subr.bf16.mxu1 %v1627_v35  ;;  %1472 = vmatprep.subr.bf16.mxu0 %v1628_v36  ;;  %v1634_v42 = vld [vmem:[%s1865_s11 + $0x58] sm:$0xff]   ;;  %v1637_v45 = vld [vmem:[%s1865_s11 + $0x60] sm:$0xff]   ;;  %v1640_v48 = vld [vmem:[%s1865_s11 + $0x68] sm:$0xff]  }
  0x3e   : > { %1551 = vmatpush3.bf16.msra.mxu1 %v1627_v35  ;;  %v1635_v43 = vld [vmem:[%s1865_s11 + $0x18] sm:$0xff]   ;;  %v1639_v46 = vld [vmem:[%s1865_s11 + $0xa0] sm:$0xff]   ;;  %v1642_v49 = vld [vmem:[%s1865_s11 + $0xa8] sm:$0xff]  }
  0x3f   : > { %1552 = vmatprep.subr.bf16.mxu1 %v1630_v38  ;;  %v1636_v44 = vld [vmem:[%s1865_s11 + $0x98] sm:$0xff]   ;;  %v1638_v47 = vld [vmem:[%s1865_s11 + $0x20] sm:$0xff]   ;;  %v1641_v50 = vld [vmem:[%s1865_s11 + $0x28] sm:$0xff]  }
  0x40   : > { %1473 = vmatpush3.bf16.msra.mxu0 %v1629_v37  ;;  %v1643_v51 = vld [vmem:[%s1865_s11 + $0x70] sm:$0xff]   ;;  %v1646_v54 = vld [vmem:[%s1865_s11 + $0x78] sm:$0xff]   ;;  %v1649_v59 = vld [vmem:[%s1867_s12] ss:$12 sps:$4 sm:$0xff]  }
  0x41   : > { %1474 = vmatprep.subr.bf16.mxu0 %v1631_v39  ;;  %v1644_v52 = vld [vmem:[%s1865_s11 + $0x30] sm:$0xff]   ;;  %v1648_v55 = vld [vmem:[%s1865_s11 + $0xb8] sm:$0xff]   ;;  %v1653_v61 = vld [vmem:[%s1867_s12 + $0x20] ss:$12 sps:$4 sm:$0xff]  }
  0x42   : > { %1553 = vmatpush3.bf16.msra.mxu1 %v1630_v38  ;;  %v1645_v53 = vld [vmem:[%s1865_s11 + $0xb0] sm:$0xff]   ;;  %v1647_v58 = vld [vmem:[%s1865_s11 + $0x38] sm:$0xff]   ;;  %v1669_v5 = vld [vmem:[%s1867_s12 + $0x80] ss:$12 sps:$4 sm:$0xff]  }
  0x43   : > { %1554 = vmatprep.subr.bf16.mxu1 %v1633_v41  ;;  %v1651_v56 = vld [vmem:[%s1867_s12 + $0x4] ss:$12 sps:$4 sm:$0xff]   ;;  %v1652_v57 = vld [vmem:[%s1867_s12 + $0x8] ss:$12 sps:$4 sm:$0xff]   ;;  %v1662_v4 = vld [vmem:[%s1867_s12 + $0x4c] ss:$12 sps:$4 sm:$0xff]  }
  0x44   : > { %1475 = vmatpush3.bf16.msra.mxu0 %v1632_v40  ;;  %774 = vmatprep.mubr.bf16.mxu0 %v1651_v56  ;;  %v1654_v60 = vld [vmem:[%s1867_s12 + $0x1c] ss:$12 sps:$4 sm:$0xff]   ;;  %v1660_v62 = vld [vmem:[%s1867_s12 + $0x38] ss:$12 sps:$4 sm:$0xff]   ;;  %v1657_v0 = vld [vmem:[%s1867_s12 + $0x34] ss:$12 sps:$4 sm:$0xff]  }
  0x45   : > { %1476 = vmatprep.subr.bf16.mxu0 %v1634_v42  ;;  %1566 = vmatprep.mubr.bf16.mxu1 %v1652_v57  ;;  %v1656_v63 = vld [vmem:[%s1867_s12 + $0x18] ss:$12 sps:$4 sm:$0xff]   ;;  %v1661_v1 = vld [vmem:[%s1867_s12 + $0x50] ss:$12 sps:$4 sm:$0xff]   ;;  %v1668_v2 = vld [vmem:[%s1867_s12 + $0x68] ss:$12 sps:$4 sm:$0xff]  }
  0x46   : > { %1555 = vmatpush3.bf16.msra.mxu1 %v1633_v41  ;;  %v1659_v3 = vld [vmem:[%s1867_s12 + $0x30] ss:$12 sps:$4 sm:$0xff]   ;;  %v1676_v6 = vld [vmem:[%s1867_s12 + $0x98] ss:$12 sps:$4 sm:$0xff]   ;;  %v1664_v7 = vld [vmem:[%s1867_s12 + $0x48] ss:$12 sps:$4 sm:$0xff]  }
  0x47   : > { %1556 = vmatprep.subr.bf16.mxu1 %v1636_v44  ;;  %v1665_v8 = vld [vmem:[%s1867_s12 + $0x64] ss:$12 sps:$4 sm:$0xff]   ;;  %v1667_v10 = vld [vmem:[%s1867_s12 + $0x60] ss:$12 sps:$4 sm:$0xff]   ;;  %v1670_v11 = vld [vmem:[%s1867_s12 + $0x7c] ss:$12 sps:$4 sm:$0xff]  }
  0x48   : > { %1477 = vmatpush3.bf16.msra.mxu0 %v1635_v43  ;;  %v1677_v9 = vld [vmem:[%s1867_s12 + $0xb0] ss:$12 sps:$4 sm:$0xff]   ;;  %v1672_v12 = vld [vmem:[%s1867_s12 + $0x78] ss:$12 sps:$4 sm:$0xff]   ;;  %v1673_v13 = vld [vmem:[%s1867_s12 + $0x94] ss:$12 sps:$4 sm:$0xff]  }
  0x49   : > { %1478 = vmatprep.subr.bf16.mxu0 %v1637_v45  ;;  %v1675_v14 = vld [vmem:[%s1867_s12 + $0x90] ss:$12 sps:$4 sm:$0xff]   ;;  %v1678_v15 = vld [vmem:[%s1867_s12 + $0xac] ss:$12 sps:$4 sm:$0xff]   ;;  %v1680_v16 = vld [vmem:[%s1867_s12 + $0xa8] ss:$12 sps:$4 sm:$0xff]  }
  0x4a   : > { %1557 = vmatpush3.bf16.msra.mxu1 %v1636_v44  ;;  %v374_v23 = vld [vmem:[#allocation2] sm:$0xff]  ;;  %v375_v28 = vld [vmem:[#allocation2 + $0x8] sm:$0xff]  ;;  %v376_v38 = vld [vmem:[#allocation2 + $0x10] sm:$0xff] }
  0x4b   : > { %1558 = vmatprep.subr.bf16.mxu1 %v1639_v46  ;;  %v377_v44 = vld [vmem:[#allocation2 + $0x18] sm:$0xff] }
  0x4c   : > { %1479 = vmatpush3.bf16.msra.mxu0 %v1638_v47 }
  0x4d   : > { %1480 = vmatprep.subr.bf16.mxu0 %v1640_v48 }
  0x4e   : > { %1559 = vmatpush3.bf16.msra.mxu1 %v1639_v46 }
  0x4f   : > { %1560 = vmatprep.subr.bf16.mxu1 %v1642_v49 }
  0x50   : > { %1481 = vmatpush3.bf16.msra.mxu0 %v1641_v50 }
  0x51   : > { %1482 = vmatprep.subr.bf16.mxu0 %v1643_v51 }
  0x52   : > { %1561 = vmatpush3.bf16.msra.mxu1 %v1642_v49 }
  0x53   : > { %1562 = vmatprep.subr.bf16.mxu1 %v1645_v53 }
  0x54   : > { %1483 = vmatpush3.bf16.msra.mxu0 %v1644_v52 }
  0x55   : > { %1484 = vmatprep.subr.bf16.mxu0 %v1646_v54 }
  0x56   : > { %1563 = vmatpush3.bf16.msra.mxu1 %v1645_v53 }
  0x57   : > { %1564 = vmatprep.subr.bf16.mxu1 %v1648_v55 }
  0x58   : > { %1485 = vmatpush3.bf16.msra.mxu0 %v1647_v58 }
  0x5a   : > { %1565 = vmatpush3.bf16.msra.mxu1 %v1648_v55  ;;  %v378_v55 = vld [vmem:[#allocation2 + $0x20] sm:$0xff] }
  0x5b   : > { %775 = vmatmul.mubr.bf16.vlgmr.msra.gmra.mrb[0].mxu0 %v1649_v59 }
  0x5c   : > { %782 = vmatprep.mubr.bf16.mxu0 %v1654_v60  ;;  %v379_v60 = vld [vmem:[#allocation2 + $0x28] sm:$0xff] }
  0x5d   : > { %1567 = vmatmul.mubr.bf16.vlgmr.msra.gmra.mrb[0].mxu1 %v1653_v61 }
  0x5e   : > { %1570 = vmatprep.mubr.bf16.mxu1 %v1660_v62 }
  0x63   : > { %783 = vmatmul.mubr.bf16.gmra.mrb[4].mxu0 %v1656_v63 }
  0x64   : > { %790 = vmatprep.mubr.bf16.mxu0 %v1657_v0 }
  0x65   : > { %1571 = vmatmul.mubr.bf16.gmra.mrb[4].mxu1 %v1661_v1 }
  0x66   : > { %1574 = vmatprep.mubr.bf16.mxu1 %v1668_v2 }
  0x6b   : > { %791 = vmatmul.mubr.bf16.gmra.mrb[8].mxu0 %v1659_v3 }
  0x6c   : > { %798 = vmatprep.mubr.bf16.mxu0 %v1662_v4 }
  0x6d   : > { %1575 = vmatmul.mubr.bf16.gmra.mrb[8].mxu1 %v1669_v5 }
  0x6e   : > { %1578 = vmatprep.mubr.bf16.mxu1 %v1676_v6  ;;  %v380_v6 = vld [vmem:[#allocation2 + $0x30] sm:$0xff] }
  0x73   : > { %799 = vmatmul.mubr.bf16.gmra.mrb[12].mxu0 %v1664_v7 }
  0x74   : > { %806 = vmatprep.mubr.bf16.mxu0 %v1665_v8 }
  0x75   : > { %1579 = vmatmul.mubr.bf16.gmra.mrb[12].mxu1 %v1677_v9 }
  0x7b   : > { %807 = vmatmul.mubr.bf16.gmra.mrb[16].mxu0 %v1667_v10 }
  0x7c   : > { %814 = vmatprep.mubr.bf16.mxu0 %v1670_v11 }
  0x83   : > { %815 = vmatmul.mubr.bf16.gmra.mrb[20].mxu0 %v1672_v12  ;;  %v381_v12 = vld [vmem:[#allocation2 + $0x38] sm:$0xff] }
  0x84   : > { %822 = vmatprep.mubr.bf16.mxu0 %v1673_v13 }
  0x8b   : > { %823 = vmatmul.mubr.bf16.gmra.mrb[24].mxu0 %v1675_v14 }
  0x8c   : > { %830 = vmatprep.mubr.bf16.mxu0 %v1678_v15 }
  0x93   : > { %831 = vmatmul.mubr.bf16.gmra.mrb[28].mxu0 %v1680_v16 }
 0x12e   : > { %v1486_v17 = vpop.f32.mrb[0].mxu0 }
 0x12f   : > { %v1487_v18 = vpop.f32.mrb[1].mxu0 }
 0x130   : > { %v1488_v19 = vadd.f32 %v1487_v18, %v1486_v17  ;;  %v1489_v20 = vpop.f32.mrb[2].mxu0  ;;  %v1568_v21 = vpop.f32.mrb[0].mxu1 }
 0x131   : > { %v1490_v22 = vpop.f32.mrb[3].mxu0  ;;  %v873_v24 = vpop.f32.mrb[1].mxu1 }
 0x132   : > { %v1491_v25 = vadd.f32 %v1490_v22, %v1489_v20  ;;  %v874_v26 = vadd.f32 %v1488_v19, %v873_v24  ;;  %v1569_v27 = vpop.f32.mrb[2].mxu1  ;;  %v382_v22 = vld [vmem:[#allocation2 + $0x40] sm:$0xff] }
 0x133   : > { %v876_v29 = vpop.f32.mrb[3].mxu1 }
 0x134   : > { %v936_v30 = vadd.f32 %v874_v26, %v374_v23  ;;  %v877_v31 = vadd.f32 %v1491_v25, %v876_v29  ;;  %v383_v25 = vld [vmem:[#allocation2 + $0x48] sm:$0xff] }
 0x136   : > { %952 = vst [vmem:[#allocation2] sm:$0xff] %v936_v30  ;;  %v937_v32 = vadd.f32 %v877_v31, %v375_v28  ;;  %v1492_v33 = vpop.f32.mrb[4].mxu0 }
 0x137   : > { %v1493_v34 = vpop.f32.mrb[5].mxu0 }
 0x138   : > { %953 = vst [vmem:[#allocation2 + $0x8] sm:$0xff] %v937_v32  ;;  %v1494_v35 = vadd.f32 %v1493_v34, %v1492_v33  ;;  %v1495_v36 = vpop.f32.mrb[6].mxu0  ;;  %v1572_v37 = vpop.f32.mrb[4].mxu1  ;;  %v384_v33 = vld [vmem:[#allocation2 + $0x50] sm:$0xff] }
 0x139   : > { %v1496_v39 = vpop.f32.mrb[7].mxu0  ;;  %v889_v40 = vpop.f32.mrb[5].mxu1 }
 0x13a   : > { %v882_v41 = vadd.f32 %v1568_v21, %v1494_v35  ;;  %v1497_v42 = vadd.f32 %v1496_v39, %v1495_v36  ;;  %v1573_v43 = vpop.f32.mrb[6].mxu1 }
 0x13b   : > { %v892_v45 = vpop.f32.mrb[7].mxu1 }
 0x13c   : > { %v938_v46 = vadd.f32 %v882_v41, %v376_v38  ;;  %v885_v47 = vadd.f32 %v1569_v27, %v1497_v42 }
 0x13e   : > { %954 = vst [vmem:[#allocation2 + $0x10] sm:$0xff] %v938_v46  ;;  %v939_v48 = vadd.f32 %v885_v47, %v377_v44  ;;  %v1498_v49 = vpop.f32.mrb[8].mxu0  ;;  %v386_v46 = vld [vmem:[#allocation2 + $0x60] sm:$0xff] }
 0x13f   : > { %v1499_v50 = vpop.f32.mrb[9].mxu0 }
 0x140   : > { %955 = vst [vmem:[#allocation2 + $0x18] sm:$0xff] %v939_v48  ;;  %v1500_v51 = vadd.f32 %v1499_v50, %v1498_v49  ;;  %v1501_v52 = vpop.f32.mrb[10].mxu0  ;;  %v1576_v53 = vpop.f32.mrb[8].mxu1  ;;  %v387_v49 = vld [vmem:[#allocation2 + $0x68] sm:$0xff] }
 0x141   : > { %v1502_v54 = vpop.f32.mrb[11].mxu0  ;;  %v905_v56 = vpop.f32.mrb[9].mxu1 }
 0x142   : > { %v1503_v57 = vadd.f32 %v1502_v54, %v1501_v52  ;;  %v890_v58 = vadd.f32 %v1500_v51, %v889_v40  ;;  %v1577_v59 = vpop.f32.mrb[10].mxu1 }
 0x143   : > { %v908_v61 = vpop.f32.mrb[11].mxu1 }
 0x144   : > { %v940_v62 = vadd.f32 %v890_v58, %v378_v55  ;;  %v893_v63 = vadd.f32 %v1503_v57, %v892_v45  ;;  %v388_v57 = vld [vmem:[#allocation2 + $0x70] sm:$0xff] }
 0x146   : > { %956 = vst [vmem:[#allocation2 + $0x20] sm:$0xff] %v940_v62  ;;  %v941_v0 = vadd.f32 %v893_v63, %v379_v60  ;;  %v1504_v1 = vpop.f32.mrb[12].mxu0 }
 0x147   : > { %v1505_v2 = vpop.f32.mrb[13].mxu0 }
 0x148   : > { %957 = vst [vmem:[#allocation2 + $0x28] sm:$0xff] %v941_v0  ;;  %v1506_v3 = vadd.f32 %v1505_v2, %v1504_v1  ;;  %v1507_v4 = vpop.f32.mrb[14].mxu0  ;;  %v1580_v5 = vpop.f32.mrb[12].mxu1  ;;  %v972_v1 = vld [vmem:[#allocation2] sm:$0xff] (!%p1345_p11)  ;;  %v973_v2 = vld [vmem:[#allocation2 + $0x8] sm:$0xff] (!%p1345_p11) }
 0x149   : > { %v1508_v7 = vpop.f32.mrb[15].mxu0  ;;  %v921_v8 = vpop.f32.mrb[13].mxu1 }
 0x14a   : > { %v898_v9 = vadd.f32 %v1572_v37, %v1506_v3  ;;  %v1509_v10 = vadd.f32 %v1508_v7, %v1507_v4  ;;  %v1581_v11 = vpop.f32.mrb[14].mxu1  ;;  %v385_v37 = vld [vmem:[#allocation2 + $0x58] sm:$0xff]  ;;  %v1922_v3 = vld [vmem:[%s2005_s2] ss:$0 sm:$0xff] (!%p1345_p11)  ;;  %v974_v7 = vld [vmem:[#allocation2 + $0x10] sm:$0xff] (!%p1345_p11) }
 0x14b   : > { %v924_v13 = vpop.f32.mrb[15].mxu1  ;;  %v995_v4 = vadd.f32 (!%p1345_p11), %v1922_v3, %v972_v1 }
 0x14c   : > { %v942_v14 = vadd.f32 %v898_v9, %v380_v6  ;;  %v901_v15 = vadd.f32 %v1573_v43, %v1509_v10  ;;  %v1385_v6 = vld [vmem:[%s2006_s3] sm:$0xff] (!%p1345_p11)  }
 0x14d   : > { %v1386_v9 = vunpack.c.l.bf16 (!%p1345_p11), %v1385_v6  ;;  %v1387_v10 = vunpack.c.h.bf16 (!%p1345_p11), %v1385_v6 }
 0x14e   : > { %958 = vst [vmem:[#allocation2 + $0x30] sm:$0xff] %v942_v14  ;;  %v943_v16 = vadd.f32 %v901_v15, %v381_v12  ;;  %v1510_v17 = vpop.f32.mrb[16].mxu0  ;;  %v976_v14 = vld [vmem:[#allocation2 + $0x20] sm:$0xff] (!%p1345_p11) }
 0x14f   : > { %v1511_v18 = vpop.f32.mrb[17].mxu0  ;;  %v977_v15 = vld [vmem:[#allocation2 + $0x28] sm:$0xff] (!%p1345_p11) }
 0x150   : > { %959 = vst [vmem:[#allocation2 + $0x38] sm:$0xff] %v943_v16  ;;  %v1512_v19 = vadd.f32 %v1511_v18, %v1510_v17  ;;  %v1513_v20 = vpop.f32.mrb[18].mxu0  ;;  %v999_v18 = vadd.f32 (!%p1345_p11), %v1922_v3, %v976_v14 }
 0x151   : > { %v1514_v21 = vpop.f32.mrb[19].mxu0 }
 0x152   : > { %v1515_v23 = vadd.f32 %v1514_v21, %v1513_v20  ;;  %v906_v24 = vadd.f32 %v1512_v19, %v905_v56  ;;  %v1000_v19 = vadd.f32 (!%p1345_p11), %v1922_v3, %v977_v15  ;;  %v1457_v20 = vld [vmem:[%s2006_s3 + $0x10] sm:$0xff] (!%p1345_p11)  }
 0x154   : > { %v944_v26 = vadd.f32 %v906_v24, %v382_v22  ;;  %v909_v27 = vadd.f32 %v1515_v23, %v908_v61  ;;  %v389_v61 = vld [vmem:[#allocation2 + $0x78] sm:$0xff]  ;;  %v1043_v23 = vadd.f32 (!%p1345_p11), %v1386_v9, %v995_v4 }
 0x155   : > { %v978_v21 = vld [vmem:[#allocation2 + $0x30] sm:$0xff] (!%p1345_p11) }
 0x156   : > { %960 = vst [vmem:[#allocation2 + $0x40] sm:$0xff] %v944_v26  ;;  %v945_v28 = vadd.f32 %v909_v27, %v383_v25  ;;  %v1516_v29 = vpop.f32.mrb[20].mxu0  ;;  %v1394_v25 = vunpack.c.l.bf16 (!%p1345_p11), %v1457_v20  ;;  %v1395_v26 = vunpack.c.h.bf16 (!%p1345_p11), %v1457_v20  ;;  %v1458_v27 = vld [vmem:[%s2006_s3 + $0x18] sm:$0xff] (!%p1345_p11)  }
 0x157   : > { %v1517_v30 = vpop.f32.mrb[21].mxu0  ;;  %v979_v22 = vld [vmem:[#allocation2 + $0x38] sm:$0xff] (!%p1345_p11) }
 0x158   : > { %961 = vst [vmem:[#allocation2 + $0x48] sm:$0xff] %v945_v28  ;;  %v1518_v31 = vadd.f32 %v1517_v30, %v1516_v29  ;;  %v1519_v32 = vpop.f32.mrb[22].mxu0  ;;  %v1001_v30 = vadd.f32 (!%p1345_p11), %v1922_v3, %v978_v21 }
 0x159   : > { %v1520_v34 = vpop.f32.mrb[23].mxu0 }
 0x15a   : > { %v914_v35 = vadd.f32 %v1576_v53, %v1518_v31  ;;  %v1521_v36 = vadd.f32 %v1520_v34, %v1519_v32  ;;  %v1002_v31 = vadd.f32 (!%p1345_p11), %v1922_v3, %v979_v22 }
 0x15c   : > { %v946_v38 = vadd.f32 %v914_v35, %v384_v33  ;;  %v917_v39 = vadd.f32 %v1577_v59, %v1521_v36  ;;  %v1059_v33 = vmax.f32 (!%p1345_p11), %v1043_v23, 0.0  ;;  %v1047_v35 = vadd.f32 (!%p1345_p11), %v1394_v25, %v999_v18 }
 0x15d   : > { %v980_v32 = vld [vmem:[#allocation2 + $0x40] sm:$0xff] (!%p1345_p11)  ;;  %v1048_v36 = vadd.f32 (!%p1345_p11), %v1395_v26, %v1000_v19 }
 0x15e   : > { %962 = vst [vmem:[#allocation2 + $0x50] sm:$0xff] %v946_v38  ;;  %v947_v40 = vadd.f32 %v917_v39, %v385_v37  ;;  %v1522_v41 = vpop.f32.mrb[24].mxu0 }
 0x15f   : > { %v1523_v42 = vpop.f32.mrb[25].mxu0  ;;  %v981_v37 = vld [vmem:[#allocation2 + $0x48] sm:$0xff] (!%p1345_p11) }
 0x160   : > { %963 = vst [vmem:[#allocation2 + $0x58] sm:$0xff] %v947_v40  ;;  %v1524_v43 = vadd.f32 %v1523_v42, %v1522_v41  ;;  %v1525_v44 = vpop.f32.mrb[26].mxu0  ;;  %v1398_v40 = vunpack.c.l.bf16 (!%p1345_p11), %v1458_v27  ;;  %v1399_v41 = vunpack.c.h.bf16 (!%p1345_p11), %v1458_v27  ;;  %v1459_v42 = vld [vmem:[%s2006_s3 + $0x20] sm:$0xff] (!%p1345_p11)  }
 0x161   : > { %v1526_v45 = vpop.f32.mrb[27].mxu0 }
 0x162   : > { %v1527_v47 = vadd.f32 %v1526_v45, %v1525_v44  ;;  %v922_v48 = vadd.f32 %v1524_v43, %v921_v8  ;;  %v975_v8 = vld [vmem:[#allocation2 + $0x18] sm:$0xff] (!%p1345_p11)  ;;  %v1063_v45 = vmax.f32 (!%p1345_p11), %v1047_v35, 0.0 }
 0x163   : > { %v998_v12 = vadd.f32 (!%p1345_p11), %v1922_v3, %v975_v8 }
 0x164   : > { %v948_v50 = vadd.f32 %v922_v48, %v386_v46  ;;  %v925_v51 = vadd.f32 %v1527_v47, %v924_v13  ;;  %v1456_v13 = vld [vmem:[%s2006_s3 + $0x8] sm:$0xff] (!%p1345_p11)   ;;  %v1064_v46 = vmax.f32 (!%p1345_p11), %v1048_v36, 0.0  ;;  %v1003_v47 = vadd.f32 (!%p1345_p11), %v1922_v3, %v980_v32 }
 0x165   : > { %v1390_v16 = vunpack.c.l.bf16 (!%p1345_p11), %v1456_v13  ;;  %v1391_v17 = vunpack.c.h.bf16 (!%p1345_p11), %v1456_v13  ;;  %v982_v43 = vld [vmem:[#allocation2 + $0x50] sm:$0xff] (!%p1345_p11) }
 0x166   : > { %964 = vst [vmem:[#allocation2 + $0x60] sm:$0xff] %v948_v50  ;;  %v949_v52 = vadd.f32 %v925_v51, %v387_v49  ;;  %v1528_v53 = vpop.f32.mrb[28].mxu0  ;;  %v1460_v49 = vld [vmem:[%s2006_s3 + $0x28] sm:$0xff] (!%p1345_p11)   ;;  %v1049_v51 = vadd.f32 (!%p1345_p11), %v1398_v40, %v1001_v30 }
 0x167   : > { %v1529_v54 = vpop.f32.mrb[29].mxu0  ;;  %v1046_v29 = vadd.f32 (!%p1345_p11), %v1391_v17, %v998_v12  ;;  %v983_v48 = vld [vmem:[#allocation2 + $0x58] sm:$0xff] (!%p1345_p11)  ;;  %v1407_v4 = vunpack.c.h.bf16 (!%p1345_p11), %v1460_v49 }
 0x168   : > { %965 = vst [vmem:[#allocation2 + $0x68] sm:$0xff] %v949_v52  ;;  %v1530_v55 = vadd.f32 %v1529_v54, %v1528_v53  ;;  %v1531_v56 = vpop.f32.mrb[30].mxu0  ;;  %v1050_v52 = vadd.f32 (!%p1345_p11), %v1399_v41, %v1002_v31  ;;  %v1004_v53 = vadd.f32 (!%p1345_p11), %v1922_v3, %v981_v37  ;;  %v1462_v12 = vld [vmem:[%s2006_s3 + $0x38] sm:$0xff] (!%p1345_p11)  }
 0x169   : > { %v1532_v58 = vpop.f32.mrb[31].mxu0  ;;  %v1062_v39 = vmax.f32 (!%p1345_p11), %v1046_v29, 0.0  ;;  %v1415_v26 = vunpack.c.h.bf16 (!%p1345_p11), %v1462_v12 }
 0x16a   : > { %v930_v59 = vadd.f32 %v1580_v5, %v1530_v55  ;;  %v1533_v60 = vadd.f32 %v1532_v58, %v1531_v56  ;;  %971 = sbr.rel (%p1345_p11) target bundleno = 385 (0x181), region = 70  ;;  %v996_v5 = vadd.f32 (!%p1345_p11), %v1922_v3, %v973_v2  ;;  %v1429_v55 = vpack.c.bf16 (!%p1345_p11), %v1064_v46, %v1063_v45 }
 0x16b   : > { %v1402_v56 = vunpack.c.l.bf16 (!%p1345_p11), %v1459_v42  ;;  %v1005_v58 = vadd.f32 (!%p1345_p11), %v1922_v3, %v982_v43 }
 0x16c   : > { %v950_v62 = vadd.f32 %v930_v59, %v388_v57  ;;  %v933_v63 = vadd.f32 %v1581_v11, %v1533_v60  ;;  %v997_v11 = vadd.f32 (!%p1345_p11), %v1922_v3, %v974_v7  ;;  %v1044_v24 = vadd.f32 (!%p1345_p11), %v1387_v10, %v996_v5  ;;  %v1461_v60 = vld [vmem:[%s2006_s3 + $0x30] sm:$0xff] (!%p1345_p11)   ;;  %1464 = vst [vmem:[%s2007_s4 + $0x10] sm:$0xff] (!%p1345_p11), %v1429_v55  }
 0x16d   : > { %v984_v54 = vld [vmem:[#allocation2 + $0x60] sm:$0xff] (!%p1345_p11)  ;;  %v1403_v57 = vunpack.c.h.bf16 (!%p1345_p11), %v1459_v42  ;;  %v1051_v1 = vadd.f32 (!%p1345_p11), %v1402_v56, %v1003_v47 }
 0x16e   : > { %966 = vst [vmem:[#allocation2 + $0x70] sm:$0xff] %v950_v62  ;;  %v951_v0 = vadd.f32 %v933_v63, %v389_v61  ;;  %v1045_v28 = vadd.f32 (!%p1345_p11), %v1390_v16, %v997_v11  ;;  %v1060_v34 = vmax.f32 (!%p1345_p11), %v1044_v24, 0.0  ;;  %v1065_v61 = vmax.f32 (!%p1345_p11), %v1049_v51, 0.0 }
 0x16f   : > { %v985_v59 = vld [vmem:[#allocation2 + $0x68] sm:$0xff] (!%p1345_p11)  ;;  %v1066_v62 = vmax.f32 (!%p1345_p11), %v1050_v52, 0.0  ;;  %v1006_v63 = vadd.f32 (!%p1345_p11), %v1922_v3, %v983_v48  ;;  %v1052_v2 = vadd.f32 (!%p1345_p11), %v1403_v57, %v1004_v53  ;;  %v1007_v5 = vadd.f32 (!%p1345_p11), %v1922_v3, %v984_v54 }
 0x170   : > { %967 = vst [vmem:[#allocation2 + $0x78] sm:$0xff] %v951_v0  ;;  %v1061_v38 = vmax.f32 (!%p1345_p11), %v1045_v28, 0.0  ;;  %v1419_v44 = vpack.c.bf16 (!%p1345_p11), %v1060_v34, %v1059_v33  ;;  %v1406_v0 = vunpack.c.l.bf16 (!%p1345_p11), %v1460_v49  ;;  %v1008_v10 = vadd.f32 (!%p1345_p11), %v1922_v3, %v985_v59 }
 0x171   : > { %v1434_v8 = vpack.c.bf16 %v1066_v62, %v1065_v61  ;;  %v1410_v11 = vunpack.c.l.bf16 %v1461_v60  ;;  %v1067_v13 = vmax.f32 %v1051_v1, 0.0  ;;  %v1068_v14 = vmax.f32 %v1052_v2, 0.0 }
 0x172   : > { %v1424_v50 = vpack.c.bf16 %v1062_v39, %v1061_v38  ;;  %1420 = vst [vmem:[%s2007_s4] sm:$0xff] %v1419_v44   ;;  %v1053_v9 = vadd.f32 %v1406_v0, %v1005_v58  ;;  %v1054_v15 = vadd.f32 %v1407_v4, %v1006_v63  ;;  %v1411_v16 = vunpack.c.h.bf16 %v1461_v60 }
 0x173   : > { %1465 = vst [vmem:[%s2007_s4 + $0x18] sm:$0xff] %v1434_v8   ;;  %v1055_v18 = vadd.f32 %v1410_v11, %v1007_v5  ;;  %v1439_v21 = vpack.c.bf16 %v1068_v14, %v1067_v13  ;;  %v1414_v24 = vunpack.c.l.bf16 %v1462_v12 }
 0x174   : > { %1463 = vst [vmem:[%s2007_s4 + $0x8] sm:$0xff] %v1424_v50   ;;  %v1069_v17 = vmax.f32 %v1053_v9, 0.0  ;;  %v1070_v22 = vmax.f32 %v1054_v15, 0.0  ;;  %v1056_v23 = vadd.f32 %v1411_v16, %v1008_v10 }
 0x175   : > { %v986_v6 = vld [vmem:[#allocation2 + $0x70] sm:$0xff]  ;;  %v1071_v25 = vmax.f32 %v1055_v18, 0.0  ;;  %1466 = vst [vmem:[%s2007_s4 + $0x20] sm:$0xff] %v1439_v21  }
 0x176   : > { %v1009_v19 = vadd.f32 %v1922_v3, %v986_v6  ;;  %v1444_v27 = vpack.c.bf16 %v1070_v22, %v1069_v17  ;;  %v1072_v28 = vmax.f32 %v1056_v23, 0.0 }
 0x177   : > { %v987_v7 = vld [vmem:[#allocation2 + $0x78] sm:$0xff] }
 0x178   : > { %v1010_v20 = vadd.f32 %v1922_v3, %v987_v7  ;;  %v1057_v29 = vadd.f32 %v1414_v24, %v1009_v19  ;;  %1467 = vst [vmem:[%s2007_s4 + $0x28] sm:$0xff] %v1444_v27   ;;  %v1449_v31 = vpack.c.bf16 %v1072_v28, %v1071_v25 }
 0x17a   : > { %v1058_v30 = vadd.f32 %v1415_v26, %v1010_v20  ;;  %v1073_v3 = vmax.f32 %v1057_v29, 0.0  ;;  %1468 = vst [vmem:[%s2007_s4 + $0x30] sm:$0xff] %v1449_v31  }
 0x17c   : > { %v1074_v32 = vmax.f32 %v1058_v30, 0.0 }
 0x17e   : > { %v1454_v33 = vpack.c.bf16 %v1074_v32, %v1073_v3 }
 0x180   : > { %1469 = vst [vmem:[%s2007_s4 + $0x38] sm:$0xff] %v1454_v33  }
 0x181 PF: > { %s14_s19 = sadd.s32 1, %s1719_s19   ;;  %s2008_s15 = smov %s1707_s16 }
 0x182   : > { %p11_p12 = scmp.ge.s32.totalorder %s14_s19, 5   ;;  %s2009_s16 = smov %s1782_s23 }
 0x183   : > { %s2010_s17 = smov %s1715_s18  ;;  %s2011_s18 = smov %s2013_s20 }
 0x184   :  { %13 = sbr.rel (!%p11_p12) target bundleno = 3 (0x3), region = 117 }

// kernel: _lambda_.19
= control target key start
LH: loop header
LB: loop body
LE: loop exit
PB: predicated region body
PF: predicated region fallthrough
CT: control target
= control target key end

     0   :  { %s957_s0 = inlined_call_operand.vmem [shape: bf16[9,128,128], index: 0, kind: input, shape index: {}]   ;;  %s958_s1 = inlined_call_operand.vmem [shape: bf16[128,128], index: 1, kind: output, shape index: {}]  }
   0x1   :  { %v8_v0 = vld [vmem:[%s957_s0] sm:$0xf]  ;;  %v9_v1 = vld [vmem:[%s957_s0 + $0x4] sm:$0xf]  ;;  %v10_v18 = vld [vmem:[%s957_s0 + $0x8] sm:$0xf] }
   0x2   :  { %v308_v2 = vld [vmem:[%s957_s0 + $0x40] sm:$0xf]  ;;  %v309_v3 = vld [vmem:[%s957_s0 + $0x44] sm:$0xf]  ;;  %v11_v19 = vld [vmem:[%s957_s0 + $0xc] sm:$0xf] }
   0x3   :  { %v41_v4 = vmax.bf16 %v308_v2, %v8_v0  ;;  %v324_v5 = vld [vmem:[%s957_s0 + $0x80] sm:$0xf]  ;;  %v325_v6 = vld [vmem:[%s957_s0 + $0x84] sm:$0xf]  ;;  %v42_v7 = vmax.bf16 %v309_v3, %v9_v1  ;;  %v310_v20 = vld [vmem:[%s957_s0 + $0x48] sm:$0xf] }
   0x4   :  { %v340_v8 = vld [vmem:[%s957_s0 + $0xc0] sm:$0xf]  ;;  %v341_v10 = vld [vmem:[%s957_s0 + $0xc4] sm:$0xf]  ;;  %v311_v22 = vld [vmem:[%s957_s0 + $0x4c] sm:$0xf]  ;;  %v43_v23 = vmax.bf16 %v310_v20, %v10_v18 }
   0x5   :  { %v74_v9 = vmax.bf16 %v324_v5, %v41_v4  ;;  %v75_v11 = vmax.bf16 %v325_v6, %v42_v7  ;;  %v356_v12 = vld [vmem:[%s957_s0 + $0x100] sm:$0xf]  ;;  %v357_v14 = vld [vmem:[%s957_s0 + $0x104] sm:$0xf]  ;;  %v326_v24 = vld [vmem:[%s957_s0 + $0x88] sm:$0xf]  ;;  %v44_v28 = vmax.bf16 %v311_v22, %v11_v19 }
   0x6   :  { %v372_v15 = vld [vmem:[%s957_s0 + $0x140] sm:$0xf]  ;;  %v373_v16 = vld [vmem:[%s957_s0 + $0x144] sm:$0xf]  ;;  %v327_v25 = vld [vmem:[%s957_s0 + $0x8c] sm:$0xf]  ;;  %v76_v33 = vmax.bf16 %v326_v24, %v43_v23 }
   0x7   :  { %v107_v13 = vmax.bf16 %v340_v8, %v74_v9  ;;  %v108_v17 = vmax.bf16 %v341_v10, %v75_v11  ;;  %v388_v27 = vld [vmem:[%s957_s0 + $0x180] sm:$0xf]  ;;  %v342_v29 = vld [vmem:[%s957_s0 + $0xc8] sm:$0xf]  ;;  %v389_v31 = vld [vmem:[%s957_s0 + $0x184] sm:$0xf]  ;;  %v77_v38 = vmax.bf16 %v327_v25, %v44_v28 }
   0x8   :  { %v404_v32 = vld [vmem:[%s957_s0 + $0x1c0] sm:$0xf]  ;;  %v343_v34 = vld [vmem:[%s957_s0 + $0xcc] sm:$0xf]  ;;  %v405_v36 = vld [vmem:[%s957_s0 + $0x1c4] sm:$0xf]  ;;  %v109_v42 = vmax.bf16 %v342_v29, %v76_v33 }
   0x9   :  { %v140_v21 = vmax.bf16 %v356_v12, %v107_v13  ;;  %v141_v26 = vmax.bf16 %v357_v14, %v108_v17  ;;  %v420_v37 = vld [vmem:[%s957_s0 + $0x200] sm:$0xf]  ;;  %v358_v39 = vld [vmem:[%s957_s0 + $0x108] sm:$0xf]  ;;  %v421_v41 = vld [vmem:[%s957_s0 + $0x204] sm:$0xf]  ;;  %v110_v47 = vmax.bf16 %v343_v34, %v77_v38 }
   0xa   :  { %v359_v43 = vld [vmem:[%s957_s0 + $0x10c] sm:$0xf]  ;;  %v374_v44 = vld [vmem:[%s957_s0 + $0x148] sm:$0xf]  ;;  %v12_v48 = vld [vmem:[%s957_s0 + $0x10] sm:$0xf]  ;;  %v142_v52 = vmax.bf16 %v358_v39, %v109_v42 }
   0xb   :  { %v173_v30 = vmax.bf16 %v372_v15, %v140_v21  ;;  %v174_v35 = vmax.bf16 %v373_v16, %v141_v26  ;;  %v375_v45 = vld [vmem:[%s957_s0 + $0x14c] sm:$0xf]  ;;  %v13_v49 = vld [vmem:[%s957_s0 + $0x14] sm:$0xf]  ;;  %v312_v50 = vld [vmem:[%s957_s0 + $0x50] sm:$0xf]  ;;  %v143_v58 = vmax.bf16 %v359_v43, %v110_v47 }
   0xc   :  { %v313_v53 = vld [vmem:[%s957_s0 + $0x54] sm:$0xf]  ;;  %v45_v54 = vmax.bf16 %v312_v50, %v12_v48  ;;  %v328_v55 = vld [vmem:[%s957_s0 + $0x90] sm:$0xf]  ;;  %v390_v59 = vld [vmem:[%s957_s0 + $0x188] sm:$0xf]  ;;  %v175_v63 = vmax.bf16 %v374_v44, %v142_v52 }
   0xd   :  { %v206_v40 = vmax.bf16 %v388_v27, %v173_v30  ;;  %v207_v46 = vmax.bf16 %v389_v31, %v174_v35  ;;  %v329_v56 = vld [vmem:[%s957_s0 + $0x94] sm:$0xf]  ;;  %v46_v60 = vmax.bf16 %v313_v53, %v13_v49  ;;  %v344_v61 = vld [vmem:[%s957_s0 + $0xd0] sm:$0xf]  ;;  %v391_v0 = vld [vmem:[%s957_s0 + $0x18c] sm:$0xf]  ;;  %v176_v5 = vmax.bf16 %v375_v45, %v143_v58 }
   0xe   :  { %v406_v1 = vld [vmem:[%s957_s0 + $0x1c8] sm:$0xf]  ;;  %v78_v2 = vmax.bf16 %v328_v55, %v45_v54  ;;  %v345_v3 = vld [vmem:[%s957_s0 + $0xd4] sm:$0xf]  ;;  %v407_v6 = vld [vmem:[%s957_s0 + $0x1cc] sm:$0xf]  ;;  %v208_v10 = vmax.bf16 %v390_v59, %v175_v63 }
   0xf   :  { %v239_v51 = vmax.bf16 %v404_v32, %v206_v40  ;;  %v240_v57 = vmax.bf16 %v405_v36, %v207_v46  ;;  %v422_v7 = vld [vmem:[%s957_s0 + $0x208] sm:$0xf]  ;;  %v79_v8 = vmax.bf16 %v329_v56, %v46_v60  ;;  %v360_v9 = vld [vmem:[%s957_s0 + $0x110] sm:$0xf]  ;;  %v423_v11 = vld [vmem:[%s957_s0 + $0x20c] sm:$0xf]  ;;  %v209_v17 = vmax.bf16 %v391_v0, %v176_v5 }
  0x10   :  { %v111_v12 = vmax.bf16 %v344_v61, %v78_v2  ;;  %v361_v13 = vld [vmem:[%s957_s0 + $0x114] sm:$0xf]  ;;  %v376_v14 = vld [vmem:[%s957_s0 + $0x150] sm:$0xf]  ;;  %v14_v19 = vld [vmem:[%s957_s0 + $0x18] sm:$0xf]  ;;  %v241_v22 = vmax.bf16 %v406_v1, %v208_v10 }
  0x11   :  { %v272_v62 = vmax.bf16 %v420_v37, %v239_v51  ;;  %v273_v4 = vmax.bf16 %v421_v41, %v240_v57  ;;  %v377_v15 = vld [vmem:[%s957_s0 + $0x154] sm:$0xf]  ;;  %v112_v18 = vmax.bf16 %v345_v3, %v79_v8  ;;  %v15_v20 = vld [vmem:[%s957_s0 + $0x1c] sm:$0xf]  ;;  %v314_v21 = vld [vmem:[%s957_s0 + $0x58] sm:$0xf]  ;;  %v242_v28 = vmax.bf16 %v407_v6, %v209_v17 }
  0x12   :  { %v144_v23 = vmax.bf16 %v360_v9, %v111_v12  ;;  %v315_v24 = vld [vmem:[%s957_s0 + $0x5c] sm:$0xf]  ;;  %v47_v25 = vmax.bf16 %v314_v21, %v14_v19  ;;  %v330_v26 = vld [vmem:[%s957_s0 + $0x98] sm:$0xf]  ;;  %v392_v30 = vld [vmem:[%s957_s0 + $0x190] sm:$0xf]  ;;  %v274_v33 = vmax.bf16 %v422_v7, %v241_v22 }
  0x13   :  { %v476_v16 = vcombine.low %v272_v62, %v273_v4  ;;  %v331_v27 = vld [vmem:[%s957_s0 + $0x9c] sm:$0xf]  ;;  %v145_v29 = vmax.bf16 %v361_v13, %v112_v18  ;;  %v48_v31 = vmax.bf16 %v315_v24, %v15_v20  ;;  %v346_v32 = vld [vmem:[%s957_s0 + $0xd8] sm:$0xf]  ;;  %v393_v35 = vld [vmem:[%s957_s0 + $0x194] sm:$0xf]  ;;  %v275_v39 = vmax.bf16 %v423_v11, %v242_v28 }
  0x14   :  { %v177_v34 = vmax.bf16 %v376_v14, %v144_v23  ;;  %v408_v36 = vld [vmem:[%s957_s0 + $0x1d0] sm:$0xf]  ;;  %v80_v37 = vmax.bf16 %v330_v26, %v47_v25  ;;  %v347_v38 = vld [vmem:[%s957_s0 + $0xdc] sm:$0xf]  ;;  %v409_v41 = vld [vmem:[%s957_s0 + $0x1d4] sm:$0xf] }
  0x15   :  { %440 = vst [vmem:[%s958_s1] sm:$0xff] %v476_v16   ;;  %v178_v40 = vmax.bf16 %v377_v15, %v145_v29  ;;  %v424_v42 = vld [vmem:[%s957_s0 + $0x210] sm:$0xf]  ;;  %v81_v43 = vmax.bf16 %v331_v27, %v48_v31  ;;  %v362_v44 = vld [vmem:[%s957_s0 + $0x118] sm:$0xf]  ;;  %v425_v46 = vld [vmem:[%s957_s0 + $0x214] sm:$0xf]  ;;  %v477_v51 = vcombine.low %v274_v33, %v275_v39 }
  0x16   :  { %v210_v45 = vmax.bf16 %v392_v30, %v177_v34  ;;  %v113_v47 = vmax.bf16 %v346_v32, %v80_v37  ;;  %v363_v48 = vld [vmem:[%s957_s0 + $0x11c] sm:$0xf]  ;;  %v378_v49 = vld [vmem:[%s957_s0 + $0x158] sm:$0xf]  ;;  %v16_v54 = vld [vmem:[%s957_s0 + $0x20] sm:$0xf] }
  0x17   :  { %v379_v50 = vld [vmem:[%s957_s0 + $0x15c] sm:$0xf]  ;;  %v211_v52 = vmax.bf16 %v393_v35, %v178_v40  ;;  %v114_v53 = vmax.bf16 %v347_v38, %v81_v43  ;;  %v17_v55 = vld [vmem:[%s957_s0 + $0x24] sm:$0xf]  ;;  %v316_v56 = vld [vmem:[%s957_s0 + $0x60] sm:$0xf] }
  0x18   :  { %v243_v57 = vmax.bf16 %v408_v36, %v210_v45  ;;  %v146_v58 = vmax.bf16 %v362_v44, %v113_v47  ;;  %v317_v59 = vld [vmem:[%s957_s0 + $0x64] sm:$0xf]  ;;  %v49_v60 = vmax.bf16 %v316_v56, %v16_v54  ;;  %v332_v61 = vld [vmem:[%s957_s0 + $0xa0] sm:$0xf]  ;;  %478 = vst [vmem:[%s958_s1 + $0x8] sm:$0xff] %v477_v51  }
  0x19   :  { %v333_v62 = vld [vmem:[%s957_s0 + $0xa4] sm:$0xf]  ;;  %v244_v63 = vmax.bf16 %v409_v41, %v211_v52  ;;  %v147_v0 = vmax.bf16 %v363_v48, %v114_v53  ;;  %v394_v1 = vld [vmem:[%s957_s0 + $0x198] sm:$0xf]  ;;  %v50_v2 = vmax.bf16 %v317_v59, %v17_v55  ;;  %v348_v3 = vld [vmem:[%s957_s0 + $0xe0] sm:$0xf] }
  0x1a   :  { %v276_v4 = vmax.bf16 %v424_v42, %v243_v57  ;;  %v179_v5 = vmax.bf16 %v378_v49, %v146_v58  ;;  %v395_v6 = vld [vmem:[%s957_s0 + $0x19c] sm:$0xf]  ;;  %v410_v7 = vld [vmem:[%s957_s0 + $0x1d8] sm:$0xf]  ;;  %v82_v8 = vmax.bf16 %v332_v61, %v49_v60  ;;  %v349_v9 = vld [vmem:[%s957_s0 + $0xe4] sm:$0xf] }
  0x1b   :  { %v277_v10 = vmax.bf16 %v425_v46, %v244_v63  ;;  %v180_v11 = vmax.bf16 %v379_v50, %v147_v0  ;;  %v411_v12 = vld [vmem:[%s957_s0 + $0x1dc] sm:$0xf]  ;;  %v426_v13 = vld [vmem:[%s957_s0 + $0x218] sm:$0xf]  ;;  %v83_v14 = vmax.bf16 %v333_v62, %v50_v2  ;;  %v364_v15 = vld [vmem:[%s957_s0 + $0x120] sm:$0xf] }
  0x1c   :  { %v212_v16 = vmax.bf16 %v394_v1, %v179_v5  ;;  %v427_v17 = vld [vmem:[%s957_s0 + $0x21c] sm:$0xf]  ;;  %v115_v18 = vmax.bf16 %v348_v3, %v82_v8  ;;  %v365_v19 = vld [vmem:[%s957_s0 + $0x124] sm:$0xf]  ;;  %v380_v20 = vld [vmem:[%s957_s0 + $0x160] sm:$0xf] }
  0x1d   :  { %v381_v21 = vld [vmem:[%s957_s0 + $0x164] sm:$0xf]  ;;  %v479_v22 = vcombine.low %v276_v4, %v277_v10  ;;  %v213_v23 = vmax.bf16 %v395_v6, %v180_v11  ;;  %v116_v24 = vmax.bf16 %v349_v9, %v83_v14  ;;  %v18_v25 = vld [vmem:[%s957_s0 + $0x28] sm:$0xf]  ;;  %v19_v26 = vld [vmem:[%s957_s0 + $0x2c] sm:$0xf] }
  0x1e   :  { %v318_v27 = vld [vmem:[%s957_s0 + $0x68] sm:$0xf]  ;;  %v245_v28 = vmax.bf16 %v410_v7, %v212_v16  ;;  %v148_v29 = vmax.bf16 %v364_v15, %v115_v18  ;;  %v319_v30 = vld [vmem:[%s957_s0 + $0x6c] sm:$0xf]  ;;  %v396_v36 = vld [vmem:[%s957_s0 + $0x1a0] sm:$0xf] }
  0x1f   :  { %v51_v31 = vmax.bf16 %v318_v27, %v18_v25  ;;  %v334_v32 = vld [vmem:[%s957_s0 + $0xa8] sm:$0xf]  ;;  %v335_v33 = vld [vmem:[%s957_s0 + $0xac] sm:$0xf]  ;;  %480 = vst [vmem:[%s958_s1 + $0x10] sm:$0xff] %v479_v22   ;;  %v246_v34 = vmax.bf16 %v411_v12, %v213_v23  ;;  %v149_v35 = vmax.bf16 %v365_v19, %v116_v24  ;;  %v52_v37 = vmax.bf16 %v319_v30, %v19_v26 }
  0x20   :  { %v350_v38 = vld [vmem:[%s957_s0 + $0xe8] sm:$0xf]  ;;  %v278_v39 = vmax.bf16 %v426_v13, %v245_v28  ;;  %v181_v40 = vmax.bf16 %v380_v20, %v148_v29  ;;  %v397_v41 = vld [vmem:[%s957_s0 + $0x1a4] sm:$0xf]  ;;  %v412_v42 = vld [vmem:[%s957_s0 + $0x1e0] sm:$0xf] }
  0x21   :  { %v84_v43 = vmax.bf16 %v334_v32, %v51_v31  ;;  %v351_v44 = vld [vmem:[%s957_s0 + $0xec] sm:$0xf]  ;;  %v279_v45 = vmax.bf16 %v427_v17, %v246_v34  ;;  %v182_v46 = vmax.bf16 %v381_v21, %v149_v35  ;;  %v413_v47 = vld [vmem:[%s957_s0 + $0x1e4] sm:$0xf]  ;;  %v428_v48 = vld [vmem:[%s957_s0 + $0x220] sm:$0xf]  ;;  %v85_v49 = vmax.bf16 %v335_v33, %v52_v37 }
  0x22   :  { %v366_v50 = vld [vmem:[%s957_s0 + $0x128] sm:$0xf]  ;;  %v214_v51 = vmax.bf16 %v396_v36, %v181_v40  ;;  %v429_v52 = vld [vmem:[%s957_s0 + $0x224] sm:$0xf]  ;;  %v367_v54 = vld [vmem:[%s957_s0 + $0x12c] sm:$0xf] }
  0x23   :  { %v117_v53 = vmax.bf16 %v350_v38, %v84_v43  ;;  %v382_v55 = vld [vmem:[%s957_s0 + $0x168] sm:$0xf]  ;;  %v383_v56 = vld [vmem:[%s957_s0 + $0x16c] sm:$0xf]  ;;  %v481_v57 = vcombine.low %v278_v39, %v279_v45  ;;  %v215_v58 = vmax.bf16 %v397_v41, %v182_v46  ;;  %v118_v59 = vmax.bf16 %v351_v44, %v85_v49  ;;  %v20_v60 = vld [vmem:[%s957_s0 + $0x30] sm:$0xf] }
  0x24   :  { %v21_v61 = vld [vmem:[%s957_s0 + $0x34] sm:$0xf]  ;;  %v320_v62 = vld [vmem:[%s957_s0 + $0x70] sm:$0xf]  ;;  %v247_v63 = vmax.bf16 %v412_v42, %v214_v51  ;;  %v398_v7 = vld [vmem:[%s957_s0 + $0x1a8] sm:$0xf] }
  0x25   :  { %v150_v0 = vmax.bf16 %v366_v50, %v117_v53  ;;  %v321_v1 = vld [vmem:[%s957_s0 + $0x74] sm:$0xf]  ;;  %v53_v2 = vmax.bf16 %v320_v62, %v20_v60  ;;  %v336_v3 = vld [vmem:[%s957_s0 + $0xb0] sm:$0xf]  ;;  %482 = vst [vmem:[%s958_s1 + $0x18] sm:$0xff] %v481_v57   ;;  %v248_v5 = vmax.bf16 %v413_v47, %v215_v58  ;;  %v151_v6 = vmax.bf16 %v367_v54, %v118_v59 }
  0x26   :  { %v337_v4 = vld [vmem:[%s957_s0 + $0xb4] sm:$0xf]  ;;  %v54_v8 = vmax.bf16 %v321_v1, %v21_v61  ;;  %v352_v9 = vld [vmem:[%s957_s0 + $0xf0] sm:$0xf]  ;;  %v280_v10 = vmax.bf16 %v428_v48, %v247_v63  ;;  %v399_v12 = vld [vmem:[%s957_s0 + $0x1ac] sm:$0xf] }
  0x27   :  { %v183_v11 = vmax.bf16 %v382_v55, %v150_v0  ;;  %v414_v13 = vld [vmem:[%s957_s0 + $0x1e8] sm:$0xf]  ;;  %v86_v14 = vmax.bf16 %v336_v3, %v53_v2  ;;  %v353_v15 = vld [vmem:[%s957_s0 + $0xf4] sm:$0xf]  ;;  %v281_v16 = vmax.bf16 %v429_v52, %v248_v5  ;;  %v184_v17 = vmax.bf16 %v383_v56, %v151_v6  ;;  %v415_v18 = vld [vmem:[%s957_s0 + $0x1ec] sm:$0xf] }
  0x28   :  { %v430_v19 = vld [vmem:[%s957_s0 + $0x228] sm:$0xf]  ;;  %v87_v20 = vmax.bf16 %v337_v4, %v54_v8  ;;  %v368_v21 = vld [vmem:[%s957_s0 + $0x130] sm:$0xf]  ;;  %v431_v23 = vld [vmem:[%s957_s0 + $0x22c] sm:$0xf] }
  0x29   :  { %v216_v22 = vmax.bf16 %v398_v7, %v183_v11  ;;  %v119_v24 = vmax.bf16 %v352_v9, %v86_v14  ;;  %v369_v25 = vld [vmem:[%s957_s0 + $0x134] sm:$0xf]  ;;  %v384_v26 = vld [vmem:[%s957_s0 + $0x170] sm:$0xf]  ;;  %v483_v28 = vcombine.low %v280_v10, %v281_v16  ;;  %v217_v29 = vmax.bf16 %v399_v12, %v184_v17  ;;  %v22_v31 = vld [vmem:[%s957_s0 + $0x38] sm:$0xf] }
  0x2a   :  { %v385_v27 = vld [vmem:[%s957_s0 + $0x174] sm:$0xf]  ;;  %v120_v30 = vmax.bf16 %v353_v15, %v87_v20  ;;  %v23_v32 = vld [vmem:[%s957_s0 + $0x3c] sm:$0xf]  ;;  %v322_v33 = vld [vmem:[%s957_s0 + $0x78] sm:$0xf] }
  0x2b   :  { %v249_v34 = vmax.bf16 %v414_v13, %v216_v22  ;;  %v152_v35 = vmax.bf16 %v368_v21, %v119_v24  ;;  %v323_v36 = vld [vmem:[%s957_s0 + $0x7c] sm:$0xf]  ;;  %v55_v37 = vmax.bf16 %v322_v33, %v22_v31  ;;  %v338_v38 = vld [vmem:[%s957_s0 + $0xb8] sm:$0xf]  ;;  %484 = vst [vmem:[%s958_s1 + $0x20] sm:$0xff] %v483_v28   ;;  %v250_v40 = vmax.bf16 %v415_v18, %v217_v29 }
  0x2c   :  { %v339_v39 = vld [vmem:[%s957_s0 + $0xbc] sm:$0xf]  ;;  %v153_v41 = vmax.bf16 %v369_v25, %v120_v30  ;;  %v400_v42 = vld [vmem:[%s957_s0 + $0x1b0] sm:$0xf]  ;;  %v56_v43 = vmax.bf16 %v323_v36, %v23_v32  ;;  %v354_v44 = vld [vmem:[%s957_s0 + $0xf8] sm:$0xf] }
  0x2d   :  { %v282_v45 = vmax.bf16 %v430_v19, %v249_v34  ;;  %v185_v46 = vmax.bf16 %v384_v26, %v152_v35  ;;  %v401_v47 = vld [vmem:[%s957_s0 + $0x1b4] sm:$0xf]  ;;  %v88_v48 = vmax.bf16 %v338_v38, %v55_v37  ;;  %v355_v49 = vld [vmem:[%s957_s0 + $0xfc] sm:$0xf]  ;;  %v283_v50 = vmax.bf16 %v431_v23, %v250_v40  ;;  %v416_v52 = vld [vmem:[%s957_s0 + $0x1f0] sm:$0xf] }
  0x2e   :  { %v186_v51 = vmax.bf16 %v385_v27, %v153_v41  ;;  %v89_v53 = vmax.bf16 %v339_v39, %v56_v43  ;;  %v370_v54 = vld [vmem:[%s957_s0 + $0x138] sm:$0xf]  ;;  %v417_v56 = vld [vmem:[%s957_s0 + $0x1f4] sm:$0xf]  ;;  %v371_v58 = vld [vmem:[%s957_s0 + $0x13c] sm:$0xf] }
  0x2f   :  { %v218_v55 = vmax.bf16 %v400_v42, %v185_v46  ;;  %v121_v57 = vmax.bf16 %v354_v44, %v88_v48  ;;  %v485_v59 = vcombine.low %v282_v45, %v283_v50  ;;  %v432_v61 = vld [vmem:[%s957_s0 + $0x230] sm:$0xf]  ;;  %v386_v63 = vld [vmem:[%s957_s0 + $0x178] sm:$0xf]  ;;  %v433_v1 = vld [vmem:[%s957_s0 + $0x234] sm:$0xf] }
  0x30   :  { %v219_v60 = vmax.bf16 %v401_v47, %v186_v51  ;;  %v122_v62 = vmax.bf16 %v355_v49, %v89_v53  ;;  %v387_v3 = vld [vmem:[%s957_s0 + $0x17c] sm:$0xf]  ;;  %v402_v6 = vld [vmem:[%s957_s0 + $0x1b8] sm:$0xf] }
  0x31   :  { %v251_v0 = vmax.bf16 %v416_v52, %v218_v55  ;;  %v154_v2 = vmax.bf16 %v370_v54, %v121_v57  ;;  %486 = vst [vmem:[%s958_s1 + $0x28] sm:$0xff] %v485_v59   ;;  %v403_v9 = vld [vmem:[%s957_s0 + $0x1bc] sm:$0xf]  ;;  %v418_v12 = vld [vmem:[%s957_s0 + $0x1f8] sm:$0xf] }
  0x32   :  { %v252_v4 = vmax.bf16 %v417_v56, %v219_v60  ;;  %v155_v5 = vmax.bf16 %v371_v58, %v122_v62  ;;  %v419_v14 = vld [vmem:[%s957_s0 + $0x1fc] sm:$0xf]  ;;  %v434_v17 = vld [vmem:[%s957_s0 + $0x238] sm:$0xf] }
  0x33   :  { %v284_v7 = vmax.bf16 %v432_v61, %v251_v0  ;;  %v187_v8 = vmax.bf16 %v386_v63, %v154_v2  ;;  %v435_v19 = vld [vmem:[%s957_s0 + $0x23c] sm:$0xf] }
  0x34   :  { %v285_v10 = vmax.bf16 %v433_v1, %v252_v4  ;;  %v188_v11 = vmax.bf16 %v387_v3, %v155_v5 }
  0x35   :  { %v220_v13 = vmax.bf16 %v402_v6, %v187_v8 }
  0x36   :  { %v487_v15 = vcombine.low %v284_v7, %v285_v10  ;;  %v221_v16 = vmax.bf16 %v403_v9, %v188_v11 }
  0x37   :  { %v253_v18 = vmax.bf16 %v418_v12, %v220_v13 }
  0x38   :  { %488 = vst [vmem:[%s958_s1 + $0x30] sm:$0xff] %v487_v15   ;;  %v254_v20 = vmax.bf16 %v419_v14, %v221_v16 }
  0x39   :  { %v286_v21 = vmax.bf16 %v434_v17, %v253_v18 }
  0x3a   :  { %v287_v22 = vmax.bf16 %v435_v19, %v254_v20 }
  0x3c   :  { %v489_v23 = vcombine.low %v286_v21, %v287_v22 }
  0x3e   :  { %490 = vst [vmem:[%s958_s1 + $0x38] sm:$0xff] %v489_v23  }

// kernel: _lambda_.18
= control target key start
LH: loop header
LB: loop body
LE: loop exit
PB: predicated region body
PF: predicated region fallthrough
CT: control target
= control target key end

     0   :  { %s1675_s12 = smov 0   ;;  %s1677_s13 = smov 0   ;;  %s1849_s0 = inlined_call_operand.vmem [shape: bf16[512,256], index: 0, kind: input, shape index: {}]   ;;  %s1850_s1 = inlined_call_operand.vmem [shape: bf16[256,128], index: 1, kind: input, shape index: {}]   ;;  %s1851_s2 = inlined_call_operand.vmem [shape: f32[1,128], index: 2, kind: input, shape index: {}]   ;;  %s1852_s3 = inlined_call_operand.vmem [shape: bf16[512,128], index: 3, kind: output, shape index: {}]  }
   0x1   :  { %s1679_s14 = smov 0  }
   0x2 LB: > { %s25_s15 = sadd.s32 1, %s1649_s13  ;;  %p1198_p0 = scmp.ge.s32.totalorder %s1653_s14, 1  ;;  %s1653_s14 = sphi %s1679_s14, %s13_s14   ;;  %s1649_s13 = sphi %s1677_s13, %s1854_s13   ;;  %s1645_s12 = sphi %s1675_s12, %s1853_s12  }
   0x3   : > { %p27_p1 = scmp.ge.s32.totalorder %s25_s15, 2  ;;  %p169_p2 = scmp.lt.s32.totalorder %s1653_s14, 3 }
   0x5   : > { %s1856_s15 = smov (%p27_p1, %s25_s15), 0  ;;  %p170_p3 = pnand %p1198_p0, %p169_p2 }
   0x6   : > { %v1567_v0 = vld [vmem:[%s1850_s1 + $0x40] sm:$0xff] (!%p170_p3)   ;;  %s1199_s18 = sshll.u32 (!%p170_p3), %s1645_s12, 5  ;;  %v1569_v2 = vld [vmem:[%s1850_s1 + $0x48] sm:$0xff] (!%p170_p3)   ;;  %v1571_v4 = vld [vmem:[%s1850_s1 + $0x50] sm:$0xff] (!%p170_p3)  }
   0x7   : > { %173 = sbr.rel (%p170_p3) target bundleno = 320 (0x140), region = 32  ;;  %v1568_v1 = vld [vmem:[%s1850_s1] sm:$0xff] (!%p170_p3)   ;;  %1415 = vmatprep.subr.bf16.mxu0 (!%p170_p3), %v1567_v0  ;;  %1527 = vmatprep.subr.bf16.mxu1 (!%p170_p3), %v1567_v0  ;;  %v1570_v3 = vld [vmem:[%s1850_s1 + $0x8] sm:$0xff] (!%p170_p3)   ;;  %p205_p4 = scmp.lt.s32.totalorder (!%p170_p3), %s1199_s18, 63  ;;  %v1572_v5 = vld [vmem:[%s1850_s1 + $0x10] sm:$0xff] (!%p170_p3)  }
   0x8   : > { %1416 = vmatpush3.bf16.msra.mxu0 (!%p170_p3), %v1568_v1  ;;  %1535 = vmatpush3.bf16.msra.mxu1 (!%p170_p3), %v1568_v1  ;;  %v1573_v6 = vld [vmem:[%s1850_s1 + $0x58] sm:$0xff] (!%p170_p3)   ;;  %v1575_v8 = vld [vmem:[%s1850_s1 + $0x60] sm:$0xff] (!%p170_p3)   ;;  %v1577_v10 = vld [vmem:[%s1850_s1 + $0x68] sm:$0xff] (!%p170_p3)  }
   0x9   : > { %1417 = vmatprep.subr.bf16.mxu0 (!%p170_p3), %v1569_v2  ;;  %1528 = vmatprep.subr.bf16.mxu1 (!%p170_p3), %v1569_v2  ;;  %v1574_v7 = vld [vmem:[%s1850_s1 + $0x18] sm:$0xff] (!%p170_p3)   ;;  %v1576_v9 = vld [vmem:[%s1850_s1 + $0x20] sm:$0xff] (!%p170_p3)   ;;  %v1578_v13 = vld [vmem:[%s1850_s1 + $0x28] sm:$0xff] (!%p170_p3)  }
   0xa   : > { %v1579_v14 = vld [vmem:[%s1850_s1 + $0x70] sm:$0xff] (!%p170_p3)   ;;  %v1581_v16 = vld [vmem:[%s1850_s1 + $0x78] sm:$0xff] (!%p170_p3)   ;;  %v1784_v51 = vld [vmem:[%s1851_s2] ss:$0 sm:$0xff] (!%p170_p3) }
   0xb   : > { %v1580_v15 = vld [vmem:[%s1850_s1 + $0x30] sm:$0xff] (!%p170_p3)   ;;  %v1582_v17 = vld [vmem:[%s1850_s1 + $0x38] sm:$0xff] (!%p170_p3)  }
   0xc   : > { %1418 = vmatpush3.bf16.msra.mxu0 (!%p170_p3), %v1570_v3  ;;  %1536 = vmatpush3.bf16.msra.mxu1 (!%p170_p3), %v1570_v3 }
   0xd   : > { %1419 = vmatprep.subr.bf16.mxu0 (!%p170_p3), %v1571_v4  ;;  %1529 = vmatprep.subr.bf16.mxu1 (!%p170_p3), %v1571_v4 }
   0xe   : > { %s1858_s18 = smov (!%p205_p4, %s1199_s18), 63 }
   0xf   : > { %s1287_s6 = sshll.u32 %s1858_s18, 3  ;;  %s1203_s5 = sshll.u32 %s1858_s18, 2 }
  0x10   : > { %1420 = vmatpush3.bf16.msra.mxu0 %v1572_v5  ;;  %1537 = vmatpush3.bf16.msra.mxu1 %v1572_v5  ;;  %s1726_s11 = scalar_lea.vmem %s1849_s0, %s1287_s6  ;;  %s1794_s8 = scalar_lea.vmem %s1852_s3, %s1203_s5 }
  0x11   : > { %1421 = vmatprep.subr.bf16.mxu0 %v1573_v6  ;;  %1530 = vmatprep.subr.bf16.mxu1 %v1573_v6  ;;  %v1585_v11 = vld [vmem:[%s1726_s11 + $0x4] ss:$8 sps:$4 sm:$0xff]   ;;  %v1583_v18 = vld [vmem:[%s1726_s11] ss:$8 sps:$4 sm:$0xff]   ;;  %v1589_v20 = vld [vmem:[%s1726_s11 + $0x14] ss:$8 sps:$4 sm:$0xff]  }
  0x12   : > { %v1588_v12 = vld [vmem:[%s1726_s11 + $0x84] ss:$8 sps:$4 sm:$0xff]   ;;  %648 = vmatprep.mubr.bf16.mxu0 %v1585_v11  ;;  %v1586_v19 = vld [vmem:[%s1726_s11 + $0x80] ss:$8 sps:$4 sm:$0xff]   ;;  %v1591_v21 = vld [vmem:[%s1726_s11 + $0x94] ss:$8 sps:$4 sm:$0xff]  }
  0x13   : > { %712 = vmatprep.mubr.bf16.mxu1 %v1588_v12  ;;  %v1593_v22 = vld [vmem:[%s1726_s11 + $0x10] ss:$8 sps:$4 sm:$0xff]   ;;  %v1595_v24 = vld [vmem:[%s1726_s11 + $0x24] ss:$8 sps:$4 sm:$0xff]   ;;  %v1599_v26 = vld [vmem:[%s1726_s11 + $0x20] ss:$8 sps:$4 sm:$0xff]  }
  0x14   : > { %1422 = vmatpush3.bf16.msra.mxu0 %v1574_v7  ;;  %1538 = vmatpush3.bf16.msra.mxu1 %v1574_v7  ;;  %v1594_v23 = vld [vmem:[%s1726_s11 + $0x90] ss:$8 sps:$4 sm:$0xff]   ;;  %v1597_v25 = vld [vmem:[%s1726_s11 + $0xa4] ss:$8 sps:$4 sm:$0xff]   ;;  %v1600_v27 = vld [vmem:[%s1726_s11 + $0xa0] ss:$8 sps:$4 sm:$0xff]  }
  0x15   : > { %1423 = vmatprep.subr.bf16.mxu0 %v1575_v8  ;;  %1531 = vmatprep.subr.bf16.mxu1 %v1575_v8  ;;  %v1601_v28 = vld [vmem:[%s1726_s11 + $0x34] ss:$8 sps:$4 sm:$0xff]   ;;  %v1605_v30 = vld [vmem:[%s1726_s11 + $0x30] ss:$8 sps:$4 sm:$0xff]   ;;  %v1607_v32 = vld [vmem:[%s1726_s11 + $0x44] ss:$8 sps:$4 sm:$0xff]  }
  0x16   : > { %v1603_v29 = vld [vmem:[%s1726_s11 + $0xb4] ss:$8 sps:$4 sm:$0xff]   ;;  %v1606_v31 = vld [vmem:[%s1726_s11 + $0xb0] ss:$8 sps:$4 sm:$0xff]   ;;  %v1609_v33 = vld [vmem:[%s1726_s11 + $0xc4] ss:$8 sps:$4 sm:$0xff]  }
  0x17   : > { %v1611_v34 = vld [vmem:[%s1726_s11 + $0x40] ss:$8 sps:$4 sm:$0xff]   ;;  %v1613_v36 = vld [vmem:[%s1726_s11 + $0x54] ss:$8 sps:$4 sm:$0xff]   ;;  %v1617_v38 = vld [vmem:[%s1726_s11 + $0x50] ss:$8 sps:$4 sm:$0xff]  }
  0x18   : > { %1424 = vmatpush3.bf16.msra.mxu0 %v1576_v9  ;;  %1539 = vmatpush3.bf16.msra.mxu1 %v1576_v9  ;;  %v1612_v35 = vld [vmem:[%s1726_s11 + $0xc0] ss:$8 sps:$4 sm:$0xff]   ;;  %v1615_v37 = vld [vmem:[%s1726_s11 + $0xd4] ss:$8 sps:$4 sm:$0xff]   ;;  %v1618_v39 = vld [vmem:[%s1726_s11 + $0xd0] ss:$8 sps:$4 sm:$0xff]  }
  0x19   : > { %1425 = vmatprep.subr.bf16.mxu0 %v1577_v10  ;;  %1532 = vmatprep.subr.bf16.mxu1 %v1577_v10  ;;  %v1619_v40 = vld [vmem:[%s1726_s11 + $0x64] ss:$8 sps:$4 sm:$0xff]   ;;  %v1623_v42 = vld [vmem:[%s1726_s11 + $0x60] ss:$8 sps:$4 sm:$0xff]   ;;  %v1625_v44 = vld [vmem:[%s1726_s11 + $0x74] ss:$8 sps:$4 sm:$0xff]  }
  0x1a   : > { %v1621_v41 = vld [vmem:[%s1726_s11 + $0xe4] ss:$8 sps:$4 sm:$0xff]   ;;  %v1624_v43 = vld [vmem:[%s1726_s11 + $0xe0] ss:$8 sps:$4 sm:$0xff]   ;;  %v1627_v45 = vld [vmem:[%s1726_s11 + $0xf4] ss:$8 sps:$4 sm:$0xff]  }
  0x1b   : > { %v1629_v46 = vld [vmem:[%s1726_s11 + $0x70] ss:$8 sps:$4 sm:$0xff]  }
  0x1c   : > { %1426 = vmatpush3.bf16.msra.mxu0 %v1578_v13  ;;  %1540 = vmatpush3.bf16.msra.mxu1 %v1578_v13  ;;  %v1630_v47 = vld [vmem:[%s1726_s11 + $0xf0] ss:$8 sps:$4 sm:$0xff]  }
  0x1d   : > { %1427 = vmatprep.subr.bf16.mxu0 %v1579_v14  ;;  %1533 = vmatprep.subr.bf16.mxu1 %v1579_v14 }
  0x20   : > { %1428 = vmatpush3.bf16.msra.mxu0 %v1580_v15  ;;  %1541 = vmatpush3.bf16.msra.mxu1 %v1580_v15 }
  0x21   : > { %1429 = vmatprep.subr.bf16.mxu0 %v1581_v16  ;;  %1534 = vmatprep.subr.bf16.mxu1 %v1581_v16 }
  0x24   : > { %1430 = vmatpush3.bf16.msra.mxu0 %v1582_v17  ;;  %1542 = vmatpush3.bf16.msra.mxu1 %v1582_v17 }
  0x27   : > { %649 = vmatmul.mubr.bf16.vlgmr.msra.gmra.mrb[0].mxu0 %v1583_v18  ;;  %713 = vmatmul.mubr.bf16.vlgmr.msra.gmra.mrb[0].mxu1 %v1586_v19 }
  0x28   : > { %656 = vmatprep.mubr.bf16.mxu0 %v1589_v20  ;;  %720 = vmatprep.mubr.bf16.mxu1 %v1591_v21 }
  0x2f   : > { %657 = vmatmul.mubr.bf16.gmra.mrb[4].mxu0 %v1593_v22  ;;  %721 = vmatmul.mubr.bf16.gmra.mrb[4].mxu1 %v1594_v23 }
  0x30   : > { %664 = vmatprep.mubr.bf16.mxu0 %v1595_v24  ;;  %728 = vmatprep.mubr.bf16.mxu1 %v1597_v25 }
  0x37   : > { %665 = vmatmul.mubr.bf16.gmra.mrb[8].mxu0 %v1599_v26  ;;  %729 = vmatmul.mubr.bf16.gmra.mrb[8].mxu1 %v1600_v27 }
  0x38   : > { %672 = vmatprep.mubr.bf16.mxu0 %v1601_v28  ;;  %736 = vmatprep.mubr.bf16.mxu1 %v1603_v29 }
  0x3f   : > { %673 = vmatmul.mubr.bf16.gmra.mrb[12].mxu0 %v1605_v30  ;;  %737 = vmatmul.mubr.bf16.gmra.mrb[12].mxu1 %v1606_v31 }
  0x40   : > { %680 = vmatprep.mubr.bf16.mxu0 %v1607_v32  ;;  %744 = vmatprep.mubr.bf16.mxu1 %v1609_v33 }
  0x47   : > { %681 = vmatmul.mubr.bf16.gmra.mrb[16].mxu0 %v1611_v34  ;;  %745 = vmatmul.mubr.bf16.gmra.mrb[16].mxu1 %v1612_v35 }
  0x48   : > { %688 = vmatprep.mubr.bf16.mxu0 %v1613_v36  ;;  %752 = vmatprep.mubr.bf16.mxu1 %v1615_v37 }
  0x4f   : > { %689 = vmatmul.mubr.bf16.gmra.mrb[20].mxu0 %v1617_v38  ;;  %753 = vmatmul.mubr.bf16.gmra.mrb[20].mxu1 %v1618_v39 }
  0x50   : > { %696 = vmatprep.mubr.bf16.mxu0 %v1619_v40  ;;  %760 = vmatprep.mubr.bf16.mxu1 %v1621_v41 }
  0x57   : > { %697 = vmatmul.mubr.bf16.gmra.mrb[24].mxu0 %v1623_v42  ;;  %761 = vmatmul.mubr.bf16.gmra.mrb[24].mxu1 %v1624_v43 }
  0x58   : > { %704 = vmatprep.mubr.bf16.mxu0 %v1625_v44  ;;  %768 = vmatprep.mubr.bf16.mxu1 %v1627_v45 }
  0x5f   : > { %705 = vmatmul.mubr.bf16.gmra.mrb[28].mxu0 %v1629_v46  ;;  %769 = vmatmul.mubr.bf16.gmra.mrb[28].mxu1 %v1630_v47 }
  0xfa   : > { %v1431_v48 = vpop.f32.mrb[0].mxu0  ;;  %v1479_v49 = vpop.f32.mrb[0].mxu1 }
  0xfb   : > { %v1432_v50 = vpop.f32.mrb[1].mxu0  ;;  %v1480_v52 = vpop.f32.mrb[1].mxu1 }
  0xfc   : > { %v1433_v53 = vadd.f32 %v1432_v50, %v1431_v48  ;;  %v1481_v54 = vadd.f32 %v1480_v52, %v1479_v49  ;;  %v1434_v55 = vpop.f32.mrb[2].mxu0  ;;  %v1482_v56 = vpop.f32.mrb[2].mxu1 }
  0xfd   : > { %v1435_v57 = vpop.f32.mrb[3].mxu0  ;;  %v1483_v58 = vpop.f32.mrb[3].mxu1 }
  0xfe   : > { %v883_v59 = vadd.f32 %v1433_v53, %v1784_v51  ;;  %v899_v60 = vadd.f32 %v1481_v54, %v1784_v51  ;;  %v1436_v61 = vadd.f32 %v1435_v57, %v1434_v55  ;;  %v1484_v62 = vadd.f32 %v1483_v58, %v1482_v56 }
 0x100   : > { %v884_v63 = vadd.f32 %v1436_v61, %v1784_v51  ;;  %v900_v0 = vadd.f32 %v1484_v62, %v1784_v51  ;;  %v915_v1 = vmax.f32 %v883_v59, 0.0  ;;  %v931_v2 = vmax.f32 %v899_v60, 0.0 }
 0x102   : > { %v916_v3 = vmax.f32 %v884_v63, 0.0  ;;  %v932_v4 = vmax.f32 %v900_v0, 0.0  ;;  %v1437_v5 = vpop.f32.mrb[4].mxu0  ;;  %v1485_v6 = vpop.f32.mrb[4].mxu1 }
 0x103   : > { %v1438_v7 = vpop.f32.mrb[5].mxu0  ;;  %v1486_v8 = vpop.f32.mrb[5].mxu1 }
 0x104   : > { %v1323_v9 = vpack.c.bf16 %v916_v3, %v915_v1  ;;  %v1363_v10 = vpack.c.bf16 %v932_v4, %v931_v2  ;;  %v1439_v11 = vadd.f32 %v1438_v7, %v1437_v5  ;;  %v1487_v12 = vadd.f32 %v1486_v8, %v1485_v6  ;;  %v1440_v13 = vpop.f32.mrb[6].mxu0  ;;  %v1488_v14 = vpop.f32.mrb[6].mxu1 }
 0x105   : > { %v1441_v15 = vpop.f32.mrb[7].mxu0  ;;  %v1489_v16 = vpop.f32.mrb[7].mxu1 }
 0x106   : > { %1324 = vst [vmem:[%s1794_s8] sm:$0xff] %v1323_v9   ;;  %1407 = vst [vmem:[%s1794_s8 + $0x40] sm:$0xff] %v1363_v10   ;;  %v885_v17 = vadd.f32 %v1439_v11, %v1784_v51  ;;  %v901_v18 = vadd.f32 %v1487_v12, %v1784_v51  ;;  %v1442_v19 = vadd.f32 %v1441_v15, %v1440_v13 }
 0x107   : > { %v1490_v20 = vadd.f32 %v1489_v16, %v1488_v14 }
 0x108   : > { %v886_v21 = vadd.f32 %v1442_v19, %v1784_v51  ;;  %v917_v23 = vmax.f32 %v885_v17, 0.0  ;;  %v933_v24 = vmax.f32 %v901_v18, 0.0 }
 0x109   : > { %v902_v22 = vadd.f32 %v1490_v20, %v1784_v51 }
 0x10a   : > { %v918_v25 = vmax.f32 %v886_v21, 0.0  ;;  %v1443_v27 = vpop.f32.mrb[8].mxu0  ;;  %v1491_v28 = vpop.f32.mrb[8].mxu1 }
 0x10b   : > { %v934_v26 = vmax.f32 %v902_v22, 0.0  ;;  %v1444_v29 = vpop.f32.mrb[9].mxu0  ;;  %v1492_v30 = vpop.f32.mrb[9].mxu1 }
 0x10c   : > { %v1328_v31 = vpack.c.bf16 %v918_v25, %v917_v23  ;;  %v1445_v33 = vadd.f32 %v1444_v29, %v1443_v27  ;;  %v1493_v34 = vadd.f32 %v1492_v30, %v1491_v28  ;;  %v1446_v35 = vpop.f32.mrb[10].mxu0  ;;  %v1494_v36 = vpop.f32.mrb[10].mxu1 }
 0x10d   : > { %v1368_v32 = vpack.c.bf16 %v934_v26, %v933_v24  ;;  %v1447_v37 = vpop.f32.mrb[11].mxu0  ;;  %v1495_v38 = vpop.f32.mrb[11].mxu1 }
 0x10e   : > { %1400 = vst [vmem:[%s1794_s8 + $0x8] sm:$0xff] %v1328_v31   ;;  %v887_v39 = vadd.f32 %v1445_v33, %v1784_v51  ;;  %v903_v40 = vadd.f32 %v1493_v34, %v1784_v51  ;;  %v1448_v41 = vadd.f32 %v1447_v37, %v1446_v35  ;;  %v1496_v42 = vadd.f32 %v1495_v38, %v1494_v36 }
 0x10f   : > { %1408 = vst [vmem:[%s1794_s8 + $0x48] sm:$0xff] %v1368_v32  }
 0x110   : > { %v888_v43 = vadd.f32 %v1448_v41, %v1784_v51  ;;  %v904_v44 = vadd.f32 %v1496_v42, %v1784_v51  ;;  %v919_v45 = vmax.f32 %v887_v39, 0.0  ;;  %v935_v46 = vmax.f32 %v903_v40, 0.0 }
 0x112   : > { %v920_v47 = vmax.f32 %v888_v43, 0.0  ;;  %v936_v48 = vmax.f32 %v904_v44, 0.0  ;;  %v1449_v49 = vpop.f32.mrb[12].mxu0  ;;  %v1497_v50 = vpop.f32.mrb[12].mxu1 }
 0x113   : > { %v1450_v52 = vpop.f32.mrb[13].mxu0  ;;  %v1498_v53 = vpop.f32.mrb[13].mxu1 }
 0x114   : > { %v1333_v54 = vpack.c.bf16 %v920_v47, %v919_v45  ;;  %v1373_v55 = vpack.c.bf16 %v936_v48, %v935_v46  ;;  %v1451_v56 = vadd.f32 %v1450_v52, %v1449_v49  ;;  %v1499_v57 = vadd.f32 %v1498_v53, %v1497_v50  ;;  %v1452_v58 = vpop.f32.mrb[14].mxu0  ;;  %v1500_v59 = vpop.f32.mrb[14].mxu1 }
 0x115   : > { %v1453_v60 = vpop.f32.mrb[15].mxu0  ;;  %v1501_v61 = vpop.f32.mrb[15].mxu1 }
 0x116   : > { %1401 = vst [vmem:[%s1794_s8 + $0x10] sm:$0xff] %v1333_v54   ;;  %1409 = vst [vmem:[%s1794_s8 + $0x50] sm:$0xff] %v1373_v55   ;;  %v889_v62 = vadd.f32 %v1451_v56, %v1784_v51  ;;  %v905_v63 = vadd.f32 %v1499_v57, %v1784_v51  ;;  %v1454_v0 = vadd.f32 %v1453_v60, %v1452_v58 }
 0x117   : > { %v1502_v1 = vadd.f32 %v1501_v61, %v1500_v59 }
 0x118   : > { %v890_v2 = vadd.f32 %v1454_v0, %v1784_v51  ;;  %v921_v4 = vmax.f32 %v889_v62, 0.0  ;;  %v937_v5 = vmax.f32 %v905_v63, 0.0 }
 0x119   : > { %v906_v3 = vadd.f32 %v1502_v1, %v1784_v51 }
 0x11a   : > { %v922_v6 = vmax.f32 %v890_v2, 0.0  ;;  %v1455_v8 = vpop.f32.mrb[16].mxu0  ;;  %v1503_v9 = vpop.f32.mrb[16].mxu1 }
 0x11b   : > { %v938_v7 = vmax.f32 %v906_v3, 0.0  ;;  %v1456_v10 = vpop.f32.mrb[17].mxu0  ;;  %v1504_v11 = vpop.f32.mrb[17].mxu1 }
 0x11c   : > { %v1338_v12 = vpack.c.bf16 %v922_v6, %v921_v4  ;;  %v1457_v14 = vadd.f32 %v1456_v10, %v1455_v8  ;;  %v1505_v15 = vadd.f32 %v1504_v11, %v1503_v9  ;;  %v1458_v16 = vpop.f32.mrb[18].mxu0  ;;  %v1506_v17 = vpop.f32.mrb[18].mxu1 }
 0x11d   : > { %v1378_v13 = vpack.c.bf16 %v938_v7, %v937_v5  ;;  %v1459_v18 = vpop.f32.mrb[19].mxu0  ;;  %v1507_v19 = vpop.f32.mrb[19].mxu1 }
 0x11e   : > { %1402 = vst [vmem:[%s1794_s8 + $0x18] sm:$0xff] %v1338_v12   ;;  %v891_v20 = vadd.f32 %v1457_v14, %v1784_v51  ;;  %v907_v21 = vadd.f32 %v1505_v15, %v1784_v51  ;;  %v1460_v22 = vadd.f32 %v1459_v18, %v1458_v16  ;;  %v1508_v23 = vadd.f32 %v1507_v19, %v1506_v17 }
 0x11f   : > { %1410 = vst [vmem:[%s1794_s8 + $0x58] sm:$0xff] %v1378_v13  }
 0x120   : > { %v892_v24 = vadd.f32 %v1460_v22, %v1784_v51  ;;  %v908_v25 = vadd.f32 %v1508_v23, %v1784_v51  ;;  %v923_v26 = vmax.f32 %v891_v20, 0.0  ;;  %v939_v27 = vmax.f32 %v907_v21, 0.0 }
 0x122   : > { %v924_v28 = vmax.f32 %v892_v24, 0.0  ;;  %v940_v29 = vmax.f32 %v908_v25, 0.0  ;;  %v1461_v30 = vpop.f32.mrb[20].mxu0  ;;  %v1509_v31 = vpop.f32.mrb[20].mxu1 }
 0x123   : > { %v1462_v32 = vpop.f32.mrb[21].mxu0  ;;  %v1510_v33 = vpop.f32.mrb[21].mxu1 }
 0x124   : > { %v1343_v34 = vpack.c.bf16 %v924_v28, %v923_v26  ;;  %v1383_v35 = vpack.c.bf16 %v940_v29, %v939_v27  ;;  %v1463_v36 = vadd.f32 %v1462_v32, %v1461_v30  ;;  %v1511_v37 = vadd.f32 %v1510_v33, %v1509_v31  ;;  %v1464_v38 = vpop.f32.mrb[22].mxu0  ;;  %v1512_v39 = vpop.f32.mrb[22].mxu1 }
 0x125   : > { %v1465_v40 = vpop.f32.mrb[23].mxu0  ;;  %v1513_v41 = vpop.f32.mrb[23].mxu1 }
 0x126   : > { %1403 = vst [vmem:[%s1794_s8 + $0x20] sm:$0xff] %v1343_v34   ;;  %1411 = vst [vmem:[%s1794_s8 + $0x60] sm:$0xff] %v1383_v35   ;;  %v893_v42 = vadd.f32 %v1463_v36, %v1784_v51  ;;  %v909_v43 = vadd.f32 %v1511_v37, %v1784_v51  ;;  %v1466_v44 = vadd.f32 %v1465_v40, %v1464_v38 }
 0x127   : > { %v1514_v45 = vadd.f32 %v1513_v41, %v1512_v39 }
 0x128   : > { %v894_v46 = vadd.f32 %v1466_v44, %v1784_v51  ;;  %v925_v48 = vmax.f32 %v893_v42, 0.0  ;;  %v941_v49 = vmax.f32 %v909_v43, 0.0 }
 0x129   : > { %v910_v47 = vadd.f32 %v1514_v45, %v1784_v51 }
 0x12a   : > { %v926_v50 = vmax.f32 %v894_v46, 0.0  ;;  %v1467_v53 = vpop.f32.mrb[24].mxu0  ;;  %v1515_v54 = vpop.f32.mrb[24].mxu1 }
 0x12b   : > { %v942_v52 = vmax.f32 %v910_v47, 0.0  ;;  %v1468_v55 = vpop.f32.mrb[25].mxu0  ;;  %v1516_v56 = vpop.f32.mrb[25].mxu1 }
 0x12c   : > { %v1348_v57 = vpack.c.bf16 %v926_v50, %v925_v48  ;;  %v1469_v59 = vadd.f32 %v1468_v55, %v1467_v53  ;;  %v1517_v60 = vadd.f32 %v1516_v56, %v1515_v54  ;;  %v1470_v61 = vpop.f32.mrb[26].mxu0  ;;  %v1518_v62 = vpop.f32.mrb[26].mxu1 }
 0x12d   : > { %v1388_v58 = vpack.c.bf16 %v942_v52, %v941_v49  ;;  %v1471_v63 = vpop.f32.mrb[27].mxu0  ;;  %v1519_v0 = vpop.f32.mrb[27].mxu1 }
 0x12e   : > { %1404 = vst [vmem:[%s1794_s8 + $0x28] sm:$0xff] %v1348_v57   ;;  %v895_v1 = vadd.f32 %v1469_v59, %v1784_v51  ;;  %v911_v2 = vadd.f32 %v1517_v60, %v1784_v51  ;;  %v1472_v3 = vadd.f32 %v1471_v63, %v1470_v61  ;;  %v1520_v4 = vadd.f32 %v1519_v0, %v1518_v62 }
 0x12f   : > { %1412 = vst [vmem:[%s1794_s8 + $0x68] sm:$0xff] %v1388_v58  }
 0x130   : > { %v896_v5 = vadd.f32 %v1472_v3, %v1784_v51  ;;  %v912_v6 = vadd.f32 %v1520_v4, %v1784_v51  ;;  %v927_v7 = vmax.f32 %v895_v1, 0.0  ;;  %v943_v8 = vmax.f32 %v911_v2, 0.0 }
 0x132   : > { %v928_v9 = vmax.f32 %v896_v5, 0.0  ;;  %v944_v10 = vmax.f32 %v912_v6, 0.0  ;;  %v1473_v11 = vpop.f32.mrb[28].mxu0  ;;  %v1521_v12 = vpop.f32.mrb[28].mxu1 }
 0x133   : > { %v1474_v13 = vpop.f32.mrb[29].mxu0  ;;  %v1522_v14 = vpop.f32.mrb[29].mxu1 }
 0x134   : > { %v1353_v15 = vpack.c.bf16 %v928_v9, %v927_v7  ;;  %v1393_v16 = vpack.c.bf16 %v944_v10, %v943_v8  ;;  %v1475_v17 = vadd.f32 %v1474_v13, %v1473_v11  ;;  %v1523_v18 = vadd.f32 %v1522_v14, %v1521_v12  ;;  %v1476_v19 = vpop.f32.mrb[30].mxu0  ;;  %v1524_v20 = vpop.f32.mrb[30].mxu1 }
 0x135   : > { %v1477_v21 = vpop.f32.mrb[31].mxu0  ;;  %v1525_v22 = vpop.f32.mrb[31].mxu1 }
 0x136   : > { %1405 = vst [vmem:[%s1794_s8 + $0x30] sm:$0xff] %v1353_v15   ;;  %1413 = vst [vmem:[%s1794_s8 + $0x70] sm:$0xff] %v1393_v16   ;;  %v897_v23 = vadd.f32 %v1475_v17, %v1784_v51  ;;  %v913_v24 = vadd.f32 %v1523_v18, %v1784_v51  ;;  %v1478_v25 = vadd.f32 %v1477_v21, %v1476_v19 }
 0x137   : > { %v1526_v26 = vadd.f32 %v1525_v22, %v1524_v20 }
 0x138   : > { %v898_v27 = vadd.f32 %v1478_v25, %v1784_v51  ;;  %v929_v29 = vmax.f32 %v897_v23, 0.0  ;;  %v945_v30 = vmax.f32 %v913_v24, 0.0 }
 0x139   : > { %v914_v28 = vadd.f32 %v1526_v26, %v1784_v51 }
 0x13a   : > { %v930_v31 = vmax.f32 %v898_v27, 0.0 }
 0x13b   : > { %v946_v32 = vmax.f32 %v914_v28, 0.0 }
 0x13c   : > { %v1358_v33 = vpack.c.bf16 %v930_v31, %v929_v29 }
 0x13d   : > { %v1398_v34 = vpack.c.bf16 %v946_v32, %v945_v30 }
 0x13e   : > { %1406 = vst [vmem:[%s1794_s8 + $0x38] sm:$0xff] %v1358_v33  }
 0x13f   : > { %1414 = vst [vmem:[%s1794_s8 + $0x78] sm:$0xff] %v1398_v34  }
 0x140 PF: > { %s13_s14 = sadd.s32 1, %s1653_s14   ;;  %s1853_s12 = smov %s1649_s13 }
 0x141   : > { %p10_p5 = scmp.ge.s32.totalorder %s13_s14, 4   ;;  %s1854_s13 = smov %s1856_s15 }
 0x143   :  { %12 = sbr.rel (!%p10_p5) target bundleno = 2 (0x2), region = 73 }

// kernel: _lambda_.20
= control target key start
LH: loop header
LB: loop body
LE: loop exit
PB: predicated region body
PF: predicated region fallthrough
CT: control target
= control target key end

     0   :  { %s1590_s12 = smov 0   ;;  %s1592_s13 = smov 0   ;;  %s1804_s0 = inlined_call_operand.vmem [shape: bf16[128,1152], index: 0, kind: input, shape index: {}]   ;;  %s1805_s1 = inlined_call_operand.vmem [shape: bf16[1152,128], index: 1, kind: input, shape index: {}]   ;;  %s1806_s2 = inlined_call_operand.vmem [shape: f32[1,128], index: 2, kind: input, shape index: {}]   ;;  %s1807_s3 = inlined_call_operand.vmem [shape: bf16[128,128], index: 3, kind: output, shape index: {}]  }
   0x1   :  { %s1594_s14 = smov 0   ;;  %s1596_s15 = smov 0  }
   0x2   :  { %s1598_s16 = smov 0  }
   0x3 LB: > { %s22_s17 = sadd.s32 1, %s1563_s15  ;;  %p41_p1 = scmp.ne.s32.totalorder %s1555_s13, %s1551_s12  ;;  %s1567_s16 = sphi %s1598_s16, %s13_s16   ;;  %s1563_s15 = sphi %s1596_s15, %s1811_s15   ;;  %s1559_s14 = sphi %s1594_s14, %s1810_s14   ;;  %s1555_s13 = sphi %s1592_s13, %s1809_s13   ;;  %s1551_s12 = sphi %s1590_s12, %s1808_s12  }
   0x4   : > { %p23_p0 = scmp.ge.s32.totalorder %s22_s17, 3  ;;  %p42_p2 = scmp.eq.s32.totalorder %s1567_s16, 0 }
   0x5   : > { %s34_s19 = sadd.s32 1, %s1555_s13  ;;  %p1147_p5 = scmp.ge.s32.totalorder %s1567_s16, 3 }
   0x6   : > { %s1813_s17 = smov (%p23_p0, %s22_s17), 0  ;;  %p43_p3 = por %p42_p2, %p41_p1 }
   0x7   : > { %s30_s18 = ssub.s32 %s1563_s15, %s1813_s17  ;;  %143 = sbr.rel (%p1147_p5) target bundleno = 37 (0x25), region = 20 }
   0x8   : > { %p32_p4 = scmp.eq.s32.totalorder %s30_s18, 0 }
   0xa   : > { %s1625_s20 = scalar_select %p32_p4, %s1555_s13, %s34_s19  }
   0xe   : > { %146 = sbr.rel (!%p43_p3) target bundleno = 37 (0x25), region = 24  ;;  %s148_s21 = sand.u32 (%p43_p3), 1, %s1555_s13  }
   0xf   : > { %s1254_s22 = smul.u32 (%p43_p3), 12, %s1563_s15 }
  0x10   : > { %s1430_s23 = smul.u32 (%p43_p3), 192, %s148_s21 }
  0x11   : > { %s1633_s26 = scalar_lea.vmem (%p43_p3), %s1804_s0, %s1254_s22 }
  0x12   : > { %v171_v0 = vld [vmem:[%s1633_s26] sm:$0xff] (%p43_p3)  ;;  %v175_v2 = vld [vmem:[%s1633_s26 + $0x48] sm:$0xff] (%p43_p3)  ;;  %s1638_s27 = scalar_lea.vmem (%p43_p3), [#allocation3], %s1430_s23  ;;  %v179_v4 = vld [vmem:[%s1633_s26 + $0x90] sm:$0xff] (%p43_p3) }
  0x13   : > { %v173_v1 = vld [vmem:[%s1633_s26 + $0x24] sm:$0xff] (%p43_p3)  ;;  %172 = vst [vmem:[%s1638_s27] sm:$0xff] (%p43_p3), %v171_v0  ;;  %176 = vst [vmem:[%s1638_s27 + $0x18] sm:$0xff] (%p43_p3), %v175_v2  ;;  %v177_v3 = vld [vmem:[%s1633_s26 + $0x6c] sm:$0xff] (%p43_p3) }
  0x14   : > { %174 = vst [vmem:[%s1638_s27 + $0xc] sm:$0xff] (%p43_p3), %v173_v1  ;;  %v181_v5 = vld [vmem:[%s1633_s26 + $0xb4] sm:$0xff] (%p43_p3)  ;;  %178 = vst [vmem:[%s1638_s27 + $0x24] sm:$0xff] (%p43_p3), %v177_v3  ;;  %v185_v7 = vld [vmem:[%s1633_s26 + $0xfc] sm:$0xff] (%p43_p3) }
  0x15   : > { %180 = vst [vmem:[%s1638_s27 + $0x30] sm:$0xff] %v179_v4  ;;  %182 = vst [vmem:[%s1638_s27 + $0x3c] sm:$0xff] %v181_v5  ;;  %v183_v6 = vld [vmem:[%s1633_s26 + $0xd8] sm:$0xff]  ;;  %v187_v8 = vld [vmem:[%s1633_s26 + $0x120] sm:$0xff] }
  0x16   : > { %184 = vst [vmem:[%s1638_s27 + $0x48] sm:$0xff] %v183_v6  ;;  %186 = vst [vmem:[%s1638_s27 + $0x54] sm:$0xff] %v185_v7  ;;  %v189_v9 = vld [vmem:[%s1633_s26 + $0x144] sm:$0xff]  ;;  %v193_v11 = vld [vmem:[%s1633_s26 + $0x18c] sm:$0xff] }
  0x17   : > { %188 = vst [vmem:[%s1638_s27 + $0x60] sm:$0xff] %v187_v8  ;;  %v191_v10 = vld [vmem:[%s1633_s26 + $0x168] sm:$0xff]  ;;  %190 = vst [vmem:[%s1638_s27 + $0x6c] sm:$0xff] %v189_v9  ;;  %v195_v12 = vld [vmem:[%s1633_s26 + $0x1b0] sm:$0xff] }
  0x18   : > { %192 = vst [vmem:[%s1638_s27 + $0x78] sm:$0xff] %v191_v10  ;;  %194 = vst [vmem:[%s1638_s27 + $0x84] sm:$0xff] %v193_v11  ;;  %v197_v13 = vld [vmem:[%s1633_s26 + $0x1d4] sm:$0xff]  ;;  %v201_v15 = vld [vmem:[%s1633_s26 + $0x21c] sm:$0xff] }
  0x19   : > { %v199_v14 = vld [vmem:[%s1633_s26 + $0x1f8] sm:$0xff]  ;;  %196 = vst [vmem:[%s1638_s27 + $0x90] sm:$0xff] %v195_v12  ;;  %198 = vst [vmem:[%s1638_s27 + $0x9c] sm:$0xff] %v197_v13  ;;  %v1149_v16 = vld [vmem:[%s1633_s26 + $0x8] sm:$0xf] }
  0x1a   : > { %200 = vst [vmem:[%s1638_s27 + $0xa8] sm:$0xff] %v199_v14  ;;  %v1151_v17 = vld [vmem:[%s1633_s26 + $0x2c] sm:$0xf]  ;;  %202 = vst [vmem:[%s1638_s27 + $0xb4] sm:$0xff] %v201_v15  ;;  %v1153_v18 = vld [vmem:[%s1633_s26 + $0x50] sm:$0xf] }
  0x1b   : > { %1150 = vst [vmem:[%s1638_s27 + $0x8] sm:$0xf] %v1149_v16  ;;  %1152 = vst [vmem:[%s1638_s27 + $0x14] sm:$0xf] %v1151_v17  ;;  %v1155_v19 = vld [vmem:[%s1633_s26 + $0x74] sm:$0xf] }
  0x1c   : > { %v1157_v20 = vld [vmem:[%s1633_s26 + $0x98] sm:$0xf]  ;;  %1154 = vst [vmem:[%s1638_s27 + $0x20] sm:$0xf] %v1153_v18  ;;  %1156 = vst [vmem:[%s1638_s27 + $0x2c] sm:$0xf] %v1155_v19 }
  0x1d   : > { %1158 = vst [vmem:[%s1638_s27 + $0x38] sm:$0xf] %v1157_v20  ;;  %v1159_v21 = vld [vmem:[%s1633_s26 + $0xbc] sm:$0xf]  ;;  %v1161_v22 = vld [vmem:[%s1633_s26 + $0xe0] sm:$0xf] }
  0x1e   : > { %v1163_v23 = vld [vmem:[%s1633_s26 + $0x104] sm:$0xf]  ;;  %1160 = vst [vmem:[%s1638_s27 + $0x44] sm:$0xf] %v1159_v21  ;;  %1162 = vst [vmem:[%s1638_s27 + $0x50] sm:$0xf] %v1161_v22 }
  0x1f   : > { %1164 = vst [vmem:[%s1638_s27 + $0x5c] sm:$0xf] %v1163_v23  ;;  %v1165_v24 = vld [vmem:[%s1633_s26 + $0x128] sm:$0xf]  ;;  %v1167_v25 = vld [vmem:[%s1633_s26 + $0x14c] sm:$0xf] }
  0x20   : > { %v1169_v26 = vld [vmem:[%s1633_s26 + $0x170] sm:$0xf]  ;;  %1166 = vst [vmem:[%s1638_s27 + $0x68] sm:$0xf] %v1165_v24  ;;  %1168 = vst [vmem:[%s1638_s27 + $0x74] sm:$0xf] %v1167_v25 }
  0x21   : > { %1170 = vst [vmem:[%s1638_s27 + $0x80] sm:$0xf] %v1169_v26  ;;  %v1171_v27 = vld [vmem:[%s1633_s26 + $0x194] sm:$0xf]  ;;  %v1173_v28 = vld [vmem:[%s1633_s26 + $0x1b8] sm:$0xf] }
  0x22   : > { %v1175_v29 = vld [vmem:[%s1633_s26 + $0x1dc] sm:$0xf]  ;;  %1172 = vst [vmem:[%s1638_s27 + $0x8c] sm:$0xf] %v1171_v27  ;;  %1174 = vst [vmem:[%s1638_s27 + $0x98] sm:$0xf] %v1173_v28 }
  0x23   : > { %1176 = vst [vmem:[%s1638_s27 + $0xa4] sm:$0xf] %v1175_v29  ;;  %v1177_v30 = vld [vmem:[%s1633_s26 + $0x200] sm:$0xf]  ;;  %v1179_v31 = vld [vmem:[%s1633_s26 + $0x224] sm:$0xf] }
  0x24   : > { %1178 = vst [vmem:[%s1638_s27 + $0xb0] sm:$0xf] %v1177_v30  ;;  %1180 = vst [vmem:[%s1638_s27 + $0xbc] sm:$0xf] %v1179_v31 }
  0x25 PF: > { %p1181_p6 = scmp.ge.s32.totalorder %s1567_s16, 1  ;;  %p255_p7 = scmp.lt.s32.totalorder %s1567_s16, 4 }
  0x27   : > { %p256_p8 = pnand %p1181_p6, %p255_p7 }
  0x28   : > { %s262_s28 = sand.u32 (!%p256_p8), 1, %s1551_s12   ;;  %s292_s29 = smul.u32 (!%p256_p8), 48, %s1559_s14 }
  0x29   : > { %259 = sbr.rel (%p256_p8) target bundleno = 383 (0x17f), region = 54  ;;  %p1183_p10 = scmp.ne.s32.totalorder (!%p256_p8), %s1559_s14, 0 }
  0x2a   : > { %s1431_s30 = smul.u32 (!%p256_p8), 192, %s262_s28  ;;  %p293_p9 = scmp.lt.s32.totalorder (!%p256_p8), %s292_s29, 143 }
  0x2c   : > { %s1710_s8 = scalar_lea.vmem (!%p256_p8), [#allocation3], %s1431_s30 }
  0x30   : > { %s1815_s29 = smov (!%p293_p9, %s292_s29), 143  ;;  %308 = sbr.rel (%p1183_p10) target bundleno = 58 (0x3a), region = 62 }
  0x31   : > { %s1182_s4 = sshll.u32 %s1815_s29, 2  ;;  %v1569_v32 = vmov (!%p1183_p10), 0.0  }
  0x32   : > { %s1708_s7 = scalar_lea.vmem %s1805_s1, %s1182_s4  ;;  %309 = vst [vmem:[#allocation2] sm:$0xff] (!%p1183_p10), %v1569_v32  ;;  %310 = vst [vmem:[#allocation2 + $0x8] sm:$0xff] (!%p1183_p10), %v1569_v32 }
  0x33   : > { %311 = vst [vmem:[#allocation2 + $0x10] sm:$0xff] (!%p1183_p10), %v1569_v32  ;;  %312 = vst [vmem:[#allocation2 + $0x18] sm:$0xff] (!%p1183_p10), %v1569_v32 }
  0x34   : > { %313 = vst [vmem:[#allocation2 + $0x20] sm:$0xff] (!%p1183_p10), %v1569_v32  ;;  %314 = vst [vmem:[#allocation2 + $0x28] sm:$0xff] (!%p1183_p10), %v1569_v32 }
  0x35   : > { %315 = vst [vmem:[#allocation2 + $0x30] sm:$0xff] (!%p1183_p10), %v1569_v32  ;;  %316 = vst [vmem:[#allocation2 + $0x38] sm:$0xff] (!%p1183_p10), %v1569_v32 }
  0x36   : > { %317 = vst [vmem:[#allocation2 + $0x40] sm:$0xff] (!%p1183_p10), %v1569_v32  ;;  %318 = vst [vmem:[#allocation2 + $0x48] sm:$0xff] (!%p1183_p10), %v1569_v32 }
  0x37   : > { %319 = vst [vmem:[#allocation2 + $0x50] sm:$0xff] %v1569_v32  ;;  %320 = vst [vmem:[#allocation2 + $0x58] sm:$0xff] %v1569_v32 }
  0x38   : > { %321 = vst [vmem:[#allocation2 + $0x60] sm:$0xff] %v1569_v32  ;;  %322 = vst [vmem:[#allocation2 + $0x68] sm:$0xff] %v1569_v32 }
  0x39   : > { %323 = vst [vmem:[#allocation2 + $0x70] sm:$0xff] %v1569_v32  ;;  %324 = vst [vmem:[#allocation2 + $0x78] sm:$0xff] %v1569_v32 }
  0x3a PF: > { %v1473_v33 = vld [vmem:[%s1708_s7 + $0x40] sm:$0xff]   ;;  %v1476_v36 = vld [vmem:[%s1708_s7 + $0x48] sm:$0xff]   ;;  %v1479_v39 = vld [vmem:[%s1708_s7 + $0x50] sm:$0xff]   ;;  %p1232_p11 = scmp.ne.s32.totalorder %s1559_s14, 2 }
  0x3b   : > { %v1474_v34 = vld [vmem:[%s1708_s7] sm:$0xff]   ;;  %1318 = vmatprep.subr.bf16.mxu0 %v1473_v33  ;;  %v1477_v37 = vld [vmem:[%s1708_s7 + $0x8] sm:$0xff]   ;;  %v1480_v40 = vld [vmem:[%s1708_s7 + $0x10] sm:$0xff]  }
  0x3c   : > { %v1475_v35 = vld [vmem:[%s1708_s7 + $0x80] sm:$0xff]   ;;  %1319 = vmatpush3.bf16.msra.mxu0 %v1474_v34  ;;  %v1478_v38 = vld [vmem:[%s1708_s7 + $0x88] sm:$0xff]   ;;  %v1481_v41 = vld [vmem:[%s1708_s7 + $0x90] sm:$0xff]  }
  0x3d   : > { %1398 = vmatprep.subr.bf16.mxu1 %v1475_v35  ;;  %1320 = vmatprep.subr.bf16.mxu0 %v1476_v36  ;;  %v1482_v42 = vld [vmem:[%s1708_s7 + $0x58] sm:$0xff]   ;;  %v1485_v45 = vld [vmem:[%s1708_s7 + $0x60] sm:$0xff]   ;;  %v1488_v48 = vld [vmem:[%s1708_s7 + $0x68] sm:$0xff]  }
  0x3e   : > { %1399 = vmatpush3.bf16.msra.mxu1 %v1475_v35  ;;  %v1483_v43 = vld [vmem:[%s1708_s7 + $0x18] sm:$0xff]   ;;  %v1487_v46 = vld [vmem:[%s1708_s7 + $0xa0] sm:$0xff]   ;;  %v1490_v49 = vld [vmem:[%s1708_s7 + $0xa8] sm:$0xff]  }
  0x3f   : > { %1400 = vmatprep.subr.bf16.mxu1 %v1478_v38  ;;  %v1484_v44 = vld [vmem:[%s1708_s7 + $0x98] sm:$0xff]   ;;  %v1486_v47 = vld [vmem:[%s1708_s7 + $0x20] sm:$0xff]   ;;  %v1489_v50 = vld [vmem:[%s1708_s7 + $0x28] sm:$0xff]  }
  0x40   : > { %1321 = vmatpush3.bf16.msra.mxu0 %v1477_v37  ;;  %v1491_v51 = vld [vmem:[%s1708_s7 + $0x70] sm:$0xff]   ;;  %v1494_v54 = vld [vmem:[%s1708_s7 + $0x78] sm:$0xff]   ;;  %v1497_v59 = vld [vmem:[%s1710_s8] ss:$12 sps:$4 sm:$0xff]  }
  0x41   : > { %1322 = vmatprep.subr.bf16.mxu0 %v1479_v39  ;;  %v1492_v52 = vld [vmem:[%s1708_s7 + $0x30] sm:$0xff]   ;;  %v1496_v55 = vld [vmem:[%s1708_s7 + $0xb8] sm:$0xff]   ;;  %v1501_v61 = vld [vmem:[%s1710_s8 + $0x20] ss:$12 sps:$4 sm:$0xff]  }
  0x42   : > { %1401 = vmatpush3.bf16.msra.mxu1 %v1478_v38  ;;  %v1493_v53 = vld [vmem:[%s1708_s7 + $0xb0] sm:$0xff]   ;;  %v1495_v58 = vld [vmem:[%s1708_s7 + $0x38] sm:$0xff]   ;;  %v1517_v5 = vld [vmem:[%s1710_s8 + $0x80] ss:$12 sps:$4 sm:$0xff]  }
  0x43   : > { %1402 = vmatprep.subr.bf16.mxu1 %v1481_v41  ;;  %v1499_v56 = vld [vmem:[%s1710_s8 + $0x4] ss:$12 sps:$4 sm:$0xff]   ;;  %v1500_v57 = vld [vmem:[%s1710_s8 + $0x8] ss:$12 sps:$4 sm:$0xff]   ;;  %v1510_v4 = vld [vmem:[%s1710_s8 + $0x4c] ss:$12 sps:$4 sm:$0xff]  }
  0x44   : > { %1323 = vmatpush3.bf16.msra.mxu0 %v1480_v40  ;;  %725 = vmatprep.mubr.bf16.mxu0 %v1499_v56  ;;  %v1502_v60 = vld [vmem:[%s1710_s8 + $0x1c] ss:$12 sps:$4 sm:$0xff]   ;;  %v1508_v62 = vld [vmem:[%s1710_s8 + $0x38] ss:$12 sps:$4 sm:$0xff]   ;;  %v1505_v0 = vld [vmem:[%s1710_s8 + $0x34] ss:$12 sps:$4 sm:$0xff]  }
  0x45   : > { %1324 = vmatprep.subr.bf16.mxu0 %v1482_v42  ;;  %1414 = vmatprep.mubr.bf16.mxu1 %v1500_v57  ;;  %v1504_v63 = vld [vmem:[%s1710_s8 + $0x18] ss:$12 sps:$4 sm:$0xff]   ;;  %v1509_v1 = vld [vmem:[%s1710_s8 + $0x50] ss:$12 sps:$4 sm:$0xff]   ;;  %v1516_v2 = vld [vmem:[%s1710_s8 + $0x68] ss:$12 sps:$4 sm:$0xff]  }
  0x46   : > { %1403 = vmatpush3.bf16.msra.mxu1 %v1481_v41  ;;  %v1507_v3 = vld [vmem:[%s1710_s8 + $0x30] ss:$12 sps:$4 sm:$0xff]   ;;  %v1524_v6 = vld [vmem:[%s1710_s8 + $0x98] ss:$12 sps:$4 sm:$0xff]   ;;  %v1512_v7 = vld [vmem:[%s1710_s8 + $0x48] ss:$12 sps:$4 sm:$0xff]  }
  0x47   : > { %1404 = vmatprep.subr.bf16.mxu1 %v1484_v44  ;;  %v1513_v8 = vld [vmem:[%s1710_s8 + $0x64] ss:$12 sps:$4 sm:$0xff]   ;;  %v1515_v10 = vld [vmem:[%s1710_s8 + $0x60] ss:$12 sps:$4 sm:$0xff]   ;;  %v1518_v11 = vld [vmem:[%s1710_s8 + $0x7c] ss:$12 sps:$4 sm:$0xff]  }
  0x48   : > { %1325 = vmatpush3.bf16.msra.mxu0 %v1483_v43  ;;  %v1525_v9 = vld [vmem:[%s1710_s8 + $0xb0] ss:$12 sps:$4 sm:$0xff]   ;;  %v1520_v12 = vld [vmem:[%s1710_s8 + $0x78] ss:$12 sps:$4 sm:$0xff]   ;;  %v1521_v13 = vld [vmem:[%s1710_s8 + $0x94] ss:$12 sps:$4 sm:$0xff]  }
  0x49   : > { %1326 = vmatprep.subr.bf16.mxu0 %v1485_v45  ;;  %v1523_v14 = vld [vmem:[%s1710_s8 + $0x90] ss:$12 sps:$4 sm:$0xff]   ;;  %v1526_v15 = vld [vmem:[%s1710_s8 + $0xac] ss:$12 sps:$4 sm:$0xff]   ;;  %v1528_v16 = vld [vmem:[%s1710_s8 + $0xa8] ss:$12 sps:$4 sm:$0xff]  }
  0x4a   : > { %1405 = vmatpush3.bf16.msra.mxu1 %v1484_v44  ;;  %v325_v23 = vld [vmem:[#allocation2] sm:$0xff]  ;;  %v326_v28 = vld [vmem:[#allocation2 + $0x8] sm:$0xff]  ;;  %v327_v38 = vld [vmem:[#allocation2 + $0x10] sm:$0xff] }
  0x4b   : > { %1406 = vmatprep.subr.bf16.mxu1 %v1487_v46  ;;  %v328_v44 = vld [vmem:[#allocation2 + $0x18] sm:$0xff] }
  0x4c   : > { %1327 = vmatpush3.bf16.msra.mxu0 %v1486_v47 }
  0x4d   : > { %1328 = vmatprep.subr.bf16.mxu0 %v1488_v48 }
  0x4e   : > { %1407 = vmatpush3.bf16.msra.mxu1 %v1487_v46 }
  0x4f   : > { %1408 = vmatprep.subr.bf16.mxu1 %v1490_v49 }
  0x50   : > { %1329 = vmatpush3.bf16.msra.mxu0 %v1489_v50 }
  0x51   : > { %1330 = vmatprep.subr.bf16.mxu0 %v1491_v51 }
  0x52   : > { %1409 = vmatpush3.bf16.msra.mxu1 %v1490_v49 }
  0x53   : > { %1410 = vmatprep.subr.bf16.mxu1 %v1493_v53 }
  0x54   : > { %1331 = vmatpush3.bf16.msra.mxu0 %v1492_v52 }
  0x55   : > { %1332 = vmatprep.subr.bf16.mxu0 %v1494_v54 }
  0x56   : > { %1411 = vmatpush3.bf16.msra.mxu1 %v1493_v53 }
  0x57   : > { %1412 = vmatprep.subr.bf16.mxu1 %v1496_v55 }
  0x58   : > { %1333 = vmatpush3.bf16.msra.mxu0 %v1495_v58 }
  0x5a   : > { %1413 = vmatpush3.bf16.msra.mxu1 %v1496_v55  ;;  %v329_v55 = vld [vmem:[#allocation2 + $0x20] sm:$0xff] }
  0x5b   : > { %726 = vmatmul.mubr.bf16.vlgmr.msra.gmra.mrb[0].mxu0 %v1497_v59 }
  0x5c   : > { %733 = vmatprep.mubr.bf16.mxu0 %v1502_v60  ;;  %v330_v60 = vld [vmem:[#allocation2 + $0x28] sm:$0xff] }
  0x5d   : > { %1415 = vmatmul.mubr.bf16.vlgmr.msra.gmra.mrb[0].mxu1 %v1501_v61 }
  0x5e   : > { %1418 = vmatprep.mubr.bf16.mxu1 %v1508_v62 }
  0x63   : > { %734 = vmatmul.mubr.bf16.gmra.mrb[4].mxu0 %v1504_v63 }
  0x64   : > { %741 = vmatprep.mubr.bf16.mxu0 %v1505_v0 }
  0x65   : > { %1419 = vmatmul.mubr.bf16.gmra.mrb[4].mxu1 %v1509_v1 }
  0x66   : > { %1422 = vmatprep.mubr.bf16.mxu1 %v1516_v2 }
  0x6b   : > { %742 = vmatmul.mubr.bf16.gmra.mrb[8].mxu0 %v1507_v3 }
  0x6c   : > { %749 = vmatprep.mubr.bf16.mxu0 %v1510_v4 }
  0x6d   : > { %1423 = vmatmul.mubr.bf16.gmra.mrb[8].mxu1 %v1517_v5 }
  0x6e   : > { %1426 = vmatprep.mubr.bf16.mxu1 %v1524_v6  ;;  %v331_v6 = vld [vmem:[#allocation2 + $0x30] sm:$0xff] }
  0x73   : > { %750 = vmatmul.mubr.bf16.gmra.mrb[12].mxu0 %v1512_v7 }
  0x74   : > { %757 = vmatprep.mubr.bf16.mxu0 %v1513_v8 }
  0x75   : > { %1427 = vmatmul.mubr.bf16.gmra.mrb[12].mxu1 %v1525_v9 }
  0x7b   : > { %758 = vmatmul.mubr.bf16.gmra.mrb[16].mxu0 %v1515_v10 }
  0x7c   : > { %765 = vmatprep.mubr.bf16.mxu0 %v1518_v11 }
  0x83   : > { %766 = vmatmul.mubr.bf16.gmra.mrb[20].mxu0 %v1520_v12  ;;  %v332_v12 = vld [vmem:[#allocation2 + $0x38] sm:$0xff] }
  0x84   : > { %773 = vmatprep.mubr.bf16.mxu0 %v1521_v13 }
  0x8b   : > { %774 = vmatmul.mubr.bf16.gmra.mrb[24].mxu0 %v1523_v14 }
  0x8c   : > { %781 = vmatprep.mubr.bf16.mxu0 %v1526_v15 }
  0x93   : > { %782 = vmatmul.mubr.bf16.gmra.mrb[28].mxu0 %v1528_v16 }
 0x12e   : > { %v1334_v17 = vpop.f32.mrb[0].mxu0 }
 0x12f   : > { %v1335_v18 = vpop.f32.mrb[1].mxu0 }
 0x130   : > { %v1336_v19 = vadd.f32 %v1335_v18, %v1334_v17  ;;  %v1337_v20 = vpop.f32.mrb[2].mxu0  ;;  %v1416_v21 = vpop.f32.mrb[0].mxu1 }
 0x131   : > { %v1338_v22 = vpop.f32.mrb[3].mxu0  ;;  %v824_v24 = vpop.f32.mrb[1].mxu1 }
 0x132   : > { %v1339_v25 = vadd.f32 %v1338_v22, %v1337_v20  ;;  %v825_v26 = vadd.f32 %v1336_v19, %v824_v24  ;;  %v1417_v27 = vpop.f32.mrb[2].mxu1  ;;  %v333_v22 = vld [vmem:[#allocation2 + $0x40] sm:$0xff] }
 0x133   : > { %v827_v29 = vpop.f32.mrb[3].mxu1 }
 0x134   : > { %v887_v30 = vadd.f32 %v825_v26, %v325_v23  ;;  %v828_v31 = vadd.f32 %v1339_v25, %v827_v29  ;;  %v334_v25 = vld [vmem:[#allocation2 + $0x48] sm:$0xff] }
 0x136   : > { %903 = vst [vmem:[#allocation2] sm:$0xff] %v887_v30  ;;  %v888_v32 = vadd.f32 %v828_v31, %v326_v28  ;;  %v1340_v33 = vpop.f32.mrb[4].mxu0 }
 0x137   : > { %v1341_v34 = vpop.f32.mrb[5].mxu0 }
 0x138   : > { %904 = vst [vmem:[#allocation2 + $0x8] sm:$0xff] %v888_v32  ;;  %v1342_v35 = vadd.f32 %v1341_v34, %v1340_v33  ;;  %v1343_v36 = vpop.f32.mrb[6].mxu0  ;;  %v1420_v37 = vpop.f32.mrb[4].mxu1  ;;  %v335_v33 = vld [vmem:[#allocation2 + $0x50] sm:$0xff] }
 0x139   : > { %v1344_v39 = vpop.f32.mrb[7].mxu0  ;;  %v840_v40 = vpop.f32.mrb[5].mxu1 }
 0x13a   : > { %v833_v41 = vadd.f32 %v1416_v21, %v1342_v35  ;;  %v1345_v42 = vadd.f32 %v1344_v39, %v1343_v36  ;;  %v1421_v43 = vpop.f32.mrb[6].mxu1 }
 0x13b   : > { %v843_v45 = vpop.f32.mrb[7].mxu1 }
 0x13c   : > { %v889_v46 = vadd.f32 %v833_v41, %v327_v38  ;;  %v836_v47 = vadd.f32 %v1417_v27, %v1345_v42 }
 0x13e   : > { %905 = vst [vmem:[#allocation2 + $0x10] sm:$0xff] %v889_v46  ;;  %v890_v48 = vadd.f32 %v836_v47, %v328_v44  ;;  %v1346_v49 = vpop.f32.mrb[8].mxu0  ;;  %v337_v46 = vld [vmem:[#allocation2 + $0x60] sm:$0xff] }
 0x13f   : > { %v1347_v50 = vpop.f32.mrb[9].mxu0 }
 0x140   : > { %906 = vst [vmem:[#allocation2 + $0x18] sm:$0xff] %v890_v48  ;;  %v1348_v51 = vadd.f32 %v1347_v50, %v1346_v49  ;;  %v1349_v52 = vpop.f32.mrb[10].mxu0  ;;  %v1424_v53 = vpop.f32.mrb[8].mxu1  ;;  %v338_v49 = vld [vmem:[#allocation2 + $0x68] sm:$0xff] }
 0x141   : > { %v1350_v54 = vpop.f32.mrb[11].mxu0  ;;  %v856_v56 = vpop.f32.mrb[9].mxu1 }
 0x142   : > { %v1351_v57 = vadd.f32 %v1350_v54, %v1349_v52  ;;  %v841_v58 = vadd.f32 %v1348_v51, %v840_v40  ;;  %v1425_v59 = vpop.f32.mrb[10].mxu1 }
 0x143   : > { %v859_v61 = vpop.f32.mrb[11].mxu1 }
 0x144   : > { %v891_v62 = vadd.f32 %v841_v58, %v329_v55  ;;  %v844_v63 = vadd.f32 %v1351_v57, %v843_v45  ;;  %v339_v57 = vld [vmem:[#allocation2 + $0x70] sm:$0xff] }
 0x146   : > { %907 = vst [vmem:[#allocation2 + $0x20] sm:$0xff] %v891_v62  ;;  %v892_v0 = vadd.f32 %v844_v63, %v330_v60  ;;  %v1352_v1 = vpop.f32.mrb[12].mxu0 }
 0x147   : > { %v1353_v2 = vpop.f32.mrb[13].mxu0 }
 0x148   : > { %908 = vst [vmem:[#allocation2 + $0x28] sm:$0xff] %v892_v0  ;;  %v1354_v3 = vadd.f32 %v1353_v2, %v1352_v1  ;;  %v1355_v4 = vpop.f32.mrb[14].mxu0  ;;  %v1428_v5 = vpop.f32.mrb[12].mxu1  ;;  %v923_v1 = vld [vmem:[#allocation2] sm:$0xff] (!%p1232_p11)  ;;  %v924_v2 = vld [vmem:[#allocation2 + $0x8] sm:$0xff] (!%p1232_p11) }
 0x149   : > { %v1356_v7 = vpop.f32.mrb[15].mxu0  ;;  %v872_v8 = vpop.f32.mrb[13].mxu1 }
 0x14a   : > { %v849_v9 = vadd.f32 %v1420_v37, %v1354_v3  ;;  %v1357_v10 = vadd.f32 %v1356_v7, %v1355_v4  ;;  %v1429_v11 = vpop.f32.mrb[14].mxu1  ;;  %v336_v37 = vld [vmem:[#allocation2 + $0x58] sm:$0xff]  ;;  %v1233_v3 = vld [vmem:[%s1806_s2] ss:$0 sm:$0xff] (!%p1232_p11)  ;;  %v925_v7 = vld [vmem:[#allocation2 + $0x10] sm:$0xff] (!%p1232_p11) }
 0x14b   : > { %v875_v13 = vpop.f32.mrb[15].mxu1  ;;  %v946_v4 = vadd.f32 (!%p1232_p11), %v1233_v3, %v923_v1 }
 0x14c   : > { %v893_v14 = vadd.f32 %v849_v9, %v331_v6  ;;  %v852_v15 = vadd.f32 %v1421_v43, %v1357_v10  ;;  %v947_v6 = vadd.f32 (!%p1232_p11), %v1233_v3, %v924_v2  ;;  %v948_v9 = vadd.f32 (!%p1232_p11), %v1233_v3, %v925_v7 }
 0x14e   : > { %909 = vst [vmem:[#allocation2 + $0x30] sm:$0xff] %v893_v14  ;;  %v894_v16 = vadd.f32 %v852_v15, %v332_v12  ;;  %v1358_v17 = vpop.f32.mrb[16].mxu0  ;;  %v962_v15 = vmax.f32 (!%p1232_p11), %v946_v4, 0.0 }
 0x14f   : > { %v1359_v18 = vpop.f32.mrb[17].mxu0 }
 0x150   : > { %910 = vst [vmem:[#allocation2 + $0x38] sm:$0xff] %v894_v16  ;;  %v1360_v19 = vadd.f32 %v1359_v18, %v1358_v17  ;;  %v1361_v20 = vpop.f32.mrb[18].mxu0  ;;  %v963_v16 = vmax.f32 (!%p1232_p11), %v947_v6, 0.0 }
 0x151   : > { %v1362_v21 = vpop.f32.mrb[19].mxu0 }
 0x152   : > { %v1363_v23 = vadd.f32 %v1362_v21, %v1361_v20  ;;  %v857_v24 = vadd.f32 %v1360_v19, %v856_v56 }
 0x154   : > { %v895_v26 = vadd.f32 %v857_v24, %v333_v22  ;;  %v860_v27 = vadd.f32 %v1363_v23, %v859_v61  ;;  %v340_v61 = vld [vmem:[#allocation2 + $0x78] sm:$0xff]  ;;  %v964_v22 = vmax.f32 (!%p1232_p11), %v948_v9, 0.0 }
 0x156   : > { %911 = vst [vmem:[#allocation2 + $0x40] sm:$0xff] %v895_v26  ;;  %v896_v28 = vadd.f32 %v860_v27, %v334_v25  ;;  %v1364_v29 = vpop.f32.mrb[20].mxu0 }
 0x157   : > { %v1365_v30 = vpop.f32.mrb[21].mxu0  ;;  %v930_v14 = vld [vmem:[#allocation2 + $0x38] sm:$0xff] (!%p1232_p11) }
 0x158   : > { %912 = vst [vmem:[#allocation2 + $0x48] sm:$0xff] %v896_v28  ;;  %v1366_v31 = vadd.f32 %v1365_v30, %v1364_v29  ;;  %v1367_v32 = vpop.f32.mrb[22].mxu0  ;;  %v953_v25 = vadd.f32 (!%p1232_p11), %v1233_v3, %v930_v14  ;;  %v1274_v28 = vpack.c.bf16 (!%p1232_p11), %v963_v16, %v962_v15 }
 0x159   : > { %v1368_v34 = vpop.f32.mrb[23].mxu0 }
 0x15a   : > { %v865_v35 = vadd.f32 %v1424_v53, %v1366_v31  ;;  %v1369_v36 = vadd.f32 %v1368_v34, %v1367_v32  ;;  %v969_v34 = vmax.f32 (!%p1232_p11), %v953_v25, 0.0  ;;  %1275 = vst [vmem:[%s1807_s3] sm:$0xff] (!%p1232_p11), %v1274_v28  }
 0x15c   : > { %v897_v38 = vadd.f32 %v865_v35, %v335_v33  ;;  %v868_v39 = vadd.f32 %v1425_v59, %v1369_v36 }
 0x15d   : > { %v931_v19 = vld [vmem:[#allocation2 + $0x40] sm:$0xff] (!%p1232_p11) }
 0x15e   : > { %913 = vst [vmem:[#allocation2 + $0x50] sm:$0xff] %v897_v38  ;;  %v898_v40 = vadd.f32 %v868_v39, %v336_v37  ;;  %v1370_v41 = vpop.f32.mrb[24].mxu0  ;;  %v954_v31 = vadd.f32 (!%p1232_p11), %v1233_v3, %v931_v19 }
 0x15f   : > { %v1371_v42 = vpop.f32.mrb[25].mxu0  ;;  %v932_v20 = vld [vmem:[#allocation2 + $0x48] sm:$0xff] (!%p1232_p11) }
 0x160   : > { %914 = vst [vmem:[#allocation2 + $0x58] sm:$0xff] %v898_v40  ;;  %v1372_v43 = vadd.f32 %v1371_v42, %v1370_v41  ;;  %v1373_v44 = vpop.f32.mrb[26].mxu0  ;;  %v955_v35 = vadd.f32 (!%p1232_p11), %v1233_v3, %v932_v20  ;;  %v970_v40 = vmax.f32 (!%p1232_p11), %v954_v31, 0.0 }
 0x161   : > { %v1374_v45 = vpop.f32.mrb[27].mxu0 }
 0x162   : > { %v1375_v47 = vadd.f32 %v1374_v45, %v1373_v44  ;;  %v873_v48 = vadd.f32 %v1372_v43, %v872_v8  ;;  %v927_v8 = vld [vmem:[#allocation2 + $0x20] sm:$0xff] (!%p1232_p11)  ;;  %v971_v44 = vmax.f32 (!%p1232_p11), %v955_v35, 0.0 }
 0x163   : > { %v950_v12 = vadd.f32 (!%p1232_p11), %v1233_v3, %v927_v8 }
 0x164   : > { %v899_v50 = vadd.f32 %v873_v48, %v337_v46  ;;  %v876_v51 = vadd.f32 %v1375_v47, %v875_v13  ;;  %v929_v13 = vld [vmem:[#allocation2 + $0x30] sm:$0xff] (!%p1232_p11) }
 0x165   : > { %v952_v18 = vadd.f32 (!%p1232_p11), %v1233_v3, %v929_v13  ;;  %v933_v21 = vld [vmem:[#allocation2 + $0x50] sm:$0xff] (!%p1232_p11)  ;;  %v966_v24 = vmax.f32 (!%p1232_p11), %v950_v12, 0.0 }
 0x166   : > { %915 = vst [vmem:[#allocation2 + $0x60] sm:$0xff] %v899_v50  ;;  %v900_v52 = vadd.f32 %v876_v51, %v338_v49  ;;  %v1376_v53 = vpop.f32.mrb[28].mxu0  ;;  %v956_v36 = vadd.f32 (!%p1232_p11), %v1233_v3, %v933_v21  ;;  %v1294_v51 = vpack.c.bf16 (!%p1232_p11), %v971_v44, %v970_v40 }
 0x167   : > { %v1377_v54 = vpop.f32.mrb[29].mxu0  ;;  %v934_v26 = vld [vmem:[#allocation2 + $0x58] sm:$0xff] (!%p1232_p11)  ;;  %v968_v30 = vmax.f32 (!%p1232_p11), %v952_v18, 0.0 }
 0x168   : > { %916 = vst [vmem:[#allocation2 + $0x68] sm:$0xff] %v900_v52  ;;  %v1378_v55 = vadd.f32 %v1377_v54, %v1376_v53  ;;  %v1379_v56 = vpop.f32.mrb[30].mxu0  ;;  %v957_v41 = vadd.f32 (!%p1232_p11), %v1233_v3, %v934_v26  ;;  %v972_v45 = vmax.f32 (!%p1232_p11), %v956_v36, 0.0  ;;  %1314 = vst [vmem:[%s1807_s3 + $0x20] sm:$0xff] (!%p1232_p11), %v1294_v51  }
 0x169   : > { %v1380_v58 = vpop.f32.mrb[31].mxu0  ;;  %v1289_v43 = vpack.c.bf16 (!%p1232_p11), %v969_v34, %v968_v30 }
 0x16a   : > { %v881_v59 = vadd.f32 %v1428_v5, %v1378_v55  ;;  %v1381_v60 = vadd.f32 %v1380_v58, %v1379_v56  ;;  %922 = sbr.rel (%p1232_p11) target bundleno = 383 (0x17f), region = 66  ;;  %v926_v5 = vld [vmem:[#allocation2 + $0x18] sm:$0xff] (!%p1232_p11)  ;;  %v973_v47 = vmax.f32 (!%p1232_p11), %v957_v41, 0.0 }
 0x16b   : > { %v949_v10 = vadd.f32 (!%p1232_p11), %v1233_v3, %v926_v5  ;;  %1313 = vst [vmem:[%s1807_s3 + $0x18] sm:$0xff] (!%p1232_p11), %v1289_v43  }
 0x16c   : > { %v901_v62 = vadd.f32 %v881_v59, %v339_v57  ;;  %v884_v63 = vadd.f32 %v1429_v11, %v1381_v60  ;;  %v928_v11 = vld [vmem:[#allocation2 + $0x28] sm:$0xff] (!%p1232_p11)  ;;  %v1299_v53 = vpack.c.bf16 (!%p1232_p11), %v973_v47, %v972_v45 }
 0x16d   : > { %v951_v17 = vadd.f32 (!%p1232_p11), %v1233_v3, %v928_v11  ;;  %v965_v23 = vmax.f32 (!%p1232_p11), %v949_v10, 0.0  ;;  %v935_v27 = vld [vmem:[#allocation2 + $0x60] sm:$0xff] (!%p1232_p11) }
 0x16e   : > { %917 = vst [vmem:[#allocation2 + $0x70] sm:$0xff] %v901_v62  ;;  %v902_v0 = vadd.f32 %v884_v63, %v340_v61  ;;  %v958_v42 = vadd.f32 (!%p1232_p11), %v1233_v3, %v935_v27  ;;  %1315 = vst [vmem:[%s1807_s3 + $0x28] sm:$0xff] (!%p1232_p11), %v1299_v53  }
 0x16f   : > { %v967_v29 = vmax.f32 (!%p1232_p11), %v951_v17, 0.0  ;;  %v936_v32 = vld [vmem:[#allocation2 + $0x68] sm:$0xff] (!%p1232_p11)  ;;  %v1279_v33 = vpack.c.bf16 (!%p1232_p11), %v965_v23, %v964_v22 }
 0x170   : > { %918 = vst [vmem:[#allocation2 + $0x78] sm:$0xff] %v902_v0  ;;  %v959_v46 = vadd.f32 (!%p1232_p11), %v1233_v3, %v936_v32  ;;  %v974_v48 = vmax.f32 (!%p1232_p11), %v958_v42, 0.0 }
 0x171   : > { %v1284_v39 = vpack.c.bf16 %v967_v29, %v966_v24  ;;  %1311 = vst [vmem:[%s1807_s3 + $0x8] sm:$0xff] %v1279_v33  }
 0x172   : > { %v975_v52 = vmax.f32 %v959_v46, 0.0 }
 0x173   : > { %1312 = vst [vmem:[%s1807_s3 + $0x10] sm:$0xff] %v1284_v39  }
 0x174   : > { %v1304_v56 = vpack.c.bf16 %v975_v52, %v974_v48 }
 0x175   : > { %v937_v37 = vld [vmem:[#allocation2 + $0x70] sm:$0xff] }
 0x176   : > { %v960_v49 = vadd.f32 %v1233_v3, %v937_v37  ;;  %1316 = vst [vmem:[%s1807_s3 + $0x30] sm:$0xff] %v1304_v56  }
 0x177   : > { %v938_v38 = vld [vmem:[#allocation2 + $0x78] sm:$0xff] }
 0x178   : > { %v961_v50 = vadd.f32 %v1233_v3, %v938_v38  ;;  %v976_v54 = vmax.f32 %v960_v49, 0.0 }
 0x17a   : > { %v977_v55 = vmax.f32 %v961_v50, 0.0 }
 0x17c   : > { %v1309_v57 = vpack.c.bf16 %v977_v55, %v976_v54 }
 0x17e   : > { %1317 = vst [vmem:[%s1807_s3 + $0x38] sm:$0xff] %v1309_v57  }
 0x17f PF: > { %s13_s16 = sadd.s32 1, %s1567_s16   ;;  %s1808_s12 = smov %s1555_s13 }
 0x180   : > { %p10_p12 = scmp.ge.s32.totalorder %s13_s16, 5   ;;  %s1809_s13 = smov %s1625_s20 }
 0x181   : > { %s1810_s14 = smov %s1563_s15  ;;  %s1811_s15 = smov %s1813_s17 }
 0x182   :  { %12 = sbr.rel (!%p10_p12) target bundleno = 3 (0x3), region = 110 }

// kernel: _lambda_.24
= control target key start
LH: loop header
LB: loop body
LE: loop exit
PB: predicated region body
PF: predicated region fallthrough
CT: control target
= control target key end

     0   :  { %s1281_s15 = smov 0   ;;  %s1283_s16 = smov 0   ;;  %s1423_s0 = inlined_call_operand.vmem [shape: bf16[32,1152], index: 0, kind: input, shape index: {}]   ;;  %s1424_s1 = inlined_call_operand.vmem [shape: bf16[1152,256], index: 1, kind: input, shape index: {}]   ;;  %s1425_s2 = inlined_call_operand.vmem [shape: f32[1,256], index: 2, kind: input, shape index: {}]   ;;  %s1426_s3 = inlined_call_operand.vmem [shape: bf16[32,128], index: 3, kind: output, shape index: {0}]   ;;  %s1427_s4 = inlined_call_operand.vmem [shape: bf16[32,128], index: 4, kind: output, shape index: {1}]  }
   0x1   :  { %s1285_s17 = smov 0   ;;  %s1287_s18 = smov 0  }
   0x2   :  { %s1289_s19 = smov 0  }
   0x3 LB: > { %s24_s20 = sadd.s32 1, %s1248_s18  ;;  %p43_p1 = scmp.ne.s32.totalorder %s1240_s16, %s1236_s15  ;;  %s1252_s19 = sphi %s1289_s19, %s15_s19   ;;  %s1248_s18 = sphi %s1287_s18, %s1431_s18   ;;  %s1244_s17 = sphi %s1285_s17, %s1430_s17   ;;  %s1240_s16 = sphi %s1283_s16, %s1429_s16   ;;  %s1236_s15 = sphi %s1281_s15, %s1428_s15  }
   0x4   : > { %p25_p0 = scmp.ge.s32.totalorder %s24_s20, 3  ;;  %p44_p2 = scmp.eq.s32.totalorder %s1252_s19, 0 }
   0x5   : > { %s36_s22 = sadd.s32 1, %s1240_s16  ;;  %p967_p5 = scmp.ge.s32.totalorder %s1252_s19, 3 }
   0x6   : > { %s1433_s20 = smov (%p25_p0, %s24_s20), 0  ;;  %p45_p3 = por %p44_p2, %p43_p1 }
   0x7   : > { %s32_s21 = ssub.s32 %s1248_s18, %s1433_s20  ;;  %171 = sbr.rel (%p967_p5) target bundleno = 23 (0x17), region = 20 }
   0x8   : > { %p34_p4 = scmp.eq.s32.totalorder %s32_s21, 0 }
   0xa   : > { %s1316_s23 = scalar_select %p34_p4, %s1240_s16, %s36_s22  }
   0xe   : > { %174 = sbr.rel (!%p45_p3) target bundleno = 23 (0x17), region = 24  ;;  %s176_s24 = sand.u32 (%p45_p3), 1, %s1240_s16  }
   0xf   : > { %s1050_s25 = smul.u32 (%p45_p3), 12, %s1248_s18 }
  0x10   : > { %s1090_s26 = smul.u32 (%p45_p3), 48, %s176_s24 }
  0x11   : > { %s184_s29 = scalar_lea.vmem (%p45_p3), %s1423_s0, %s1050_s25 }
  0x12   : > { %v199_v0 = vld [vmem:[%s184_s29] sm:$0xff] (%p45_p3)  ;;  %v203_v2 = vld [vmem:[%s184_s29 + $0x48] sm:$0xff] (%p45_p3)  ;;  %s178_s30 = scalar_lea.vmem (%p45_p3), [#allocation3], %s1090_s26  ;;  %v973_v6 = vld [vmem:[%s184_s29 + $0x50] sm:$0xf] (%p45_p3) }
  0x13   : > { %v201_v1 = vld [vmem:[%s184_s29 + $0x24] sm:$0xff] (%p45_p3)  ;;  %200 = vst [vmem:[%s178_s30] sm:$0xff] (%p45_p3), %v199_v0  ;;  %204 = vst [vmem:[%s178_s30 + $0x18] sm:$0xff] (%p45_p3), %v203_v2  ;;  %v205_v3 = vld [vmem:[%s184_s29 + $0x6c] sm:$0xff] (%p45_p3) }
  0x14   : > { %202 = vst [vmem:[%s178_s30 + $0xc] sm:$0xff] (%p45_p3), %v201_v1  ;;  %v969_v4 = vld [vmem:[%s184_s29 + $0x8] sm:$0xf] (%p45_p3)  ;;  %v971_v5 = vld [vmem:[%s184_s29 + $0x2c] sm:$0xf] (%p45_p3)  ;;  %206 = vst [vmem:[%s178_s30 + $0x24] sm:$0xff] (%p45_p3), %v205_v3 }
  0x15   : > { %970 = vst [vmem:[%s178_s30 + $0x8] sm:$0xf] %v969_v4  ;;  %972 = vst [vmem:[%s178_s30 + $0x14] sm:$0xf] %v971_v5  ;;  %v975_v7 = vld [vmem:[%s184_s29 + $0x74] sm:$0xf] }
  0x16   : > { %974 = vst [vmem:[%s178_s30 + $0x20] sm:$0xf] %v973_v6  ;;  %976 = vst [vmem:[%s178_s30 + $0x2c] sm:$0xf] %v975_v7 }
  0x17 PF: > { %p977_p6 = scmp.ge.s32.totalorder %s1252_s19, 1  ;;  %p236_p7 = scmp.lt.s32.totalorder %s1252_s19, 4 }
  0x19   : > { %p237_p8 = pnand %p977_p6, %p236_p7 }
  0x1a   : > { %s243_s5 = sand.u32 (!%p237_p8), 1, %s1236_s15   ;;  %s281_s6 = smul.u32 (!%p237_p8), 48, %s1244_s17 }
  0x1b   : > { %240 = sbr.rel (%p237_p8) target bundleno = 347 (0x15b), region = 54  ;;  %p980_p10 = scmp.ne.s32.totalorder (!%p237_p8), %s1244_s17, 0 }
  0x1c   : > { %s1091_s7 = smul.u32 (!%p237_p8), 48, %s243_s5  ;;  %p282_p9 = scmp.lt.s32.totalorder (!%p237_p8), %s281_s6, 143 }
  0x1e   : > { %s1333_s12 = scalar_lea.vmem (!%p237_p8), [#allocation3], %s1091_s7 }
  0x22   : > { %s1435_s6 = smov (!%p282_p9, %s281_s6), 143  ;;  %304 = sbr.rel (%p980_p10) target bundleno = 41 (0x29), region = 62 }
  0x23   : > { %s1051_s8 = sshll.u32 %s1435_s6, 3  ;;  %v1254_v8 = vmov (!%p980_p10), 0.0  }
  0x24   : > { %s1331_s11 = scalar_lea.vmem %s1424_s1, %s1051_s8  ;;  %305 = vst [vmem:[#allocation2] sm:$0xff] (!%p980_p10), %v1254_v8  ;;  %306 = vst [vmem:[#allocation2 + $0x8] sm:$0xff] (!%p980_p10), %v1254_v8 }
  0x25   : > { %307 = vst [vmem:[#allocation2 + $0x10] sm:$0xff] (!%p980_p10), %v1254_v8  ;;  %308 = vst [vmem:[#allocation2 + $0x18] sm:$0xff] (!%p980_p10), %v1254_v8 }
  0x26   : > { %309 = vst [vmem:[#allocation2 + $0x20] sm:$0xff] (!%p980_p10), %v1254_v8  ;;  %310 = vst [vmem:[#allocation2 + $0x28] sm:$0xff] (!%p980_p10), %v1254_v8 }
  0x27   : > { %311 = vst [vmem:[#allocation2 + $0x30] sm:$0xff] (!%p980_p10), %v1254_v8  ;;  %312 = vst [vmem:[#allocation2 + $0x38] sm:$0xff] (!%p980_p10), %v1254_v8 }
  0x29 PF: > { %v1134_v9 = vld [vmem:[%s1331_s11 + $0x4] ss:$8 sps:$4 sm:$0xff]   ;;  %v1136_v10 = vld [vmem:[%s1331_s11] ss:$8 sps:$4 sm:$0xff]   ;;  %v1255_v11 = vmov 0   ;;  %p1035_p11 = scmp.ne.s32.totalorder %s1244_s17, 2 }
  0x2a   : > { %734 = vmatprep.mubr.bf16.mxu0 %v1255_v11  ;;  %649 = vmatprep.subr.bf16.mxu1 %v1134_v9  ;;  %v1137_v12 = vld [vmem:[%s1331_s11 + $0x14] ss:$8 sps:$4 sm:$0xff]   ;;  %v1139_v13 = vld [vmem:[%s1331_s11 + $0x10] ss:$8 sps:$4 sm:$0xff]   ;;  %v1140_v14 = vld [vmem:[%s1331_s11 + $0x24] ss:$8 sps:$4 sm:$0xff]  }
  0x2b   : > { %650 = vmatpush1.bf16.msra.mxu1 %v1136_v10  ;;  %v1142_v15 = vld [vmem:[%s1331_s11 + $0x20] ss:$8 sps:$4 sm:$0xff]   ;;  %v1143_v16 = vld [vmem:[%s1331_s11 + $0x34] ss:$8 sps:$4 sm:$0xff]   ;;  %v1145_v17 = vld [vmem:[%s1331_s11 + $0x30] ss:$8 sps:$4 sm:$0xff]  }
  0x2c   : > { %651 = vmatprep.subr.bf16.mxu1 %v1137_v12  ;;  %v1158_v18 = vld [vmem:[%s1331_s11 + $0x104] ss:$8 sps:$4 sm:$0xff]   ;;  %v1160_v19 = vld [vmem:[%s1331_s11 + $0x100] ss:$8 sps:$4 sm:$0xff]   ;;  %v1164_v21 = vld [vmem:[%s1331_s11 + $0x114] ss:$8 sps:$4 sm:$0xff]  }
  0x2d   : > { %v1146_v20 = vld [vmem:[%s1331_s11 + $0x44] ss:$8 sps:$4 sm:$0xff]   ;;  %702 = vmatprep.subr.bf16.mxu0 %v1158_v18  ;;  %v1166_v22 = vld [vmem:[%s1331_s11 + $0x110] ss:$8 sps:$4 sm:$0xff]   ;;  %v1148_v23 = vld [vmem:[%s1331_s11 + $0x40] ss:$8 sps:$4 sm:$0xff]  }
  0x2e   : > { %703 = vmatpush1.bf16.msra.mxu0 %v1160_v19  ;;  %v1149_v24 = vld [vmem:[%s1331_s11 + $0x54] ss:$8 sps:$4 sm:$0xff]   ;;  %v1170_v25 = vld [vmem:[%s1331_s11 + $0x124] ss:$8 sps:$4 sm:$0xff]   ;;  %v1172_v26 = vld [vmem:[%s1331_s11 + $0x120] ss:$8 sps:$4 sm:$0xff]  }
  0x2f   : > { %652 = vmatpush1.bf16.msra.mxu1 %v1139_v13  ;;  %704 = vmatprep.subr.bf16.mxu0 %v1164_v21  ;;  %v1151_v27 = vld [vmem:[%s1331_s11 + $0x50] ss:$8 sps:$4 sm:$0xff]   ;;  %v1176_v28 = vld [vmem:[%s1331_s11 + $0x134] ss:$8 sps:$4 sm:$0xff]   ;;  %v1152_v29 = vld [vmem:[%s1331_s11 + $0x64] ss:$8 sps:$4 sm:$0xff]  }
  0x30   : > { %653 = vmatprep.subr.bf16.mxu1 %v1140_v14  ;;  %v1178_v30 = vld [vmem:[%s1331_s11 + $0x130] ss:$8 sps:$4 sm:$0xff]   ;;  %v1154_v31 = vld [vmem:[%s1331_s11 + $0x60] ss:$8 sps:$4 sm:$0xff]   ;;  %v1182_v32 = vld [vmem:[%s1331_s11 + $0x144] ss:$8 sps:$4 sm:$0xff]  }
  0x31   : > { %v1155_v33 = vld [vmem:[%s1331_s11 + $0x74] ss:$8 sps:$4 sm:$0xff]   ;;  %v1184_v34 = vld [vmem:[%s1331_s11 + $0x140] ss:$8 sps:$4 sm:$0xff]   ;;  %v1157_v35 = vld [vmem:[%s1331_s11 + $0x70] ss:$8 sps:$4 sm:$0xff]  }
  0x32   : > { %705 = vmatpush1.bf16.msra.mxu0 %v1166_v22  ;;  %v1188_v36 = vld [vmem:[%s1331_s11 + $0x154] ss:$8 sps:$4 sm:$0xff]   ;;  %v1161_v37 = vld [vmem:[%s1331_s11 + $0x84] ss:$8 sps:$4 sm:$0xff]   ;;  %v1190_v38 = vld [vmem:[%s1331_s11 + $0x150] ss:$8 sps:$4 sm:$0xff]  }
  0x33   : > { %654 = vmatpush1.bf16.msra.mxu1 %v1142_v15  ;;  %706 = vmatprep.subr.bf16.mxu0 %v1170_v25  ;;  %v1163_v39 = vld [vmem:[%s1331_s11 + $0x80] ss:$8 sps:$4 sm:$0xff]   ;;  %v1194_v40 = vld [vmem:[%s1331_s11 + $0x164] ss:$8 sps:$4 sm:$0xff]   ;;  %v1167_v41 = vld [vmem:[%s1331_s11 + $0x94] ss:$8 sps:$4 sm:$0xff]  }
  0x34   : > { %655 = vmatprep.subr.bf16.mxu1 %v1143_v16  ;;  %v1169_v42 = vld [vmem:[%s1331_s11 + $0x90] ss:$8 sps:$4 sm:$0xff]   ;;  %v1196_v43 = vld [vmem:[%s1331_s11 + $0x160] ss:$8 sps:$4 sm:$0xff]   ;;  %v1200_v45 = vld [vmem:[%s1331_s11 + $0x174] ss:$8 sps:$4 sm:$0xff]  }
  0x35   : > { %v1209_v44 = vld [vmem:[%s1333_s12 + $0x4] ss:$12 sps:$4 sm:$0xff]   ;;  %v1206_v50 = vld [vmem:[%s1333_s12 + $0x8] ss:$12 sps:$4 sm:$0xff]   ;;  %v1210_v55 = vld [vmem:[%s1333_s12 + $0x20] ss:$12 sps:$4 sm:$0xff]  }
  0x36   : > { %707 = vmatpush1.bf16.msra.mxu0 %v1172_v26  ;;  %v1173_v46 = vld [vmem:[%s1331_s11 + $0xa4] ss:$8 sps:$4 sm:$0xff]   ;;  %681 = vmatprep.mubr.bf16.mxu1 %v1209_v44  ;;  %v1202_v47 = vld [vmem:[%s1331_s11 + $0x170] ss:$8 sps:$4 sm:$0xff]   ;;  %v1175_v48 = vld [vmem:[%s1331_s11 + $0xa0] ss:$8 sps:$4 sm:$0xff]  }
  0x37   : > { %656 = vmatpush1.bf16.msra.mxu1 %v1145_v17  ;;  %708 = vmatprep.subr.bf16.mxu0 %v1176_v28  ;;  %v1179_v49 = vld [vmem:[%s1331_s11 + $0xb4] ss:$8 sps:$4 sm:$0xff]   ;;  %v1181_v51 = vld [vmem:[%s1331_s11 + $0xb0] ss:$8 sps:$4 sm:$0xff]   ;;  %v1185_v52 = vld [vmem:[%s1331_s11 + $0xc4] ss:$8 sps:$4 sm:$0xff]  }
  0x38   : > { %657 = vmatprep.subr.bf16.mxu1 %v1146_v20  ;;  %v1187_v53 = vld [vmem:[%s1331_s11 + $0xc0] ss:$8 sps:$4 sm:$0xff]   ;;  %v1191_v54 = vld [vmem:[%s1331_s11 + $0xd4] ss:$8 sps:$4 sm:$0xff]   ;;  %v1193_v56 = vld [vmem:[%s1331_s11 + $0xd0] ss:$8 sps:$4 sm:$0xff]  }
  0x39   : > { %v1197_v57 = vld [vmem:[%s1331_s11 + $0xe4] ss:$8 sps:$4 sm:$0xff]   ;;  %v1199_v58 = vld [vmem:[%s1331_s11 + $0xe0] ss:$8 sps:$4 sm:$0xff]   ;;  %v1203_v59 = vld [vmem:[%s1331_s11 + $0xf4] ss:$8 sps:$4 sm:$0xff]  }
  0x3a   : > { %709 = vmatpush1.bf16.msra.mxu0 %v1178_v30  ;;  %v1205_v60 = vld [vmem:[%s1331_s11 + $0xf0] ss:$8 sps:$4 sm:$0xff]   ;;  %v313_v8 = vld [vmem:[#allocation2] sm:$0xff] }
  0x3b   : > { %658 = vmatpush1.bf16.msra.mxu1 %v1148_v23  ;;  %710 = vmatprep.subr.bf16.mxu0 %v1182_v32  ;;  %v1207_v61 = vld [vmem:[%s1333_s12] ss:$12 sps:$4 sm:$0xff]   ;;  %v1211_v62 = vld [vmem:[%s1333_s12 + $0x1c] ss:$12 sps:$4 sm:$0xff]   ;;  %v1213_v63 = vld [vmem:[%s1333_s12 + $0x18] ss:$12 sps:$4 sm:$0xff]  }
  0x3c   : > { %659 = vmatprep.subr.bf16.mxu1 %v1149_v24  ;;  %v315_v14 = vld [vmem:[#allocation2 + $0x10] sm:$0xff]  ;;  %v316_v18 = vld [vmem:[#allocation2 + $0x18] sm:$0xff]  ;;  %v317_v24 = vld [vmem:[#allocation2 + $0x20] sm:$0xff] }
  0x3d   : > { %v319_v30 = vld [vmem:[#allocation2 + $0x30] sm:$0xff] }
  0x3e   : > { %711 = vmatpush1.bf16.msra.mxu0 %v1184_v34  ;;  %v320_v34 = vld [vmem:[#allocation2 + $0x38] sm:$0xff] }
  0x3f   : > { %660 = vmatpush1.bf16.msra.mxu1 %v1151_v27  ;;  %712 = vmatprep.subr.bf16.mxu0 %v1188_v36  ;;  %v318_v27 = vld [vmem:[#allocation2 + $0x28] sm:$0xff] }
  0x40   : > { %661 = vmatprep.subr.bf16.mxu1 %v1152_v29 }
  0x42   : > { %713 = vmatpush1.bf16.msra.mxu0 %v1190_v38 }
  0x43   : > { %662 = vmatpush1.bf16.msra.mxu1 %v1154_v31  ;;  %714 = vmatprep.subr.bf16.mxu0 %v1194_v40  ;;  %v785_v40 = vlaneseq (!%p1035_p11) }
  0x44   : > { %663 = vmatprep.subr.bf16.mxu1 %v1155_v33 }
  0x46   : > { %715 = vmatpush1.bf16.msra.mxu0 %v1196_v43 }
  0x47   : > { %664 = vmatpush1.bf16.msra.mxu1 %v1157_v35  ;;  %716 = vmatprep.subr.bf16.mxu0 %v1200_v45 }
  0x48   : > { %665 = vmatprep.subr.bf16.mxu1 %v1161_v37 }
  0x4a   : > { %717 = vmatpush1.bf16.msra.mxu0 %v1202_v47 }
  0x4b   : > { %666 = vmatpush1.bf16.msra.mxu1 %v1163_v39 }
  0x4c   : > { %667 = vmatprep.subr.bf16.mxu1 %v1167_v41  ;;  %v786_v41 = vshrl.u32 (!%p1035_p11), %v785_v40, 7 }
  0x4d   : > { %735 = vmatmul.mubr.bf16.vlgmr.msra.gmra.mrb[0].mxu0 %v1206_v50 }
  0x4e   : > { %744 = vmatprep.mubr.bf16.mxu0 %v1255_v11  ;;  %v314_v11 = vld [vmem:[#allocation2 + $0x8] sm:$0xff]  ;;  %v787_v45 = vsub.s32 (!%p1035_p11), 0, %v786_v41 }
  0x4f   : > { %668 = vmatpush1.bf16.msra.mxu1 %v1169_v42  ;;  %v783_v42 = vld [vmem:[%s1425_s2] sm:$0x3] (!%p1035_p11) }
  0x50   : > { %669 = vmatprep.subr.bf16.mxu1 %v1173_v46  ;;  %v791_v46 = vsub.s32 (!%p1035_p11), 1, %v786_v41  ;;  %v788_v50 = vrot.slane (!%p1035_p11), %v783_v42, %v787_v45 }
  0x53   : > { %670 = vmatpush1.bf16.msra.mxu1 %v1175_v48 }
  0x54   : > { %671 = vmatprep.subr.bf16.mxu1 %v1179_v49 }
  0x55   : > { %745 = vmatmul.mubr.bf16.gmra.mrb[4].mxu0 %v1210_v55 }
  0x57   : > { %672 = vmatpush1.bf16.msra.mxu1 %v1181_v51 }
  0x58   : > { %673 = vmatprep.subr.bf16.mxu1 %v1185_v52  ;;  %v792_v52 = vrot.slane (!%p1035_p11), %v783_v42, %v791_v46 }
  0x5b   : > { %674 = vmatpush1.bf16.msra.mxu1 %v1187_v53 }
  0x5c   : > { %675 = vmatprep.subr.bf16.mxu1 %v1191_v54 }
  0x5f   : > { %676 = vmatpush1.bf16.msra.mxu1 %v1193_v56 }
  0x60   : > { %677 = vmatprep.subr.bf16.mxu1 %v1197_v57 }
  0x63   : > { %678 = vmatpush1.bf16.msra.mxu1 %v1199_v58 }
  0x64   : > { %679 = vmatprep.subr.bf16.mxu1 %v1203_v59 }
  0x67   : > { %680 = vmatpush1.bf16.msra.mxu1 %v1205_v60 }
  0x6a   : > { %682 = vmatmul.mubr.bf16.vlgmr.msra.gmra.mrb[0].mxu1 %v1207_v61 }
  0x6b   : > { %691 = vmatprep.mubr.bf16.mxu1 %v1211_v62 }
  0x72   : > { %692 = vmatmul.mubr.bf16.gmra.mrb[4].mxu1 %v1213_v63 }
 0x120   : > { %v736_v0 = vpop.f32.mrb[0].mxu0 }
 0x121   : > { %v738_v1 = vpop.f32.mrb[1].mxu0 }
 0x122   : > { %v740_v2 = vpop.f32.mrb[2].mxu0 }
 0x123   : > { %v742_v3 = vpop.f32.mrb[3].mxu0 }
 0x128   : > { %v746_v4 = vpop.f32.mrb[4].mxu0 }
 0x129   : > { %v748_v5 = vpop.f32.mrb[5].mxu0 }
 0x12a   : > { %v750_v6 = vpop.f32.mrb[6].mxu0 }
 0x12b   : > { %v752_v7 = vpop.f32.mrb[7].mxu0 }
 0x13d   : > { %v683_v9 = vpop.f32.mrb[0].mxu1 }
 0x13e   : > { %v737_v10 = vadd.f32 %v736_v0, %v683_v9  ;;  %v685_v12 = vpop.f32.mrb[1].mxu1 }
 0x13f   : > { %v739_v13 = vadd.f32 %v738_v1, %v685_v12  ;;  %v687_v15 = vpop.f32.mrb[2].mxu1 }
 0x140   : > { %v755_v16 = vadd.f32 %v737_v10, %v313_v8  ;;  %v741_v17 = vadd.f32 %v740_v2, %v687_v15  ;;  %v689_v19 = vpop.f32.mrb[3].mxu1 }
 0x141   : > { %v756_v20 = vadd.f32 %v739_v13, %v314_v11  ;;  %v743_v21 = vadd.f32 %v742_v3, %v689_v19 }
 0x142   : > { %763 = vst [vmem:[#allocation2] sm:$0xff] %v755_v16  ;;  %v757_v22 = vadd.f32 %v741_v17, %v315_v14 }
 0x143   : > { %764 = vst [vmem:[#allocation2 + $0x8] sm:$0xff] %v756_v20  ;;  %v758_v23 = vadd.f32 %v743_v21, %v316_v18 }
 0x144   : > { %765 = vst [vmem:[#allocation2 + $0x10] sm:$0xff] %v757_v22 }
 0x145   : > { %766 = vst [vmem:[#allocation2 + $0x18] sm:$0xff] %v758_v23  ;;  %v693_v25 = vpop.f32.mrb[4].mxu1 }
 0x146   : > { %v747_v26 = vadd.f32 %v746_v4, %v693_v25  ;;  %v695_v28 = vpop.f32.mrb[5].mxu1 }
 0x147   : > { %v749_v29 = vadd.f32 %v748_v5, %v695_v28  ;;  %v697_v31 = vpop.f32.mrb[6].mxu1  ;;  %774 = sbr.rel (%p1035_p11) target bundleno = 347 (0x15b), region = 66 }
 0x148   : > { %v759_v32 = vadd.f32 %v747_v26, %v317_v24  ;;  %v751_v33 = vadd.f32 %v750_v6, %v697_v31  ;;  %v699_v35 = vpop.f32.mrb[7].mxu1 }
 0x149   : > { %v760_v36 = vadd.f32 %v749_v29, %v318_v27  ;;  %v753_v37 = vadd.f32 %v752_v7, %v699_v35  ;;  %v775_v43 = vld [vmem:[#allocation2] sm:$0xff] (!%p1035_p11) }
 0x14a   : > { %767 = vst [vmem:[#allocation2 + $0x20] sm:$0xff] %v759_v32  ;;  %v761_v38 = vadd.f32 %v751_v33, %v319_v30  ;;  %v776_v49 = vld [vmem:[#allocation2 + $0x8] sm:$0xff] (!%p1035_p11)  ;;  %v795_v55 = vadd.f32 (!%p1035_p11), %v788_v50, %v775_v43 }
 0x14b   : > { %768 = vst [vmem:[#allocation2 + $0x28] sm:$0xff] %v760_v36  ;;  %v762_v39 = vadd.f32 %v753_v37, %v320_v34  ;;  %v777_v44 = vld [vmem:[#allocation2 + $0x10] sm:$0xff] (!%p1035_p11)  ;;  %v796_v59 = vadd.f32 (!%p1035_p11), %v792_v52, %v776_v49 }
 0x14c   : > { %769 = vst [vmem:[#allocation2 + $0x30] sm:$0xff] %v761_v38  ;;  %v778_v51 = vld [vmem:[#allocation2 + $0x18] sm:$0xff] (!%p1035_p11)  ;;  %v797_v56 = vadd.f32 (!%p1035_p11), %v788_v50, %v777_v44  ;;  %v803_v63 = vmax.f32 (!%p1035_p11), %v795_v55, 0.0 }
 0x14d   : > { %770 = vst [vmem:[#allocation2 + $0x38] sm:$0xff] %v762_v39  ;;  %v798_v60 = vadd.f32 (!%p1035_p11), %v792_v52, %v778_v51 }
 0x14e   : > { %v804_v0 = vmax.f32 %v797_v56, 0.0 }
 0x14f   : > { %v1073_v3 = vpack.c.bf16 %v798_v60, %v796_v59 }
 0x150   : > { %v1063_v5 = vpack.c.bf16 %v804_v0, %v803_v63 }
 0x151   : > { %v779_v47 = vld [vmem:[#allocation2 + $0x20] sm:$0xff]  ;;  %1074 = vst [vmem:[%s1427_s4] sm:$0xff] %v1073_v3  }
 0x152   : > { %v780_v53 = vld [vmem:[#allocation2 + $0x28] sm:$0xff]  ;;  %v799_v57 = vadd.f32 %v788_v50, %v779_v47  ;;  %1064 = vst [vmem:[%s1426_s3] sm:$0xff] %v1063_v5  }
 0x153   : > { %v781_v48 = vld [vmem:[#allocation2 + $0x30] sm:$0xff]  ;;  %v800_v61 = vadd.f32 %v792_v52, %v780_v53 }
 0x154   : > { %v782_v54 = vld [vmem:[#allocation2 + $0x38] sm:$0xff]  ;;  %v801_v58 = vadd.f32 %v788_v50, %v781_v48  ;;  %v805_v1 = vmax.f32 %v799_v57, 0.0 }
 0x155   : > { %v802_v62 = vadd.f32 %v792_v52, %v782_v54 }
 0x156   : > { %v806_v2 = vmax.f32 %v801_v58, 0.0 }
 0x157   : > { %v1078_v4 = vpack.c.bf16 %v802_v62, %v800_v61 }
 0x158   : > { %v1068_v6 = vpack.c.bf16 %v806_v2, %v805_v1 }
 0x159   : > { %1081 = vst [vmem:[%s1427_s4 + $0x8] sm:$0xff] %v1078_v4  }
 0x15a   : > { %1080 = vst [vmem:[%s1426_s3 + $0x8] sm:$0xff] %v1068_v6  }
 0x15b PF: > { %s15_s19 = sadd.s32 1, %s1252_s19   ;;  %s1428_s15 = smov %s1240_s16 }
 0x15c   : > { %p12_p12 = scmp.ge.s32.totalorder %s15_s19, 5   ;;  %s1429_s16 = smov %s1316_s23 }
 0x15d   : > { %s1430_s17 = smov %s1248_s18  ;;  %s1431_s18 = smov %s1433_s20 }
 0x15e   :  { %14 = sbr.rel (!%p12_p12) target bundleno = 3 (0x3), region = 122 }

// kernel: _lambda_.26
= control target key start
LH: loop header
LB: loop body
LE: loop exit
PB: predicated region body
PF: predicated region fallthrough
CT: control target
= control target key end

     0   :  { %s1002_s12 = smov 0   ;;  %s1004_s13 = smov 0   ;;  %s1112_s0 = inlined_call_operand.vmem [shape: bf16[32,1152], index: 0, kind: input, shape index: {}]   ;;  %s1113_s1 = inlined_call_operand.vmem [shape: bf16[1152,128], index: 1, kind: input, shape index: {}]   ;;  %s1114_s2 = inlined_call_operand.vmem [shape: f32[1,128], index: 2, kind: input, shape index: {}]   ;;  %s1115_s3 = inlined_call_operand.vmem [shape: bf16[32,128], index: 3, kind: output, shape index: {}]  }
   0x1   :  { %s1006_s14 = smov 0   ;;  %s1008_s15 = smov 0  }
   0x2   :  { %s1010_s16 = smov 0  }
   0x3 LB: > { %s22_s17 = sadd.s32 1, %s975_s15  ;;  %p41_p1 = scmp.ne.s32.totalorder %s967_s13, %s963_s12  ;;  %s979_s16 = sphi %s1010_s16, %s13_s16   ;;  %s975_s15 = sphi %s1008_s15, %s1119_s15   ;;  %s971_s14 = sphi %s1006_s14, %s1118_s14   ;;  %s967_s13 = sphi %s1004_s13, %s1117_s13   ;;  %s963_s12 = sphi %s1002_s12, %s1116_s12  }
   0x4   : > { %p23_p0 = scmp.ge.s32.totalorder %s22_s17, 3  ;;  %p42_p2 = scmp.eq.s32.totalorder %s979_s16, 0 }
   0x5   : > { %s34_s19 = sadd.s32 1, %s967_s13  ;;  %p739_p5 = scmp.ge.s32.totalorder %s979_s16, 3 }
   0x6   : > { %s1121_s17 = smov (%p23_p0, %s22_s17), 0  ;;  %p43_p3 = por %p42_p2, %p41_p1 }
   0x7   : > { %s30_s18 = ssub.s32 %s975_s15, %s1121_s17  ;;  %143 = sbr.rel (%p739_p5) target bundleno = 23 (0x17), region = 20 }
   0x8   : > { %p32_p4 = scmp.eq.s32.totalorder %s30_s18, 0 }
   0xa   : > { %s1037_s20 = scalar_select %p32_p4, %s967_s13, %s34_s19  }
   0xe   : > { %146 = sbr.rel (!%p43_p3) target bundleno = 23 (0x17), region = 24  ;;  %s148_s21 = sand.u32 (%p43_p3), 1, %s967_s13  }
   0xf   : > { %s792_s22 = smul.u32 (%p43_p3), 12, %s975_s15 }
  0x10   : > { %s866_s23 = smul.u32 (%p43_p3), 48, %s148_s21 }
  0x11   : > { %s156_s26 = scalar_lea.vmem (%p43_p3), %s1112_s0, %s792_s22 }
  0x12   : > { %v171_v0 = vld [vmem:[%s156_s26] sm:$0xff] (%p43_p3)  ;;  %v175_v2 = vld [vmem:[%s156_s26 + $0x48] sm:$0xff] (%p43_p3)  ;;  %s150_s27 = scalar_lea.vmem (%p43_p3), [#allocation3], %s866_s23  ;;  %v745_v6 = vld [vmem:[%s156_s26 + $0x50] sm:$0xf] (%p43_p3) }
  0x13   : > { %v173_v1 = vld [vmem:[%s156_s26 + $0x24] sm:$0xff] (%p43_p3)  ;;  %172 = vst [vmem:[%s150_s27] sm:$0xff] (%p43_p3), %v171_v0  ;;  %176 = vst [vmem:[%s150_s27 + $0x18] sm:$0xff] (%p43_p3), %v175_v2  ;;  %v177_v3 = vld [vmem:[%s156_s26 + $0x6c] sm:$0xff] (%p43_p3) }
  0x14   : > { %174 = vst [vmem:[%s150_s27 + $0xc] sm:$0xff] (%p43_p3), %v173_v1  ;;  %v741_v4 = vld [vmem:[%s156_s26 + $0x8] sm:$0xf] (%p43_p3)  ;;  %v743_v5 = vld [vmem:[%s156_s26 + $0x2c] sm:$0xf] (%p43_p3)  ;;  %178 = vst [vmem:[%s150_s27 + $0x24] sm:$0xff] (%p43_p3), %v177_v3 }
  0x15   : > { %742 = vst [vmem:[%s150_s27 + $0x8] sm:$0xf] %v741_v4  ;;  %744 = vst [vmem:[%s150_s27 + $0x14] sm:$0xf] %v743_v5  ;;  %v747_v7 = vld [vmem:[%s156_s26 + $0x74] sm:$0xf] }
  0x16   : > { %746 = vst [vmem:[%s150_s27 + $0x20] sm:$0xf] %v745_v6  ;;  %748 = vst [vmem:[%s150_s27 + $0x2c] sm:$0xf] %v747_v7 }
  0x17 PF: > { %p749_p6 = scmp.ge.s32.totalorder %s979_s16, 1  ;;  %p207_p7 = scmp.lt.s32.totalorder %s979_s16, 4 }
  0x19   : > { %p208_p8 = pnand %p749_p6, %p207_p7 }
  0x1a   : > { %s214_s28 = sand.u32 (!%p208_p8), 1, %s963_s12   ;;  %s244_s29 = smul.u32 (!%p208_p8), 48, %s971_s14 }
  0x1b   : > { %211 = sbr.rel (%p208_p8) target bundleno = 318 (0x13e), region = 54  ;;  %p751_p10 = scmp.ne.s32.totalorder (!%p208_p8), %s971_s14, 0 }
  0x1c   : > { %s867_s30 = smul.u32 (!%p208_p8), 48, %s214_s28  ;;  %p245_p9 = scmp.lt.s32.totalorder (!%p208_p8), %s244_s29, 143 }
  0x1e   : > { %s1054_s8 = scalar_lea.vmem (!%p208_p8), [#allocation3], %s867_s30 }
  0x22   : > { %s1123_s29 = smov (!%p245_p9, %s244_s29), 143  ;;  %260 = sbr.rel (%p751_p10) target bundleno = 41 (0x29), region = 62 }
  0x23   : > { %s750_s4 = sshll.u32 %s1123_s29, 2  ;;  %v981_v8 = vmov (!%p751_p10), 0.0  }
  0x24   : > { %s1052_s7 = scalar_lea.vmem %s1113_s1, %s750_s4  ;;  %261 = vst [vmem:[#allocation2] sm:$0xff] (!%p751_p10), %v981_v8  ;;  %262 = vst [vmem:[#allocation2 + $0x8] sm:$0xff] (!%p751_p10), %v981_v8 }
  0x25   : > { %263 = vst [vmem:[#allocation2 + $0x10] sm:$0xff] (!%p751_p10), %v981_v8  ;;  %264 = vst [vmem:[#allocation2 + $0x18] sm:$0xff] (!%p751_p10), %v981_v8 }
  0x29 PF: > { %v909_v9 = vld [vmem:[%s1052_s7 + $0x40] sm:$0xff]   ;;  %v912_v12 = vld [vmem:[%s1052_s7 + $0x48] sm:$0xff]   ;;  %v915_v15 = vld [vmem:[%s1052_s7 + $0x50] sm:$0xff]   ;;  %p782_p11 = scmp.ne.s32.totalorder %s971_s14, 2 }
  0x2a   : > { %v910_v10 = vld [vmem:[%s1052_s7] sm:$0xff]   ;;  %808 = vmatprep.subr.bf16.mxu0 %v909_v9  ;;  %v913_v13 = vld [vmem:[%s1052_s7 + $0x8] sm:$0xff]   ;;  %v916_v16 = vld [vmem:[%s1052_s7 + $0x10] sm:$0xff]  }
  0x2b   : > { %v911_v11 = vld [vmem:[%s1052_s7 + $0x80] sm:$0xff]   ;;  %809 = vmatpush3.bf16.msra.mxu0 %v910_v10  ;;  %v914_v14 = vld [vmem:[%s1052_s7 + $0x88] sm:$0xff]   ;;  %v917_v17 = vld [vmem:[%s1052_s7 + $0x90] sm:$0xff]  }
  0x2c   : > { %846 = vmatprep.subr.bf16.mxu1 %v911_v11  ;;  %810 = vmatprep.subr.bf16.mxu0 %v912_v12  ;;  %v918_v18 = vld [vmem:[%s1052_s7 + $0x58] sm:$0xff]   ;;  %v921_v21 = vld [vmem:[%s1052_s7 + $0x60] sm:$0xff]   ;;  %v924_v24 = vld [vmem:[%s1052_s7 + $0x68] sm:$0xff]  }
  0x2d   : > { %847 = vmatpush3.bf16.msra.mxu1 %v911_v11  ;;  %v919_v19 = vld [vmem:[%s1052_s7 + $0x18] sm:$0xff]   ;;  %v923_v22 = vld [vmem:[%s1052_s7 + $0xa0] sm:$0xff]   ;;  %v926_v25 = vld [vmem:[%s1052_s7 + $0xa8] sm:$0xff]  }
  0x2e   : > { %848 = vmatprep.subr.bf16.mxu1 %v914_v14  ;;  %v920_v20 = vld [vmem:[%s1052_s7 + $0x98] sm:$0xff]   ;;  %v922_v23 = vld [vmem:[%s1052_s7 + $0x20] sm:$0xff]   ;;  %v925_v26 = vld [vmem:[%s1052_s7 + $0x28] sm:$0xff]  }
  0x2f   : > { %811 = vmatpush3.bf16.msra.mxu0 %v913_v13  ;;  %v927_v27 = vld [vmem:[%s1052_s7 + $0x70] sm:$0xff]   ;;  %v930_v30 = vld [vmem:[%s1052_s7 + $0x78] sm:$0xff]   ;;  %v265_v45 = vld [vmem:[#allocation2] sm:$0xff] }
  0x30   : > { %812 = vmatprep.subr.bf16.mxu0 %v915_v15  ;;  %v928_v28 = vld [vmem:[%s1052_s7 + $0x30] sm:$0xff]   ;;  %v932_v31 = vld [vmem:[%s1052_s7 + $0xb8] sm:$0xff]   ;;  %v266_v50 = vld [vmem:[#allocation2 + $0x8] sm:$0xff] }
  0x31   : > { %849 = vmatpush3.bf16.msra.mxu1 %v914_v14  ;;  %v929_v29 = vld [vmem:[%s1052_s7 + $0xb0] sm:$0xff]   ;;  %v931_v34 = vld [vmem:[%s1052_s7 + $0x38] sm:$0xff]   ;;  %v783_v5 = vld [vmem:[%s1114_s2] ss:$0 sm:$0xff] (!%p782_p11) }
  0x32   : > { %850 = vmatprep.subr.bf16.mxu1 %v917_v17  ;;  %v935_v32 = vld [vmem:[%s1054_s8 + $0x4] ss:$12 sps:$4 sm:$0xff]   ;;  %v936_v33 = vld [vmem:[%s1054_s8 + $0x8] ss:$12 sps:$4 sm:$0xff]   ;;  %v933_v35 = vld [vmem:[%s1054_s8] ss:$12 sps:$4 sm:$0xff]  }
  0x33   : > { %813 = vmatpush3.bf16.msra.mxu0 %v916_v16  ;;  %533 = vmatprep.mubr.bf16.mxu0 %v935_v32  ;;  %v938_v36 = vld [vmem:[%s1054_s8 + $0x1c] ss:$12 sps:$4 sm:$0xff]   ;;  %v937_v37 = vld [vmem:[%s1054_s8 + $0x20] ss:$12 sps:$4 sm:$0xff]   ;;  %v940_v38 = vld [vmem:[%s1054_s8 + $0x18] ss:$12 sps:$4 sm:$0xff]  }
  0x34   : > { %814 = vmatprep.subr.bf16.mxu0 %v918_v18  ;;  %862 = vmatprep.mubr.bf16.mxu1 %v936_v33  ;;  %v267_v59 = vld [vmem:[#allocation2 + $0x10] sm:$0xff]  ;;  %v268_v63 = vld [vmem:[#allocation2 + $0x18] sm:$0xff] }
  0x35   : > { %851 = vmatpush3.bf16.msra.mxu1 %v917_v17 }
  0x36   : > { %852 = vmatprep.subr.bf16.mxu1 %v920_v20 }
  0x37   : > { %815 = vmatpush3.bf16.msra.mxu0 %v919_v19 }
  0x38   : > { %816 = vmatprep.subr.bf16.mxu0 %v921_v21 }
  0x39   : > { %853 = vmatpush3.bf16.msra.mxu1 %v920_v20 }
  0x3a   : > { %854 = vmatprep.subr.bf16.mxu1 %v923_v22 }
  0x3b   : > { %817 = vmatpush3.bf16.msra.mxu0 %v922_v23 }
  0x3c   : > { %818 = vmatprep.subr.bf16.mxu0 %v924_v24 }
  0x3d   : > { %855 = vmatpush3.bf16.msra.mxu1 %v923_v22 }
  0x3e   : > { %856 = vmatprep.subr.bf16.mxu1 %v926_v25 }
  0x3f   : > { %819 = vmatpush3.bf16.msra.mxu0 %v925_v26 }
  0x40   : > { %820 = vmatprep.subr.bf16.mxu0 %v927_v27 }
  0x41   : > { %857 = vmatpush3.bf16.msra.mxu1 %v926_v25 }
  0x42   : > { %858 = vmatprep.subr.bf16.mxu1 %v929_v29 }
  0x43   : > { %821 = vmatpush3.bf16.msra.mxu0 %v928_v28 }
  0x44   : > { %822 = vmatprep.subr.bf16.mxu0 %v930_v30 }
  0x45   : > { %859 = vmatpush3.bf16.msra.mxu1 %v929_v29 }
  0x46   : > { %860 = vmatprep.subr.bf16.mxu1 %v932_v31 }
  0x47   : > { %823 = vmatpush3.bf16.msra.mxu0 %v931_v34 }
  0x49   : > { %861 = vmatpush3.bf16.msra.mxu1 %v932_v31 }
  0x4a   : > { %534 = vmatmul.mubr.bf16.vlgmr.msra.gmra.mrb[0].mxu0 %v933_v35 }
  0x4b   : > { %541 = vmatprep.mubr.bf16.mxu0 %v938_v36 }
  0x4c   : > { %863 = vmatmul.mubr.bf16.vlgmr.msra.gmra.mrb[0].mxu1 %v937_v37 }
  0x52   : > { %542 = vmatmul.mubr.bf16.gmra.mrb[4].mxu0 %v940_v38 }
 0x11d   : > { %v824_v39 = vpop.f32.mrb[0].mxu0 }
 0x11e   : > { %v825_v40 = vpop.f32.mrb[1].mxu0 }
 0x11f   : > { %v826_v41 = vadd.f32 %v825_v40, %v824_v39  ;;  %v827_v42 = vpop.f32.mrb[2].mxu0  ;;  %v864_v43 = vpop.f32.mrb[0].mxu1 }
 0x120   : > { %v828_v44 = vpop.f32.mrb[3].mxu0  ;;  %v584_v46 = vpop.f32.mrb[1].mxu1 }
 0x121   : > { %v829_v47 = vadd.f32 %v828_v44, %v827_v42  ;;  %v585_v48 = vadd.f32 %v826_v41, %v584_v46  ;;  %v865_v49 = vpop.f32.mrb[2].mxu1 }
 0x122   : > { %v587_v51 = vpop.f32.mrb[3].mxu1 }
 0x123   : > { %v599_v52 = vadd.f32 %v585_v48, %v265_v45  ;;  %v588_v53 = vadd.f32 %v829_v47, %v587_v51 }
 0x125   : > { %603 = vst [vmem:[#allocation2] sm:$0xff] %v599_v52  ;;  %v600_v54 = vadd.f32 %v588_v53, %v266_v50  ;;  %v830_v55 = vpop.f32.mrb[4].mxu0 }
 0x126   : > { %v831_v56 = vpop.f32.mrb[5].mxu0 }
 0x127   : > { %604 = vst [vmem:[#allocation2 + $0x8] sm:$0xff] %v600_v54  ;;  %v832_v57 = vadd.f32 %v831_v56, %v830_v55  ;;  %v833_v58 = vpop.f32.mrb[6].mxu0 }
 0x128   : > { %v834_v60 = vpop.f32.mrb[7].mxu0 }
 0x129   : > { %v593_v61 = vadd.f32 %v864_v43, %v832_v57  ;;  %v835_v62 = vadd.f32 %v834_v60, %v833_v58  ;;  %610 = sbr.rel (%p782_p11) target bundleno = 318 (0x13e), region = 66 }
 0x12b   : > { %v601_v0 = vadd.f32 %v593_v61, %v267_v59  ;;  %v596_v1 = vadd.f32 %v865_v49, %v835_v62 }
 0x12c   : > { %v611_v3 = vld [vmem:[#allocation2] sm:$0xff] (!%p782_p11) }
 0x12d   : > { %605 = vst [vmem:[#allocation2 + $0x10] sm:$0xff] %v601_v0  ;;  %v602_v2 = vadd.f32 %v596_v1, %v268_v63  ;;  %v622_v6 = vadd.f32 (!%p782_p11), %v783_v5, %v611_v3 }
 0x12e   : > { %v612_v4 = vld [vmem:[#allocation2 + $0x8] sm:$0xff] (!%p782_p11) }
 0x12f   : > { %606 = vst [vmem:[#allocation2 + $0x18] sm:$0xff] %v602_v2  ;;  %v623_v7 = vadd.f32 (!%p782_p11), %v783_v5, %v612_v4  ;;  %v626_v12 = vmax.f32 (!%p782_p11), %v622_v6, 0.0 }
 0x131   : > { %v627_v13 = vmax.f32 %v623_v7, 0.0 }
 0x133   : > { %v800_v16 = vpack.c.bf16 %v627_v13, %v626_v12 }
 0x134   : > { %v613_v8 = vld [vmem:[#allocation2 + $0x10] sm:$0xff] }
 0x135   : > { %v624_v10 = vadd.f32 %v783_v5, %v613_v8  ;;  %801 = vst [vmem:[%s1115_s3] sm:$0xff] %v800_v16  }
 0x136   : > { %v614_v9 = vld [vmem:[#allocation2 + $0x18] sm:$0xff] }
 0x137   : > { %v625_v11 = vadd.f32 %v783_v5, %v614_v9  ;;  %v628_v14 = vmax.f32 %v624_v10, 0.0 }
 0x139   : > { %v629_v15 = vmax.f32 %v625_v11, 0.0 }
 0x13b   : > { %v805_v17 = vpack.c.bf16 %v629_v15, %v628_v14 }
 0x13d   : > { %807 = vst [vmem:[%s1115_s3 + $0x8] sm:$0xff] %v805_v17  }
 0x13e PF: > { %s13_s16 = sadd.s32 1, %s979_s16   ;;  %s1116_s12 = smov %s967_s13 }
 0x13f   : > { %p10_p12 = scmp.ge.s32.totalorder %s13_s16, 5   ;;  %s1117_s13 = smov %s1037_s20 }
 0x140   : > { %s1118_s14 = smov %s975_s15  ;;  %s1119_s15 = smov %s1121_s17 }
 0x141   :  { %12 = sbr.rel (!%p10_p12) target bundleno = 3 (0x3), region = 110 }

// kernel: _lambda_.25
= control target key start
LH: loop header
LB: loop body
LE: loop exit
PB: predicated region body
PF: predicated region fallthrough
CT: control target
= control target key end

     0   :  { %s1093_s15 = smov 0   ;;  %s1095_s16 = smov 0   ;;  %s1209_s0 = inlined_call_operand.vmem [shape: bf16[32,1152], index: 0, kind: input, shape index: {}]   ;;  %s1210_s1 = inlined_call_operand.vmem [shape: bf16[1152,128], index: 1, kind: input, shape index: {}]   ;;  %s1211_s2 = inlined_call_operand.vmem [shape: f32[1,128], index: 2, kind: input, shape index: {}]   ;;  %s1212_s3 = inlined_call_operand.vmem [shape: bf16[32,128], index: 3, kind: input, shape index: {}]   ;;  %s1213_s4 = inlined_call_operand.vmem [shape: bf16[32,128], index: 4, kind: output, shape index: {}]  }
   0x1   :  { %s1097_s17 = smov 0   ;;  %s1099_s18 = smov 0  }
   0x2   :  { %s1101_s19 = smov 0  }
   0x3 LB: > { %s23_s20 = sadd.s32 1, %s1061_s18  ;;  %p42_p1 = scmp.ne.s32.totalorder %s1053_s16, %s1049_s15  ;;  %s1065_s19 = sphi %s1101_s19, %s14_s19   ;;  %s1061_s18 = sphi %s1099_s18, %s1217_s18   ;;  %s1057_s17 = sphi %s1097_s17, %s1216_s17   ;;  %s1053_s16 = sphi %s1095_s16, %s1215_s16   ;;  %s1049_s15 = sphi %s1093_s15, %s1214_s15  }
   0x4   : > { %p24_p0 = scmp.ge.s32.totalorder %s23_s20, 3  ;;  %p43_p2 = scmp.eq.s32.totalorder %s1065_s19, 0 }
   0x5   : > { %s35_s22 = sadd.s32 1, %s1053_s16  ;;  %p816_p5 = scmp.ge.s32.totalorder %s1065_s19, 3 }
   0x6   : > { %s1219_s20 = smov (%p24_p0, %s23_s20), 0  ;;  %p44_p3 = por %p43_p2, %p42_p1 }
   0x7   : > { %s31_s21 = ssub.s32 %s1061_s18, %s1219_s20  ;;  %179 = sbr.rel (%p816_p5) target bundleno = 23 (0x17), region = 24 }
   0x8   : > { %p33_p4 = scmp.eq.s32.totalorder %s31_s21, 0 }
   0xa   : > { %s1128_s23 = scalar_select %p33_p4, %s1053_s16, %s35_s22  }
   0xe   : > { %182 = sbr.rel (!%p44_p3) target bundleno = 23 (0x17), region = 28  ;;  %s184_s24 = sand.u32 (%p44_p3), 1, %s1053_s16  }
   0xf   : > { %s869_s25 = smul.u32 (%p44_p3), 12, %s1061_s18 }
  0x10   : > { %s952_s26 = smul.u32 (%p44_p3), 48, %s184_s24 }
  0x11   : > { %s192_s29 = scalar_lea.vmem (%p44_p3), %s1209_s0, %s869_s25 }
  0x12   : > { %v207_v0 = vld [vmem:[%s192_s29] sm:$0xff] (%p44_p3)  ;;  %v211_v2 = vld [vmem:[%s192_s29 + $0x48] sm:$0xff] (%p44_p3)  ;;  %s186_s30 = scalar_lea.vmem (%p44_p3), [#allocation3], %s952_s26  ;;  %v822_v6 = vld [vmem:[%s192_s29 + $0x50] sm:$0xf] (%p44_p3) }
  0x13   : > { %v209_v1 = vld [vmem:[%s192_s29 + $0x24] sm:$0xff] (%p44_p3)  ;;  %208 = vst [vmem:[%s186_s30] sm:$0xff] (%p44_p3), %v207_v0  ;;  %212 = vst [vmem:[%s186_s30 + $0x18] sm:$0xff] (%p44_p3), %v211_v2  ;;  %v213_v3 = vld [vmem:[%s192_s29 + $0x6c] sm:$0xff] (%p44_p3) }
  0x14   : > { %210 = vst [vmem:[%s186_s30 + $0xc] sm:$0xff] (%p44_p3), %v209_v1  ;;  %v818_v4 = vld [vmem:[%s192_s29 + $0x8] sm:$0xf] (%p44_p3)  ;;  %v820_v5 = vld [vmem:[%s192_s29 + $0x2c] sm:$0xf] (%p44_p3)  ;;  %214 = vst [vmem:[%s186_s30 + $0x24] sm:$0xff] (%p44_p3), %v213_v3 }
  0x15   : > { %819 = vst [vmem:[%s186_s30 + $0x8] sm:$0xf] %v818_v4  ;;  %821 = vst [vmem:[%s186_s30 + $0x14] sm:$0xf] %v820_v5  ;;  %v824_v7 = vld [vmem:[%s192_s29 + $0x74] sm:$0xf] }
  0x16   : > { %823 = vst [vmem:[%s186_s30 + $0x20] sm:$0xf] %v822_v6  ;;  %825 = vst [vmem:[%s186_s30 + $0x2c] sm:$0xf] %v824_v7 }
  0x17 PF: > { %p826_p6 = scmp.ge.s32.totalorder %s1065_s19, 1  ;;  %p243_p7 = scmp.lt.s32.totalorder %s1065_s19, 4 }
  0x19   : > { %p244_p8 = pnand %p826_p6, %p243_p7 }
  0x1a   : > { %s250_s5 = sand.u32 (!%p244_p8), 1, %s1049_s15   ;;  %s287_s6 = smul.u32 (!%p244_p8), 48, %s1057_s17 }
  0x1b   : > { %247 = sbr.rel (%p244_p8) target bundleno = 320 (0x140), region = 58  ;;  %p828_p10 = scmp.ne.s32.totalorder (!%p244_p8), %s1057_s17, 0 }
  0x1c   : > { %s953_s7 = smul.u32 (!%p244_p8), 48, %s250_s5  ;;  %p288_p9 = scmp.lt.s32.totalorder (!%p244_p8), %s287_s6, 143 }
  0x1e   : > { %s1145_s12 = scalar_lea.vmem (!%p244_p8), [#allocation3], %s953_s7 }
  0x22   : > { %s1221_s6 = smov (!%p288_p9, %s287_s6), 143  ;;  %309 = sbr.rel (%p828_p10) target bundleno = 41 (0x29), region = 66 }
  0x23   : > { %s827_s8 = sshll.u32 %s1221_s6, 2  ;;  %v1067_v8 = vmov (!%p828_p10), 0.0  }
  0x24   : > { %s1143_s11 = scalar_lea.vmem %s1210_s1, %s827_s8  ;;  %310 = vst [vmem:[#allocation2] sm:$0xff] (!%p828_p10), %v1067_v8  ;;  %311 = vst [vmem:[#allocation2 + $0x8] sm:$0xff] (!%p828_p10), %v1067_v8 }
  0x25   : > { %312 = vst [vmem:[#allocation2 + $0x10] sm:$0xff] (!%p828_p10), %v1067_v8  ;;  %313 = vst [vmem:[#allocation2 + $0x18] sm:$0xff] (!%p828_p10), %v1067_v8 }
  0x29 PF: > { %v995_v9 = vld [vmem:[%s1143_s11 + $0x40] sm:$0xff]   ;;  %v998_v12 = vld [vmem:[%s1143_s11 + $0x48] sm:$0xff]   ;;  %v1001_v15 = vld [vmem:[%s1143_s11 + $0x50] sm:$0xff]   ;;  %p859_p11 = scmp.ne.s32.totalorder %s1057_s17, 2 }
  0x2a   : > { %v996_v10 = vld [vmem:[%s1143_s11] sm:$0xff]   ;;  %894 = vmatprep.subr.bf16.mxu0 %v995_v9  ;;  %v999_v13 = vld [vmem:[%s1143_s11 + $0x8] sm:$0xff]   ;;  %v1002_v16 = vld [vmem:[%s1143_s11 + $0x10] sm:$0xff]  }
  0x2b   : > { %v997_v11 = vld [vmem:[%s1143_s11 + $0x80] sm:$0xff]   ;;  %895 = vmatpush3.bf16.msra.mxu0 %v996_v10  ;;  %v1000_v14 = vld [vmem:[%s1143_s11 + $0x88] sm:$0xff]   ;;  %v1003_v17 = vld [vmem:[%s1143_s11 + $0x90] sm:$0xff]  }
  0x2c   : > { %932 = vmatprep.subr.bf16.mxu1 %v997_v11  ;;  %896 = vmatprep.subr.bf16.mxu0 %v998_v12  ;;  %v1004_v18 = vld [vmem:[%s1143_s11 + $0x58] sm:$0xff]   ;;  %v1007_v21 = vld [vmem:[%s1143_s11 + $0x60] sm:$0xff]   ;;  %v1010_v24 = vld [vmem:[%s1143_s11 + $0x68] sm:$0xff]  }
  0x2d   : > { %933 = vmatpush3.bf16.msra.mxu1 %v997_v11  ;;  %v1005_v19 = vld [vmem:[%s1143_s11 + $0x18] sm:$0xff]   ;;  %v1009_v22 = vld [vmem:[%s1143_s11 + $0xa0] sm:$0xff]   ;;  %v1012_v25 = vld [vmem:[%s1143_s11 + $0xa8] sm:$0xff]  }
  0x2e   : > { %934 = vmatprep.subr.bf16.mxu1 %v1000_v14  ;;  %v1006_v20 = vld [vmem:[%s1143_s11 + $0x98] sm:$0xff]   ;;  %v1008_v23 = vld [vmem:[%s1143_s11 + $0x20] sm:$0xff]   ;;  %v1011_v26 = vld [vmem:[%s1143_s11 + $0x28] sm:$0xff]  }
  0x2f   : > { %897 = vmatpush3.bf16.msra.mxu0 %v999_v13  ;;  %v1013_v27 = vld [vmem:[%s1143_s11 + $0x70] sm:$0xff]   ;;  %v1016_v30 = vld [vmem:[%s1143_s11 + $0x78] sm:$0xff]   ;;  %v314_v45 = vld [vmem:[#allocation2] sm:$0xff] }
  0x30   : > { %898 = vmatprep.subr.bf16.mxu0 %v1001_v15  ;;  %v1014_v28 = vld [vmem:[%s1143_s11 + $0x30] sm:$0xff]   ;;  %v1018_v31 = vld [vmem:[%s1143_s11 + $0xb8] sm:$0xff]   ;;  %v315_v50 = vld [vmem:[#allocation2 + $0x8] sm:$0xff] }
  0x31   : > { %935 = vmatpush3.bf16.msra.mxu1 %v1000_v14  ;;  %v1015_v29 = vld [vmem:[%s1143_s11 + $0xb0] sm:$0xff]   ;;  %v1017_v34 = vld [vmem:[%s1143_s11 + $0x38] sm:$0xff]   ;;  %v860_v5 = vld [vmem:[%s1211_s2] ss:$0 sm:$0xff] (!%p859_p11) }
  0x32   : > { %936 = vmatprep.subr.bf16.mxu1 %v1003_v17  ;;  %v1021_v32 = vld [vmem:[%s1145_s12 + $0x4] ss:$12 sps:$4 sm:$0xff]   ;;  %v1022_v33 = vld [vmem:[%s1145_s12 + $0x8] ss:$12 sps:$4 sm:$0xff]   ;;  %v1019_v35 = vld [vmem:[%s1145_s12] ss:$12 sps:$4 sm:$0xff]  }
  0x33   : > { %899 = vmatpush3.bf16.msra.mxu0 %v1002_v16  ;;  %582 = vmatprep.mubr.bf16.mxu0 %v1021_v32  ;;  %v1024_v36 = vld [vmem:[%s1145_s12 + $0x1c] ss:$12 sps:$4 sm:$0xff]   ;;  %v1023_v37 = vld [vmem:[%s1145_s12 + $0x20] ss:$12 sps:$4 sm:$0xff]   ;;  %v1026_v38 = vld [vmem:[%s1145_s12 + $0x18] ss:$12 sps:$4 sm:$0xff]  }
  0x34   : > { %900 = vmatprep.subr.bf16.mxu0 %v1004_v18  ;;  %948 = vmatprep.mubr.bf16.mxu1 %v1022_v33  ;;  %v316_v59 = vld [vmem:[#allocation2 + $0x10] sm:$0xff]  ;;  %v317_v63 = vld [vmem:[#allocation2 + $0x18] sm:$0xff]  ;;  %v875_v8 = vld [vmem:[%s1212_s3] sm:$0xff] (!%p859_p11)  }
  0x35   : > { %937 = vmatpush3.bf16.msra.mxu1 %v1003_v17  ;;  %v876_v11 = vunpack.c.l.bf16 (!%p859_p11), %v875_v8  ;;  %v877_v12 = vunpack.c.h.bf16 (!%p859_p11), %v875_v8  ;;  %v892_v15 = vld [vmem:[%s1212_s3 + $0x8] sm:$0xff] (!%p859_p11)  }
  0x36   : > { %938 = vmatprep.subr.bf16.mxu1 %v1006_v20  ;;  %v880_v16 = vunpack.c.l.bf16 (!%p859_p11), %v892_v15  ;;  %v881_v17 = vunpack.c.h.bf16 (!%p859_p11), %v892_v15 }
  0x37   : > { %901 = vmatpush3.bf16.msra.mxu0 %v1005_v19 }
  0x38   : > { %902 = vmatprep.subr.bf16.mxu0 %v1007_v21 }
  0x39   : > { %939 = vmatpush3.bf16.msra.mxu1 %v1006_v20 }
  0x3a   : > { %940 = vmatprep.subr.bf16.mxu1 %v1009_v22 }
  0x3b   : > { %903 = vmatpush3.bf16.msra.mxu0 %v1008_v23 }
  0x3c   : > { %904 = vmatprep.subr.bf16.mxu0 %v1010_v24 }
  0x3d   : > { %941 = vmatpush3.bf16.msra.mxu1 %v1009_v22 }
  0x3e   : > { %942 = vmatprep.subr.bf16.mxu1 %v1012_v25 }
  0x3f   : > { %905 = vmatpush3.bf16.msra.mxu0 %v1011_v26 }
  0x40   : > { %906 = vmatprep.subr.bf16.mxu0 %v1013_v27 }
  0x41   : > { %943 = vmatpush3.bf16.msra.mxu1 %v1012_v25 }
  0x42   : > { %944 = vmatprep.subr.bf16.mxu1 %v1015_v29 }
  0x43   : > { %907 = vmatpush3.bf16.msra.mxu0 %v1014_v28 }
  0x44   : > { %908 = vmatprep.subr.bf16.mxu0 %v1016_v30 }
  0x45   : > { %945 = vmatpush3.bf16.msra.mxu1 %v1015_v29 }
  0x46   : > { %946 = vmatprep.subr.bf16.mxu1 %v1018_v31 }
  0x47   : > { %909 = vmatpush3.bf16.msra.mxu0 %v1017_v34 }
  0x49   : > { %947 = vmatpush3.bf16.msra.mxu1 %v1018_v31 }
  0x4a   : > { %583 = vmatmul.mubr.bf16.vlgmr.msra.gmra.mrb[0].mxu0 %v1019_v35 }
  0x4b   : > { %590 = vmatprep.mubr.bf16.mxu0 %v1024_v36 }
  0x4c   : > { %949 = vmatmul.mubr.bf16.vlgmr.msra.gmra.mrb[0].mxu1 %v1023_v37 }
  0x52   : > { %591 = vmatmul.mubr.bf16.gmra.mrb[4].mxu0 %v1026_v38 }
 0x11d   : > { %v910_v39 = vpop.f32.mrb[0].mxu0 }
 0x11e   : > { %v911_v40 = vpop.f32.mrb[1].mxu0 }
 0x11f   : > { %v912_v41 = vadd.f32 %v911_v40, %v910_v39  ;;  %v913_v42 = vpop.f32.mrb[2].mxu0  ;;  %v950_v43 = vpop.f32.mrb[0].mxu1 }
 0x120   : > { %v914_v44 = vpop.f32.mrb[3].mxu0  ;;  %v633_v46 = vpop.f32.mrb[1].mxu1 }
 0x121   : > { %v915_v47 = vadd.f32 %v914_v44, %v913_v42  ;;  %v634_v48 = vadd.f32 %v912_v41, %v633_v46  ;;  %v951_v49 = vpop.f32.mrb[2].mxu1 }
 0x122   : > { %v636_v51 = vpop.f32.mrb[3].mxu1 }
 0x123   : > { %v648_v52 = vadd.f32 %v634_v48, %v314_v45  ;;  %v637_v53 = vadd.f32 %v915_v47, %v636_v51 }
 0x125   : > { %652 = vst [vmem:[#allocation2] sm:$0xff] %v648_v52  ;;  %v649_v54 = vadd.f32 %v637_v53, %v315_v50  ;;  %v916_v55 = vpop.f32.mrb[4].mxu0 }
 0x126   : > { %v917_v56 = vpop.f32.mrb[5].mxu0 }
 0x127   : > { %653 = vst [vmem:[#allocation2 + $0x8] sm:$0xff] %v649_v54  ;;  %v918_v57 = vadd.f32 %v917_v56, %v916_v55  ;;  %v919_v58 = vpop.f32.mrb[6].mxu0 }
 0x128   : > { %v920_v60 = vpop.f32.mrb[7].mxu0 }
 0x129   : > { %v642_v61 = vadd.f32 %v950_v43, %v918_v57  ;;  %v921_v62 = vadd.f32 %v920_v60, %v919_v58  ;;  %659 = sbr.rel (%p859_p11) target bundleno = 320 (0x140), region = 70 }
 0x12b   : > { %v650_v0 = vadd.f32 %v642_v61, %v316_v59  ;;  %v645_v1 = vadd.f32 %v951_v49, %v921_v62 }
 0x12c   : > { %v660_v3 = vld [vmem:[#allocation2] sm:$0xff] (!%p859_p11) }
 0x12d   : > { %654 = vst [vmem:[#allocation2 + $0x10] sm:$0xff] %v650_v0  ;;  %v651_v2 = vadd.f32 %v645_v1, %v317_v63  ;;  %v671_v6 = vadd.f32 (!%p859_p11), %v860_v5, %v660_v3 }
 0x12e   : > { %v661_v4 = vld [vmem:[#allocation2 + $0x8] sm:$0xff] (!%p859_p11) }
 0x12f   : > { %655 = vst [vmem:[#allocation2 + $0x18] sm:$0xff] %v651_v2  ;;  %v672_v7 = vadd.f32 (!%p859_p11), %v860_v5, %v661_v4  ;;  %v683_v18 = vadd.f32 (!%p859_p11), %v876_v11, %v671_v6 }
 0x131   : > { %v684_v19 = vadd.f32 %v877_v12, %v672_v7  ;;  %v687_v22 = vmax.f32 %v683_v18, 0.0 }
 0x133   : > { %v688_v23 = vmax.f32 %v684_v19, 0.0 }
 0x134   : > { %v662_v9 = vld [vmem:[#allocation2 + $0x10] sm:$0xff] }
 0x135   : > { %v673_v13 = vadd.f32 %v860_v5, %v662_v9  ;;  %v885_v26 = vpack.c.bf16 %v688_v23, %v687_v22 }
 0x136   : > { %v663_v10 = vld [vmem:[#allocation2 + $0x18] sm:$0xff] }
 0x137   : > { %v674_v14 = vadd.f32 %v860_v5, %v663_v10  ;;  %v685_v20 = vadd.f32 %v880_v16, %v673_v13  ;;  %886 = vst [vmem:[%s1213_s4] sm:$0xff] %v885_v26  }
 0x139   : > { %v686_v21 = vadd.f32 %v881_v17, %v674_v14  ;;  %v689_v24 = vmax.f32 %v685_v20, 0.0 }
 0x13b   : > { %v690_v25 = vmax.f32 %v686_v21, 0.0 }
 0x13d   : > { %v890_v27 = vpack.c.bf16 %v690_v25, %v689_v24 }
 0x13f   : > { %893 = vst [vmem:[%s1213_s4 + $0x8] sm:$0xff] %v890_v27  }
 0x140 PF: > { %s14_s19 = sadd.s32 1, %s1065_s19   ;;  %s1214_s15 = smov %s1053_s16 }
 0x141   : > { %p11_p12 = scmp.ge.s32.totalorder %s14_s19, 5   ;;  %s1215_s16 = smov %s1128_s23 }
 0x142   : > { %s1216_s17 = smov %s1061_s18  ;;  %s1217_s18 = smov %s1219_s20 }
 0x143   :  { %13 = sbr.rel (!%p11_p12) target bundleno = 3 (0x3), region = 117 }

// kernel: _lambda_.28
= control target key start
LH: loop header
LB: loop body
LE: loop exit
PB: predicated region body
PF: predicated region fallthrough
CT: control target
= control target key end

     0   :  { %s1152_s15 = smov 0   ;;  %s1154_s16 = smov 0   ;;  %s1283_s0 = inlined_call_operand.vmem [shape: bf16[16,1152], index: 0, kind: input, shape index: {}]   ;;  %s1284_s1 = inlined_call_operand.vmem [shape: bf16[1152,256], index: 1, kind: input, shape index: {}]   ;;  %s1285_s2 = inlined_call_operand.vmem [shape: f32[1,256], index: 2, kind: input, shape index: {}]   ;;  %s1286_s3 = inlined_call_operand.vmem [shape: bf16[16,128], index: 3, kind: output, shape index: {0}]   ;;  %s1287_s4 = inlined_call_operand.vmem [shape: bf16[16,128], index: 4, kind: output, shape index: {1}]  }
   0x1   :  { %s1156_s17 = smov 0   ;;  %s1158_s18 = smov 0  }
   0x2   :  { %s1160_s19 = smov 0  }
   0x3 LB: > { %s24_s20 = sadd.s32 1, %s1119_s18  ;;  %p43_p1 = scmp.ne.s32.totalorder %s1111_s16, %s1107_s15  ;;  %s1123_s19 = sphi %s1160_s19, %s15_s19   ;;  %s1119_s18 = sphi %s1158_s18, %s1291_s18   ;;  %s1115_s17 = sphi %s1156_s17, %s1290_s17   ;;  %s1111_s16 = sphi %s1154_s16, %s1289_s16   ;;  %s1107_s15 = sphi %s1152_s15, %s1288_s15  }
   0x4   : > { %p25_p0 = scmp.ge.s32.totalorder %s24_s20, 3  ;;  %p44_p2 = scmp.eq.s32.totalorder %s1123_s19, 0 }
   0x5   : > { %s36_s22 = sadd.s32 1, %s1111_s16  ;;  %p873_p5 = scmp.ge.s32.totalorder %s1123_s19, 3 }
   0x6   : > { %s1293_s20 = smov (%p25_p0, %s24_s20), 0  ;;  %p45_p3 = por %p44_p2, %p43_p1 }
   0x7   : > { %s32_s21 = ssub.s32 %s1119_s18, %s1293_s20  ;;  %171 = sbr.rel (%p873_p5) target bundleno = 21 (0x15), region = 20 }
   0x8   : > { %p34_p4 = scmp.eq.s32.totalorder %s32_s21, 0 }
   0xa   : > { %s1187_s23 = scalar_select %p34_p4, %s1111_s16, %s36_s22  }
   0xe   : > { %174 = sbr.rel (!%p45_p3) target bundleno = 21 (0x15), region = 24  ;;  %s176_s24 = sand.u32 (%p45_p3), 1, %s1111_s16  }
   0xf   : > { %s945_s25 = smul.u32 (%p45_p3), 12, %s1119_s18 }
  0x10   : > { %s965_s26 = smul.u32 (%p45_p3), 24, %s176_s24 }
  0x11   : > { %s184_s29 = scalar_lea.vmem (%p45_p3), %s1283_s0, %s945_s25 }
  0x12   : > { %v199_v0 = vld [vmem:[%s184_s29] sm:$0xff] (%p45_p3)  ;;  %v875_v2 = vld [vmem:[%s184_s29 + $0x8] sm:$0xf] (%p45_p3)  ;;  %s178_s30 = scalar_lea.vmem (%p45_p3), [#allocation3], %s965_s26  ;;  %v877_v3 = vld [vmem:[%s184_s29 + $0x2c] sm:$0xf] (%p45_p3) }
  0x13   : > { %v201_v1 = vld [vmem:[%s184_s29 + $0x24] sm:$0xff] (%p45_p3)  ;;  %200 = vst [vmem:[%s178_s30] sm:$0xff] (%p45_p3), %v199_v0  ;;  %876 = vst [vmem:[%s178_s30 + $0x8] sm:$0xf] (%p45_p3), %v875_v2 }
  0x14   : > { %202 = vst [vmem:[%s178_s30 + $0xc] sm:$0xff] (%p45_p3), %v201_v1  ;;  %878 = vst [vmem:[%s178_s30 + $0x14] sm:$0xf] (%p45_p3), %v877_v3 }
  0x15 PF: > { %p879_p6 = scmp.ge.s32.totalorder %s1123_s19, 1  ;;  %p228_p7 = scmp.lt.s32.totalorder %s1123_s19, 4 }
  0x17   : > { %p229_p8 = pnand %p879_p6, %p228_p7 }
  0x18   : > { %s235_s5 = sand.u32 (!%p229_p8), 1, %s1107_s15   ;;  %s273_s6 = smul.u32 (!%p229_p8), 48, %s1115_s17 }
  0x19   : > { %232 = sbr.rel (%p229_p8) target bundleno = 337 (0x151), region = 54  ;;  %p882_p10 = scmp.ne.s32.totalorder (!%p229_p8), %s1115_s17, 0 }
  0x1a   : > { %s966_s7 = smul.u32 (!%p229_p8), 24, %s235_s5  ;;  %p274_p9 = scmp.lt.s32.totalorder (!%p229_p8), %s273_s6, 143 }
  0x1c   : > { %s1204_s12 = scalar_lea.vmem (!%p229_p8), [#allocation3], %s966_s7 }
  0x20   : > { %s1295_s6 = smov (!%p274_p9, %s273_s6), 143  ;;  %296 = sbr.rel (%p882_p10) target bundleno = 39 (0x27), region = 62 }
  0x21   : > { %s946_s8 = sshll.u32 %s1295_s6, 3  ;;  %v1125_v4 = vmov (!%p882_p10), 0.0  }
  0x22   : > { %s1202_s11 = scalar_lea.vmem %s1284_s1, %s946_s8  ;;  %297 = vst [vmem:[#allocation2] sm:$0xff] (!%p882_p10), %v1125_v4  ;;  %298 = vst [vmem:[#allocation2 + $0x8] sm:$0xff] (!%p882_p10), %v1125_v4 }
  0x23   : > { %299 = vst [vmem:[#allocation2 + $0x10] sm:$0xff] (!%p882_p10), %v1125_v4  ;;  %300 = vst [vmem:[#allocation2 + $0x18] sm:$0xff] (!%p882_p10), %v1125_v4 }
  0x27 PF: > { %v1009_v5 = vld [vmem:[%s1202_s11 + $0x4] ss:$8 sps:$4 sm:$0xff]   ;;  %v1011_v6 = vld [vmem:[%s1202_s11] ss:$8 sps:$4 sm:$0xff]   ;;  %v1126_v7 = vmov 0   ;;  %p934_p11 = scmp.ne.s32.totalorder %s1115_s17, 2 }
  0x28   : > { %688 = vmatprep.mubr.bf16.mxu0 %v1126_v7  ;;  %613 = vmatprep.subr.bf16.mxu1 %v1009_v5  ;;  %v1012_v8 = vld [vmem:[%s1202_s11 + $0x14] ss:$8 sps:$4 sm:$0xff]   ;;  %v1014_v9 = vld [vmem:[%s1202_s11 + $0x10] ss:$8 sps:$4 sm:$0xff]   ;;  %v1015_v10 = vld [vmem:[%s1202_s11 + $0x24] ss:$8 sps:$4 sm:$0xff]  }
  0x29   : > { %614 = vmatpush1.bf16.msra.mxu1 %v1011_v6  ;;  %v1017_v11 = vld [vmem:[%s1202_s11 + $0x20] ss:$8 sps:$4 sm:$0xff]   ;;  %v1018_v12 = vld [vmem:[%s1202_s11 + $0x34] ss:$8 sps:$4 sm:$0xff]   ;;  %v1020_v13 = vld [vmem:[%s1202_s11 + $0x30] ss:$8 sps:$4 sm:$0xff]  }
  0x2a   : > { %615 = vmatprep.subr.bf16.mxu1 %v1012_v8  ;;  %v1033_v14 = vld [vmem:[%s1202_s11 + $0x104] ss:$8 sps:$4 sm:$0xff]   ;;  %v1035_v15 = vld [vmem:[%s1202_s11 + $0x100] ss:$8 sps:$4 sm:$0xff]   ;;  %v1039_v17 = vld [vmem:[%s1202_s11 + $0x114] ss:$8 sps:$4 sm:$0xff]  }
  0x2b   : > { %v1021_v16 = vld [vmem:[%s1202_s11 + $0x44] ss:$8 sps:$4 sm:$0xff]   ;;  %656 = vmatprep.subr.bf16.mxu0 %v1033_v14  ;;  %v1041_v18 = vld [vmem:[%s1202_s11 + $0x110] ss:$8 sps:$4 sm:$0xff]   ;;  %v1023_v19 = vld [vmem:[%s1202_s11 + $0x40] ss:$8 sps:$4 sm:$0xff]  }
  0x2c   : > { %657 = vmatpush1.bf16.msra.mxu0 %v1035_v15  ;;  %v1024_v20 = vld [vmem:[%s1202_s11 + $0x54] ss:$8 sps:$4 sm:$0xff]   ;;  %v1045_v21 = vld [vmem:[%s1202_s11 + $0x124] ss:$8 sps:$4 sm:$0xff]   ;;  %v1047_v22 = vld [vmem:[%s1202_s11 + $0x120] ss:$8 sps:$4 sm:$0xff]  }
  0x2d   : > { %616 = vmatpush1.bf16.msra.mxu1 %v1014_v9  ;;  %658 = vmatprep.subr.bf16.mxu0 %v1039_v17  ;;  %v1026_v23 = vld [vmem:[%s1202_s11 + $0x50] ss:$8 sps:$4 sm:$0xff]   ;;  %v1051_v24 = vld [vmem:[%s1202_s11 + $0x134] ss:$8 sps:$4 sm:$0xff]   ;;  %v1027_v25 = vld [vmem:[%s1202_s11 + $0x64] ss:$8 sps:$4 sm:$0xff]  }
  0x2e   : > { %617 = vmatprep.subr.bf16.mxu1 %v1015_v10  ;;  %v1053_v26 = vld [vmem:[%s1202_s11 + $0x130] ss:$8 sps:$4 sm:$0xff]   ;;  %v1029_v27 = vld [vmem:[%s1202_s11 + $0x60] ss:$8 sps:$4 sm:$0xff]   ;;  %v1057_v28 = vld [vmem:[%s1202_s11 + $0x144] ss:$8 sps:$4 sm:$0xff]  }
  0x2f   : > { %v1030_v29 = vld [vmem:[%s1202_s11 + $0x74] ss:$8 sps:$4 sm:$0xff]   ;;  %v1059_v30 = vld [vmem:[%s1202_s11 + $0x140] ss:$8 sps:$4 sm:$0xff]   ;;  %v1032_v31 = vld [vmem:[%s1202_s11 + $0x70] ss:$8 sps:$4 sm:$0xff]  }
  0x30   : > { %659 = vmatpush1.bf16.msra.mxu0 %v1041_v18  ;;  %v1063_v32 = vld [vmem:[%s1202_s11 + $0x154] ss:$8 sps:$4 sm:$0xff]   ;;  %v1036_v33 = vld [vmem:[%s1202_s11 + $0x84] ss:$8 sps:$4 sm:$0xff]   ;;  %v1065_v34 = vld [vmem:[%s1202_s11 + $0x150] ss:$8 sps:$4 sm:$0xff]  }
  0x31   : > { %618 = vmatpush1.bf16.msra.mxu1 %v1017_v11  ;;  %660 = vmatprep.subr.bf16.mxu0 %v1045_v21  ;;  %v1038_v35 = vld [vmem:[%s1202_s11 + $0x80] ss:$8 sps:$4 sm:$0xff]   ;;  %v1069_v36 = vld [vmem:[%s1202_s11 + $0x164] ss:$8 sps:$4 sm:$0xff]   ;;  %v1042_v37 = vld [vmem:[%s1202_s11 + $0x94] ss:$8 sps:$4 sm:$0xff]  }
  0x32   : > { %619 = vmatprep.subr.bf16.mxu1 %v1018_v12  ;;  %v1071_v38 = vld [vmem:[%s1202_s11 + $0x160] ss:$8 sps:$4 sm:$0xff]   ;;  %v1044_v40 = vld [vmem:[%s1202_s11 + $0x90] ss:$8 sps:$4 sm:$0xff]   ;;  %v1075_v41 = vld [vmem:[%s1202_s11 + $0x174] ss:$8 sps:$4 sm:$0xff]  }
  0x33   : > { %v1084_v39 = vld [vmem:[%s1204_s12 + $0x4] ss:$12 sps:$4 sm:$0xff]   ;;  %v1081_v46 = vld [vmem:[%s1204_s12 + $0x8] ss:$12 sps:$4 sm:$0xff]   ;;  %v1082_v56 = vld [vmem:[%s1204_s12] ss:$12 sps:$4 sm:$0xff]  }
  0x34   : > { %661 = vmatpush1.bf16.msra.mxu0 %v1047_v22  ;;  %v1048_v42 = vld [vmem:[%s1202_s11 + $0xa4] ss:$8 sps:$4 sm:$0xff]   ;;  %645 = vmatprep.mubr.bf16.mxu1 %v1084_v39  ;;  %v1077_v43 = vld [vmem:[%s1202_s11 + $0x170] ss:$8 sps:$4 sm:$0xff]   ;;  %v1050_v44 = vld [vmem:[%s1202_s11 + $0xa0] ss:$8 sps:$4 sm:$0xff]  }
  0x35   : > { %620 = vmatpush1.bf16.msra.mxu1 %v1020_v13  ;;  %662 = vmatprep.subr.bf16.mxu0 %v1051_v24  ;;  %v1054_v45 = vld [vmem:[%s1202_s11 + $0xb4] ss:$8 sps:$4 sm:$0xff]   ;;  %v1056_v47 = vld [vmem:[%s1202_s11 + $0xb0] ss:$8 sps:$4 sm:$0xff]   ;;  %v1060_v48 = vld [vmem:[%s1202_s11 + $0xc4] ss:$8 sps:$4 sm:$0xff]   ;;  %v717_v13 = vlaneseq (!%p934_p11) }
  0x36   : > { %621 = vmatprep.subr.bf16.mxu1 %v1021_v16  ;;  %v1062_v49 = vld [vmem:[%s1202_s11 + $0xc0] ss:$8 sps:$4 sm:$0xff]   ;;  %v1066_v50 = vld [vmem:[%s1202_s11 + $0xd4] ss:$8 sps:$4 sm:$0xff]   ;;  %v1068_v51 = vld [vmem:[%s1202_s11 + $0xd0] ss:$8 sps:$4 sm:$0xff]  }
  0x37   : > { %v1072_v52 = vld [vmem:[%s1202_s11 + $0xe4] ss:$8 sps:$4 sm:$0xff]   ;;  %v1074_v53 = vld [vmem:[%s1202_s11 + $0xe0] ss:$8 sps:$4 sm:$0xff]   ;;  %v1078_v54 = vld [vmem:[%s1202_s11 + $0xf4] ss:$8 sps:$4 sm:$0xff]  }
  0x38   : > { %663 = vmatpush1.bf16.msra.mxu0 %v1053_v26  ;;  %v1080_v55 = vld [vmem:[%s1202_s11 + $0xf0] ss:$8 sps:$4 sm:$0xff]   ;;  %v301_v61 = vld [vmem:[#allocation2] sm:$0xff]  ;;  %v302_v0 = vld [vmem:[#allocation2 + $0x8] sm:$0xff]  ;;  %v718_v14 = vshrl.u32 (!%p934_p11), %v717_v13, 7 }
  0x39   : > { %622 = vmatpush1.bf16.msra.mxu1 %v1023_v19  ;;  %664 = vmatprep.subr.bf16.mxu0 %v1057_v28  ;;  %v303_v3 = vld [vmem:[#allocation2 + $0x10] sm:$0xff]  ;;  %v304_v7 = vld [vmem:[#allocation2 + $0x18] sm:$0xff]  ;;  %v715_v15 = vld [vmem:[%s1285_s2] sm:$0x3] (!%p934_p11) }
  0x3a   : > { %623 = vmatprep.subr.bf16.mxu1 %v1024_v20  ;;  %v719_v17 = vsub.s32 (!%p934_p11), 0, %v718_v14  ;;  %v723_v18 = vsub.s32 (!%p934_p11), 1, %v718_v14 }
  0x3c   : > { %665 = vmatpush1.bf16.msra.mxu0 %v1059_v30  ;;  %v720_v22 = vrot.slane (!%p934_p11), %v715_v15, %v719_v17 }
  0x3d   : > { %624 = vmatpush1.bf16.msra.mxu1 %v1026_v23  ;;  %666 = vmatprep.subr.bf16.mxu0 %v1063_v32  ;;  %v724_v23 = vrot.slane (!%p934_p11), %v715_v15, %v723_v18 }
  0x3e   : > { %625 = vmatprep.subr.bf16.mxu1 %v1027_v25 }
  0x40   : > { %667 = vmatpush1.bf16.msra.mxu0 %v1065_v34 }
  0x41   : > { %626 = vmatpush1.bf16.msra.mxu1 %v1029_v27  ;;  %668 = vmatprep.subr.bf16.mxu0 %v1069_v36 }
  0x42   : > { %627 = vmatprep.subr.bf16.mxu1 %v1030_v29 }
  0x44   : > { %669 = vmatpush1.bf16.msra.mxu0 %v1071_v38 }
  0x45   : > { %628 = vmatpush1.bf16.msra.mxu1 %v1032_v31  ;;  %670 = vmatprep.subr.bf16.mxu0 %v1075_v41 }
  0x46   : > { %629 = vmatprep.subr.bf16.mxu1 %v1036_v33 }
  0x48   : > { %671 = vmatpush1.bf16.msra.mxu0 %v1077_v43 }
  0x49   : > { %630 = vmatpush1.bf16.msra.mxu1 %v1038_v35 }
  0x4a   : > { %631 = vmatprep.subr.bf16.mxu1 %v1042_v37 }
  0x4b   : > { %689 = vmatmul.mubr.bf16.vlgmr.msra.gmra.mrb[0].mxu0 %v1081_v46 }
  0x4d   : > { %632 = vmatpush1.bf16.msra.mxu1 %v1044_v40 }
  0x4e   : > { %633 = vmatprep.subr.bf16.mxu1 %v1048_v42 }
  0x51   : > { %634 = vmatpush1.bf16.msra.mxu1 %v1050_v44 }
  0x52   : > { %635 = vmatprep.subr.bf16.mxu1 %v1054_v45 }
  0x55   : > { %636 = vmatpush1.bf16.msra.mxu1 %v1056_v47 }
  0x56   : > { %637 = vmatprep.subr.bf16.mxu1 %v1060_v48 }
  0x59   : > { %638 = vmatpush1.bf16.msra.mxu1 %v1062_v49 }
  0x5a   : > { %639 = vmatprep.subr.bf16.mxu1 %v1066_v50 }
  0x5d   : > { %640 = vmatpush1.bf16.msra.mxu1 %v1068_v51 }
  0x5e   : > { %641 = vmatprep.subr.bf16.mxu1 %v1072_v52 }
  0x61   : > { %642 = vmatpush1.bf16.msra.mxu1 %v1074_v53 }
  0x62   : > { %643 = vmatprep.subr.bf16.mxu1 %v1078_v54 }
  0x65   : > { %644 = vmatpush1.bf16.msra.mxu1 %v1080_v55 }
  0x68   : > { %646 = vmatmul.mubr.bf16.vlgmr.msra.gmra.mrb[0].mxu1 %v1082_v56 }
 0x11e   : > { %v690_v57 = vpop.f32.mrb[0].mxu0 }
 0x11f   : > { %v692_v58 = vpop.f32.mrb[1].mxu0 }
 0x120   : > { %v694_v59 = vpop.f32.mrb[2].mxu0 }
 0x121   : > { %v696_v60 = vpop.f32.mrb[3].mxu0 }
 0x13b   : > { %v647_v62 = vpop.f32.mrb[0].mxu1 }
 0x13c   : > { %v691_v63 = vadd.f32 %v690_v57, %v647_v62  ;;  %v649_v1 = vpop.f32.mrb[1].mxu1 }
 0x13d   : > { %v693_v2 = vadd.f32 %v692_v58, %v649_v1  ;;  %v651_v4 = vpop.f32.mrb[2].mxu1  ;;  %710 = sbr.rel (%p934_p11) target bundleno = 337 (0x151), region = 66 }
 0x13e   : > { %v699_v5 = vadd.f32 %v691_v63, %v301_v61  ;;  %v695_v6 = vadd.f32 %v694_v59, %v651_v4  ;;  %v653_v8 = vpop.f32.mrb[3].mxu1 }
 0x13f   : > { %v700_v9 = vadd.f32 %v693_v2, %v302_v0  ;;  %v697_v10 = vadd.f32 %v696_v60, %v653_v8 }
 0x140   : > { %703 = vst [vmem:[#allocation2] sm:$0xff] %v699_v5  ;;  %v701_v11 = vadd.f32 %v695_v6, %v303_v3 }
 0x141   : > { %704 = vst [vmem:[#allocation2 + $0x8] sm:$0xff] %v700_v9  ;;  %v702_v12 = vadd.f32 %v697_v10, %v304_v7 }
 0x142   : > { %705 = vst [vmem:[#allocation2 + $0x10] sm:$0xff] %v701_v11 }
 0x143   : > { %706 = vst [vmem:[#allocation2 + $0x18] sm:$0xff] %v702_v12 }
 0x147   : > { %v711_v16 = vld [vmem:[#allocation2] sm:$0xff] }
 0x148   : > { %v712_v20 = vld [vmem:[#allocation2 + $0x8] sm:$0xff]  ;;  %v727_v24 = vadd.f32 %v720_v22, %v711_v16 }
 0x149   : > { %v713_v19 = vld [vmem:[#allocation2 + $0x10] sm:$0xff]  ;;  %v728_v26 = vadd.f32 %v724_v23, %v712_v20 }
 0x14a   : > { %v714_v21 = vld [vmem:[#allocation2 + $0x18] sm:$0xff]  ;;  %v729_v25 = vadd.f32 %v720_v22, %v713_v19  ;;  %v731_v28 = vmax.f32 %v727_v24, 0.0 }
 0x14b   : > { %v730_v27 = vadd.f32 %v724_v23, %v714_v21 }
 0x14c   : > { %v732_v29 = vmax.f32 %v729_v25, 0.0 }
 0x14d   : > { %v959_v30 = vpack.c.bf16 %v730_v27, %v728_v26 }
 0x14e   : > { %v954_v31 = vpack.c.bf16 %v732_v29, %v731_v28 }
 0x14f   : > { %960 = vst [vmem:[%s1287_s4] sm:$0xff] %v959_v30  }
 0x150   : > { %955 = vst [vmem:[%s1286_s3] sm:$0xff] %v954_v31  }
 0x151 PF: > { %s15_s19 = sadd.s32 1, %s1123_s19   ;;  %s1288_s15 = smov %s1111_s16 }
 0x152   : > { %p12_p12 = scmp.ge.s32.totalorder %s15_s19, 5   ;;  %s1289_s16 = smov %s1187_s23 }
 0x153   : > { %s1290_s17 = smov %s1119_s18  ;;  %s1291_s18 = smov %s1293_s20 }
 0x154   :  { %14 = sbr.rel (!%p12_p12) target bundleno = 3 (0x3), region = 122 }

// kernel: _lambda_.29
= control target key start
LH: loop header
LB: loop body
LE: loop exit
PB: predicated region body
PF: predicated region fallthrough
CT: control target
= control target key end

     0   :  { %s990_s15 = smov 0   ;;  %s992_s16 = smov 0   ;;  %s1097_s0 = inlined_call_operand.vmem [shape: bf16[16,1152], index: 0, kind: input, shape index: {}]   ;;  %s1098_s1 = inlined_call_operand.vmem [shape: bf16[1152,128], index: 1, kind: input, shape index: {}]   ;;  %s1099_s2 = inlined_call_operand.vmem [shape: f32[1,128], index: 2, kind: input, shape index: {}]   ;;  %s1100_s3 = inlined_call_operand.vmem [shape: bf16[16,128], index: 3, kind: input, shape index: {}]   ;;  %s1101_s4 = inlined_call_operand.vmem [shape: bf16[16,128], index: 4, kind: output, shape index: {}]  }
   0x1   :  { %s994_s17 = smov 0   ;;  %s996_s18 = smov 0  }
   0x2   :  { %s998_s19 = smov 0  }
   0x3 LB: > { %s23_s20 = sadd.s32 1, %s956_s18  ;;  %p42_p1 = scmp.ne.s32.totalorder %s948_s16, %s944_s15  ;;  %s960_s19 = sphi %s998_s19, %s14_s19   ;;  %s956_s18 = sphi %s996_s18, %s1105_s18   ;;  %s952_s17 = sphi %s994_s17, %s1104_s17   ;;  %s948_s16 = sphi %s992_s16, %s1103_s16   ;;  %s944_s15 = sphi %s990_s15, %s1102_s15  }
   0x4   : > { %p24_p0 = scmp.ge.s32.totalorder %s23_s20, 3  ;;  %p43_p2 = scmp.eq.s32.totalorder %s960_s19, 0 }
   0x5   : > { %s35_s22 = sadd.s32 1, %s948_s16  ;;  %p742_p5 = scmp.ge.s32.totalorder %s960_s19, 3 }
   0x6   : > { %s1107_s20 = smov (%p24_p0, %s23_s20), 0  ;;  %p44_p3 = por %p43_p2, %p42_p1 }
   0x7   : > { %s31_s21 = ssub.s32 %s956_s18, %s1107_s20  ;;  %179 = sbr.rel (%p742_p5) target bundleno = 21 (0x15), region = 24 }
   0x8   : > { %p33_p4 = scmp.eq.s32.totalorder %s31_s21, 0 }
   0xa   : > { %s1025_s23 = scalar_select %p33_p4, %s948_s16, %s35_s22  }
   0xe   : > { %182 = sbr.rel (!%p44_p3) target bundleno = 21 (0x15), region = 28  ;;  %s184_s24 = sand.u32 (%p44_p3), 1, %s948_s16  }
   0xf   : > { %s786_s25 = smul.u32 (%p44_p3), 12, %s956_s18 }
  0x10   : > { %s849_s26 = smul.u32 (%p44_p3), 24, %s184_s24 }
  0x11   : > { %s192_s29 = scalar_lea.vmem (%p44_p3), %s1097_s0, %s786_s25 }
  0x12   : > { %v207_v0 = vld [vmem:[%s192_s29] sm:$0xff] (%p44_p3)  ;;  %v744_v2 = vld [vmem:[%s192_s29 + $0x8] sm:$0xf] (%p44_p3)  ;;  %s186_s30 = scalar_lea.vmem (%p44_p3), [#allocation3], %s849_s26  ;;  %v746_v3 = vld [vmem:[%s192_s29 + $0x2c] sm:$0xf] (%p44_p3) }
  0x13   : > { %v209_v1 = vld [vmem:[%s192_s29 + $0x24] sm:$0xff] (%p44_p3)  ;;  %208 = vst [vmem:[%s186_s30] sm:$0xff] (%p44_p3), %v207_v0  ;;  %745 = vst [vmem:[%s186_s30 + $0x8] sm:$0xf] (%p44_p3), %v744_v2 }
  0x14   : > { %210 = vst [vmem:[%s186_s30 + $0xc] sm:$0xff] (%p44_p3), %v209_v1  ;;  %747 = vst [vmem:[%s186_s30 + $0x14] sm:$0xf] (%p44_p3), %v746_v3 }
  0x15 PF: > { %p748_p6 = scmp.ge.s32.totalorder %s960_s19, 1  ;;  %p235_p7 = scmp.lt.s32.totalorder %s960_s19, 4 }
  0x17   : > { %p236_p8 = pnand %p748_p6, %p235_p7 }
  0x18   : > { %s242_s5 = sand.u32 (!%p236_p8), 1, %s944_s15   ;;  %s279_s6 = smul.u32 (!%p236_p8), 48, %s952_s17 }
  0x19   : > { %239 = sbr.rel (%p236_p8) target bundleno = 310 (0x136), region = 58  ;;  %p750_p10 = scmp.ne.s32.totalorder (!%p236_p8), %s952_s17, 0 }
  0x1a   : > { %s850_s7 = smul.u32 (!%p236_p8), 24, %s242_s5  ;;  %p280_p9 = scmp.lt.s32.totalorder (!%p236_p8), %s279_s6, 143 }
  0x1c   : > { %s1042_s12 = scalar_lea.vmem (!%p236_p8), [#allocation3], %s850_s7 }
  0x20   : > { %s1109_s6 = smov (!%p280_p9, %s279_s6), 143  ;;  %301 = sbr.rel (%p750_p10) target bundleno = 39 (0x27), region = 66 }
  0x21   : > { %s749_s8 = sshll.u32 %s1109_s6, 2  ;;  %v962_v4 = vmov (!%p750_p10), 0.0  }
  0x22   : > { %s1040_s11 = scalar_lea.vmem %s1098_s1, %s749_s8  ;;  %302 = vst [vmem:[#allocation2] sm:$0xff] (!%p750_p10), %v962_v4  ;;  %303 = vst [vmem:[#allocation2 + $0x8] sm:$0xff] (!%p750_p10), %v962_v4 }
  0x27 PF: > { %v894_v5 = vld [vmem:[%s1040_s11 + $0x40] sm:$0xff]   ;;  %v963_v6 = vmov 0.0   ;;  %vm964_vm0 = vmmov 0   ;;  %v897_v9 = vld [vmem:[%s1040_s11 + $0x48] sm:$0xff]   ;;  %v900_v12 = vld [vmem:[%s1040_s11 + $0x50] sm:$0xff]   ;;  %p778_p11 = scmp.ne.s32.totalorder %s952_s17, 2 }
  0x28   : > { %829 = vmatprep.subr.bf16.mxu1 %v963_v6  ;;  %v895_v7 = vld [vmem:[%s1040_s11] sm:$0xff]   ;;  %798 = vmatprep.subr.bf16.mxu0 %v894_v5  ;;  %v898_v10 = vld [vmem:[%s1040_s11 + $0x8] sm:$0xff]   ;;  %v901_v13 = vld [vmem:[%s1040_s11 + $0x10] sm:$0xff]  }
  0x29   : > { %v896_v8 = vld [vmem:[%s1040_s11 + $0x80] sm:$0xff]   ;;  %845 = vmatprep.mubr.msk.bf16.mxu1 %vm964_vm0, %v963_v6  ;;  %799 = vmatpush3.bf16.msra.mxu0 %v895_v7  ;;  %v899_v11 = vld [vmem:[%s1040_s11 + $0x88] sm:$0xff]   ;;  %v902_v14 = vld [vmem:[%s1040_s11 + $0x90] sm:$0xff]  }
  0x2a   : > { %830 = vmatpush3.bf16.msra.mxu1 %v896_v8  ;;  %800 = vmatprep.subr.bf16.mxu0 %v897_v9  ;;  %v903_v15 = vld [vmem:[%s1040_s11 + $0x58] sm:$0xff]   ;;  %v906_v18 = vld [vmem:[%s1040_s11 + $0x60] sm:$0xff]   ;;  %v909_v21 = vld [vmem:[%s1040_s11 + $0x68] sm:$0xff]  }
  0x2b   : > { %831 = vmatprep.subr.bf16.mxu1 %v963_v6  ;;  %v904_v16 = vld [vmem:[%s1040_s11 + $0x18] sm:$0xff]   ;;  %v907_v19 = vld [vmem:[%s1040_s11 + $0x20] sm:$0xff]   ;;  %v910_v22 = vld [vmem:[%s1040_s11 + $0x28] sm:$0xff]  }
  0x2c   : > { %v905_v17 = vld [vmem:[%s1040_s11 + $0x98] sm:$0xff]   ;;  %v908_v20 = vld [vmem:[%s1040_s11 + $0xa0] sm:$0xff]   ;;  %v911_v23 = vld [vmem:[%s1040_s11 + $0xa8] sm:$0xff]  }
  0x2d   : > { %801 = vmatpush3.bf16.msra.mxu0 %v898_v10  ;;  %v912_v24 = vld [vmem:[%s1040_s11 + $0x70] sm:$0xff]   ;;  %v915_v27 = vld [vmem:[%s1040_s11 + $0x78] sm:$0xff]   ;;  %v304_v39 = vld [vmem:[#allocation2] sm:$0xff] }
  0x2e   : > { %832 = vmatpush3.bf16.msra.mxu1 %v899_v11  ;;  %802 = vmatprep.subr.bf16.mxu0 %v900_v12  ;;  %v913_v25 = vld [vmem:[%s1040_s11 + $0x30] sm:$0xff]   ;;  %v916_v29 = vld [vmem:[%s1040_s11 + $0x38] sm:$0xff]   ;;  %v305_v45 = vld [vmem:[#allocation2 + $0x8] sm:$0xff] }
  0x2f   : > { %833 = vmatprep.subr.bf16.mxu1 %v963_v6  ;;  %v914_v26 = vld [vmem:[%s1040_s11 + $0xb0] sm:$0xff]   ;;  %v917_v30 = vld [vmem:[%s1040_s11 + $0xb8] sm:$0xff]   ;;  %v779_v51 = vld [vmem:[%s1099_s2] ss:$0 sm:$0xff] (!%p778_p11) }
  0x30   : > { %v920_v28 = vld [vmem:[%s1042_s12 + $0x4] ss:$12 sps:$4 sm:$0xff]   ;;  %v918_v31 = vld [vmem:[%s1042_s12] ss:$12 sps:$4 sm:$0xff]   ;;  %v921_v32 = vld [vmem:[%s1042_s12 + $0x8] ss:$12 sps:$4 sm:$0xff]  }
  0x31   : > { %803 = vmatpush3.bf16.msra.mxu0 %v901_v13  ;;  %550 = vmatprep.mubr.bf16.mxu0 %v920_v28  ;;  %v790_v54 = vld [vmem:[%s1100_s3] sm:$0xff] (!%p778_p11)  }
  0x32   : > { %834 = vmatpush3.bf16.msra.mxu1 %v902_v14  ;;  %804 = vmatprep.subr.bf16.mxu0 %v903_v15  ;;  %v791_v55 = vunpack.c.l.bf16 (!%p778_p11), %v790_v54  ;;  %v792_v56 = vunpack.c.h.bf16 (!%p778_p11), %v790_v54 }
  0x33   : > { %835 = vmatprep.subr.bf16.mxu1 %v963_v6 }
  0x35   : > { %805 = vmatpush3.bf16.msra.mxu0 %v904_v16 }
  0x36   : > { %836 = vmatpush3.bf16.msra.mxu1 %v905_v17  ;;  %806 = vmatprep.subr.bf16.mxu0 %v906_v18 }
  0x37   : > { %837 = vmatprep.subr.bf16.mxu1 %v963_v6 }
  0x39   : > { %807 = vmatpush3.bf16.msra.mxu0 %v907_v19 }
  0x3a   : > { %838 = vmatpush3.bf16.msra.mxu1 %v908_v20  ;;  %808 = vmatprep.subr.bf16.mxu0 %v909_v21 }
  0x3b   : > { %839 = vmatprep.subr.bf16.mxu1 %v963_v6 }
  0x3d   : > { %809 = vmatpush3.bf16.msra.mxu0 %v910_v22 }
  0x3e   : > { %840 = vmatpush3.bf16.msra.mxu1 %v911_v23  ;;  %810 = vmatprep.subr.bf16.mxu0 %v912_v24 }
  0x3f   : > { %841 = vmatprep.subr.bf16.mxu1 %v963_v6 }
  0x41   : > { %811 = vmatpush3.bf16.msra.mxu0 %v913_v25 }
  0x42   : > { %842 = vmatpush3.bf16.msra.mxu1 %v914_v26  ;;  %812 = vmatprep.subr.bf16.mxu0 %v915_v27 }
  0x43   : > { %843 = vmatprep.subr.bf16.mxu1 %v963_v6 }
  0x45   : > { %813 = vmatpush3.bf16.msra.mxu0 %v916_v29 }
  0x46   : > { %844 = vmatpush3.bf16.msra.mxu1 %v917_v30 }
  0x48   : > { %551 = vmatmul.mubr.bf16.vlgmr.msra.gmra.mrb[0].mxu0 %v918_v31 }
  0x49   : > { %846 = vmatmul.mubr.bf16.vlgmr.msra.gmra.mrb[0].mxu1 %v921_v32 }
 0x11b   : > { %v814_v33 = vpop.f32.mrb[0].mxu0 }
 0x11c   : > { %v593_v34 = vpop.f32.mrb[0].mxu1  ;;  %v815_v35 = vpop.f32.mrb[1].mxu0 }
 0x11d   : > { %v816_v36 = vadd.f32 %v815_v35, %v814_v33  ;;  %v847_v37 = vpop.f32.mrb[1].mxu1  ;;  %v817_v38 = vpop.f32.mrb[2].mxu0 }
 0x11e   : > { %v596_v40 = vpop.f32.mrb[2].mxu1  ;;  %v818_v41 = vpop.f32.mrb[3].mxu0 }
 0x11f   : > { %v594_v42 = vadd.f32 %v816_v36, %v593_v34  ;;  %v819_v43 = vadd.f32 %v818_v41, %v817_v38  ;;  %v848_v44 = vpop.f32.mrb[3].mxu1  ;;  %607 = sbr.rel (%p778_p11) target bundleno = 310 (0x136), region = 70 }
 0x121   : > { %v600_v46 = vadd.f32 %v594_v42, %v304_v39  ;;  %v597_v47 = vadd.f32 %v819_v43, %v596_v40 }
 0x123   : > { %602 = vst [vmem:[#allocation2] sm:$0xff] %v600_v46  ;;  %v601_v48 = vadd.f32 %v597_v47, %v305_v45 }
 0x125   : > { %603 = vst [vmem:[#allocation2 + $0x8] sm:$0xff] %v601_v48 }
 0x12a   : > { %v608_v49 = vld [vmem:[#allocation2] sm:$0xff] }
 0x12b   : > { %v617_v52 = vadd.f32 %v779_v51, %v608_v49 }
 0x12c   : > { %v609_v50 = vld [vmem:[#allocation2 + $0x8] sm:$0xff] }
 0x12d   : > { %v618_v53 = vadd.f32 %v779_v51, %v609_v50  ;;  %v623_v57 = vadd.f32 %v791_v55, %v617_v52 }
 0x12f   : > { %v624_v58 = vadd.f32 %v792_v56, %v618_v53  ;;  %v625_v59 = vmax.f32 %v623_v57, 0.0 }
 0x131   : > { %v626_v60 = vmax.f32 %v624_v58, 0.0 }
 0x133   : > { %v796_v61 = vpack.c.bf16 %v626_v60, %v625_v59 }
 0x135   : > { %797 = vst [vmem:[%s1101_s4] sm:$0xff] %v796_v61  }
 0x136 PF: > { %s14_s19 = sadd.s32 1, %s960_s19   ;;  %s1102_s15 = smov %s948_s16 }
 0x137   : > { %p11_p12 = scmp.ge.s32.totalorder %s14_s19, 5   ;;  %s1103_s16 = smov %s1025_s23 }
 0x138   : > { %s1104_s17 = smov %s956_s18  ;;  %s1105_s18 = smov %s1107_s20 }
 0x139   :  { %13 = sbr.rel (!%p11_p12) target bundleno = 3 (0x3), region = 117 }

// kernel: _lambda_.30
= control target key start
LH: loop header
LB: loop body
LE: loop exit
PB: predicated region body
PF: predicated region fallthrough
CT: control target
= control target key end

     0   :  { %s910_s12 = smov 0   ;;  %s912_s13 = smov 0   ;;  %s1014_s0 = inlined_call_operand.vmem [shape: bf16[16,1152], index: 0, kind: input, shape index: {}]   ;;  %s1015_s1 = inlined_call_operand.vmem [shape: bf16[1152,128], index: 1, kind: input, shape index: {}]   ;;  %s1016_s2 = inlined_call_operand.vmem [shape: f32[1,128], index: 2, kind: input, shape index: {}]   ;;  %s1017_s3 = inlined_call_operand.vmem [shape: bf16[16,128], index: 3, kind: output, shape index: {}]  }
   0x1   :  { %s914_s14 = smov 0   ;;  %s916_s15 = smov 0  }
   0x2   :  { %s918_s16 = smov 0  }
   0x3 LB: > { %s22_s17 = sadd.s32 1, %s881_s15  ;;  %p41_p1 = scmp.ne.s32.totalorder %s873_s13, %s869_s12  ;;  %s885_s16 = sphi %s918_s16, %s13_s16   ;;  %s881_s15 = sphi %s916_s15, %s1021_s15   ;;  %s877_s14 = sphi %s914_s14, %s1020_s14   ;;  %s873_s13 = sphi %s912_s13, %s1019_s13   ;;  %s869_s12 = sphi %s910_s12, %s1018_s12  }
   0x4   : > { %p23_p0 = scmp.ge.s32.totalorder %s22_s17, 3  ;;  %p42_p2 = scmp.eq.s32.totalorder %s885_s16, 0 }
   0x5   : > { %s34_s19 = sadd.s32 1, %s873_s13  ;;  %p671_p5 = scmp.ge.s32.totalorder %s885_s16, 3 }
   0x6   : > { %s1023_s17 = smov (%p23_p0, %s22_s17), 0  ;;  %p43_p3 = por %p42_p2, %p41_p1 }
   0x7   : > { %s30_s18 = ssub.s32 %s881_s15, %s1023_s17  ;;  %143 = sbr.rel (%p671_p5) target bundleno = 21 (0x15), region = 20 }
   0x8   : > { %p32_p4 = scmp.eq.s32.totalorder %s30_s18, 0 }
   0xa   : > { %s945_s20 = scalar_select %p32_p4, %s873_s13, %s34_s19  }
   0xe   : > { %146 = sbr.rel (!%p43_p3) target bundleno = 21 (0x15), region = 24  ;;  %s148_s21 = sand.u32 (%p43_p3), 1, %s873_s13  }
   0xf   : > { %s715_s22 = smul.u32 (%p43_p3), 12, %s881_s15 }
  0x10   : > { %s774_s23 = smul.u32 (%p43_p3), 24, %s148_s21 }
  0x11   : > { %s156_s26 = scalar_lea.vmem (%p43_p3), %s1014_s0, %s715_s22 }
  0x12   : > { %v171_v0 = vld [vmem:[%s156_s26] sm:$0xff] (%p43_p3)  ;;  %v673_v2 = vld [vmem:[%s156_s26 + $0x8] sm:$0xf] (%p43_p3)  ;;  %s150_s27 = scalar_lea.vmem (%p43_p3), [#allocation3], %s774_s23  ;;  %v675_v3 = vld [vmem:[%s156_s26 + $0x2c] sm:$0xf] (%p43_p3) }
  0x13   : > { %v173_v1 = vld [vmem:[%s156_s26 + $0x24] sm:$0xff] (%p43_p3)  ;;  %172 = vst [vmem:[%s150_s27] sm:$0xff] (%p43_p3), %v171_v0  ;;  %674 = vst [vmem:[%s150_s27 + $0x8] sm:$0xf] (%p43_p3), %v673_v2 }
  0x14   : > { %174 = vst [vmem:[%s150_s27 + $0xc] sm:$0xff] (%p43_p3), %v173_v1  ;;  %676 = vst [vmem:[%s150_s27 + $0x14] sm:$0xf] (%p43_p3), %v675_v3 }
  0x15 PF: > { %p677_p6 = scmp.ge.s32.totalorder %s885_s16, 1  ;;  %p199_p7 = scmp.lt.s32.totalorder %s885_s16, 4 }
  0x17   : > { %p200_p8 = pnand %p677_p6, %p199_p7 }
  0x18   : > { %s206_s28 = sand.u32 (!%p200_p8), 1, %s869_s12   ;;  %s236_s29 = smul.u32 (!%p200_p8), 48, %s877_s14 }
  0x19   : > { %203 = sbr.rel (%p200_p8) target bundleno = 308 (0x134), region = 54  ;;  %p679_p10 = scmp.ne.s32.totalorder (!%p200_p8), %s877_s14, 0 }
  0x1a   : > { %s775_s30 = smul.u32 (!%p200_p8), 24, %s206_s28  ;;  %p237_p9 = scmp.lt.s32.totalorder (!%p200_p8), %s236_s29, 143 }
  0x1c   : > { %s962_s8 = scalar_lea.vmem (!%p200_p8), [#allocation3], %s775_s30 }
  0x20   : > { %s1025_s29 = smov (!%p237_p9, %s236_s29), 143  ;;  %252 = sbr.rel (%p679_p10) target bundleno = 39 (0x27), region = 62 }
  0x21   : > { %s678_s4 = sshll.u32 %s1025_s29, 2  ;;  %v887_v4 = vmov (!%p679_p10), 0.0  }
  0x22   : > { %s960_s7 = scalar_lea.vmem %s1015_s1, %s678_s4  ;;  %253 = vst [vmem:[#allocation2] sm:$0xff] (!%p679_p10), %v887_v4  ;;  %254 = vst [vmem:[#allocation2 + $0x8] sm:$0xff] (!%p679_p10), %v887_v4 }
  0x27 PF: > { %v819_v5 = vld [vmem:[%s960_s7 + $0x40] sm:$0xff]   ;;  %v888_v6 = vmov 0.0   ;;  %vm889_vm0 = vmmov 0   ;;  %v822_v9 = vld [vmem:[%s960_s7 + $0x48] sm:$0xff]   ;;  %v825_v12 = vld [vmem:[%s960_s7 + $0x50] sm:$0xff]   ;;  %p707_p11 = scmp.ne.s32.totalorder %s877_s14, 2 }
  0x28   : > { %754 = vmatprep.subr.bf16.mxu1 %v888_v6  ;;  %v820_v7 = vld [vmem:[%s960_s7] sm:$0xff]   ;;  %723 = vmatprep.subr.bf16.mxu0 %v819_v5  ;;  %v823_v10 = vld [vmem:[%s960_s7 + $0x8] sm:$0xff]   ;;  %v826_v13 = vld [vmem:[%s960_s7 + $0x10] sm:$0xff]  }
  0x29   : > { %v821_v8 = vld [vmem:[%s960_s7 + $0x80] sm:$0xff]   ;;  %770 = vmatprep.mubr.msk.bf16.mxu1 %vm889_vm0, %v888_v6  ;;  %724 = vmatpush3.bf16.msra.mxu0 %v820_v7  ;;  %v824_v11 = vld [vmem:[%s960_s7 + $0x88] sm:$0xff]   ;;  %v827_v14 = vld [vmem:[%s960_s7 + $0x90] sm:$0xff]  }
  0x2a   : > { %755 = vmatpush3.bf16.msra.mxu1 %v821_v8  ;;  %725 = vmatprep.subr.bf16.mxu0 %v822_v9  ;;  %v828_v15 = vld [vmem:[%s960_s7 + $0x58] sm:$0xff]   ;;  %v831_v18 = vld [vmem:[%s960_s7 + $0x60] sm:$0xff]   ;;  %v834_v21 = vld [vmem:[%s960_s7 + $0x68] sm:$0xff]  }
  0x2b   : > { %756 = vmatprep.subr.bf16.mxu1 %v888_v6  ;;  %v829_v16 = vld [vmem:[%s960_s7 + $0x18] sm:$0xff]   ;;  %v832_v19 = vld [vmem:[%s960_s7 + $0x20] sm:$0xff]   ;;  %v835_v22 = vld [vmem:[%s960_s7 + $0x28] sm:$0xff]  }
  0x2c   : > { %v830_v17 = vld [vmem:[%s960_s7 + $0x98] sm:$0xff]   ;;  %v833_v20 = vld [vmem:[%s960_s7 + $0xa0] sm:$0xff]   ;;  %v836_v23 = vld [vmem:[%s960_s7 + $0xa8] sm:$0xff]  }
  0x2d   : > { %726 = vmatpush3.bf16.msra.mxu0 %v823_v10  ;;  %v837_v24 = vld [vmem:[%s960_s7 + $0x70] sm:$0xff]   ;;  %v840_v27 = vld [vmem:[%s960_s7 + $0x78] sm:$0xff]   ;;  %v255_v39 = vld [vmem:[#allocation2] sm:$0xff] }
  0x2e   : > { %757 = vmatpush3.bf16.msra.mxu1 %v824_v11  ;;  %727 = vmatprep.subr.bf16.mxu0 %v825_v12  ;;  %v838_v25 = vld [vmem:[%s960_s7 + $0x30] sm:$0xff]   ;;  %v841_v29 = vld [vmem:[%s960_s7 + $0x38] sm:$0xff]   ;;  %v256_v45 = vld [vmem:[#allocation2 + $0x8] sm:$0xff] }
  0x2f   : > { %758 = vmatprep.subr.bf16.mxu1 %v888_v6  ;;  %v839_v26 = vld [vmem:[%s960_s7 + $0xb0] sm:$0xff]   ;;  %v842_v30 = vld [vmem:[%s960_s7 + $0xb8] sm:$0xff]   ;;  %v708_v51 = vld [vmem:[%s1016_s2] ss:$0 sm:$0xff] (!%p707_p11) }
  0x30   : > { %v845_v28 = vld [vmem:[%s962_s8 + $0x4] ss:$12 sps:$4 sm:$0xff]   ;;  %v843_v31 = vld [vmem:[%s962_s8] ss:$12 sps:$4 sm:$0xff]   ;;  %v846_v32 = vld [vmem:[%s962_s8 + $0x8] ss:$12 sps:$4 sm:$0xff]  }
  0x31   : > { %728 = vmatpush3.bf16.msra.mxu0 %v826_v13  ;;  %501 = vmatprep.mubr.bf16.mxu0 %v845_v28 }
  0x32   : > { %759 = vmatpush3.bf16.msra.mxu1 %v827_v14  ;;  %729 = vmatprep.subr.bf16.mxu0 %v828_v15 }
  0x33   : > { %760 = vmatprep.subr.bf16.mxu1 %v888_v6 }
  0x35   : > { %730 = vmatpush3.bf16.msra.mxu0 %v829_v16 }
  0x36   : > { %761 = vmatpush3.bf16.msra.mxu1 %v830_v17  ;;  %731 = vmatprep.subr.bf16.mxu0 %v831_v18 }
  0x37   : > { %762 = vmatprep.subr.bf16.mxu1 %v888_v6 }
  0x39   : > { %732 = vmatpush3.bf16.msra.mxu0 %v832_v19 }
  0x3a   : > { %763 = vmatpush3.bf16.msra.mxu1 %v833_v20  ;;  %733 = vmatprep.subr.bf16.mxu0 %v834_v21 }
  0x3b   : > { %764 = vmatprep.subr.bf16.mxu1 %v888_v6 }
  0x3d   : > { %734 = vmatpush3.bf16.msra.mxu0 %v835_v22 }
  0x3e   : > { %765 = vmatpush3.bf16.msra.mxu1 %v836_v23  ;;  %735 = vmatprep.subr.bf16.mxu0 %v837_v24 }
  0x3f   : > { %766 = vmatprep.subr.bf16.mxu1 %v888_v6 }
  0x41   : > { %736 = vmatpush3.bf16.msra.mxu0 %v838_v25 }
  0x42   : > { %767 = vmatpush3.bf16.msra.mxu1 %v839_v26  ;;  %737 = vmatprep.subr.bf16.mxu0 %v840_v27 }
  0x43   : > { %768 = vmatprep.subr.bf16.mxu1 %v888_v6 }
  0x45   : > { %738 = vmatpush3.bf16.msra.mxu0 %v841_v29 }
  0x46   : > { %769 = vmatpush3.bf16.msra.mxu1 %v842_v30 }
  0x48   : > { %502 = vmatmul.mubr.bf16.vlgmr.msra.gmra.mrb[0].mxu0 %v843_v31 }
  0x49   : > { %771 = vmatmul.mubr.bf16.vlgmr.msra.gmra.mrb[0].mxu1 %v846_v32 }
 0x11b   : > { %v739_v33 = vpop.f32.mrb[0].mxu0 }
 0x11c   : > { %v544_v34 = vpop.f32.mrb[0].mxu1  ;;  %v740_v35 = vpop.f32.mrb[1].mxu0 }
 0x11d   : > { %v741_v36 = vadd.f32 %v740_v35, %v739_v33  ;;  %v772_v37 = vpop.f32.mrb[1].mxu1  ;;  %v742_v38 = vpop.f32.mrb[2].mxu0 }
 0x11e   : > { %v547_v40 = vpop.f32.mrb[2].mxu1  ;;  %v743_v41 = vpop.f32.mrb[3].mxu0 }
 0x11f   : > { %v545_v42 = vadd.f32 %v741_v36, %v544_v34  ;;  %v744_v43 = vadd.f32 %v743_v41, %v742_v38  ;;  %v773_v44 = vpop.f32.mrb[3].mxu1  ;;  %558 = sbr.rel (%p707_p11) target bundleno = 308 (0x134), region = 66 }
 0x121   : > { %v551_v46 = vadd.f32 %v545_v42, %v255_v39  ;;  %v548_v47 = vadd.f32 %v744_v43, %v547_v40 }
 0x123   : > { %553 = vst [vmem:[#allocation2] sm:$0xff] %v551_v46  ;;  %v552_v48 = vadd.f32 %v548_v47, %v256_v45 }
 0x125   : > { %554 = vst [vmem:[#allocation2 + $0x8] sm:$0xff] %v552_v48 }
 0x12a   : > { %v559_v49 = vld [vmem:[#allocation2] sm:$0xff] }
 0x12b   : > { %v568_v52 = vadd.f32 %v708_v51, %v559_v49 }
 0x12c   : > { %v560_v50 = vld [vmem:[#allocation2 + $0x8] sm:$0xff] }
 0x12d   : > { %v569_v53 = vadd.f32 %v708_v51, %v560_v50  ;;  %v570_v54 = vmax.f32 %v568_v52, 0.0 }
 0x12f   : > { %v571_v55 = vmax.f32 %v569_v53, 0.0 }
 0x131   : > { %v721_v56 = vpack.c.bf16 %v571_v55, %v570_v54 }
 0x133   : > { %722 = vst [vmem:[%s1017_s3] sm:$0xff] %v721_v56  }
 0x134 PF: > { %s13_s16 = sadd.s32 1, %s885_s16   ;;  %s1018_s12 = smov %s873_s13 }
 0x135   : > { %p10_p12 = scmp.ge.s32.totalorder %s13_s16, 5   ;;  %s1019_s13 = smov %s945_s20 }
 0x136   : > { %s1020_s14 = smov %s881_s15  ;;  %s1021_s15 = smov %s1023_s17 }
 0x137   :  { %12 = sbr.rel (!%p10_p12) target bundleno = 3 (0x3), region = 110 }

</bundles_post_ra>
